<compile_context>
chip_gen: v7x
topology: tpu7x:2x2x1
jax: 0.10.0
libtpu: 0.0.40
codegen_flags: <defaults>
</compile_context>

<pallas_src>
import functools

import jax
import jax.numpy as jnp
from jax import lax
from jax.experimental import pallas as pl
from jax.experimental.pallas import tpu as pltpu


# Set to jnp.bfloat16 on v6e/v7x for halved slab DMA bytes + faster MXU
# (f32 accumulation is kept either way).  float32 matches PyTorch exactly.
COMPUTE_DTYPE = jnp.float32

_COMPILER_PARAMS = pltpu.CompilerParams(
    dimension_semantics=("parallel",),          # v7x: shard grid over 2 TCs
    vmem_limit_bytes=32 * 1024 * 1024,
)


# ---------------------------------------------------------------------------
# Pallas kernel 1: row-tiled patch matmul + bias + ReLU (used for conv1a)
# ---------------------------------------------------------------------------
def _matmul_bias_relu_kernel(a_ref, w_ref, b_ref, o_ref):
    # a_ref: (TM, K), w_ref: (K, Cout), b_ref: (1, Cout), o_ref: (TM, Cout)
    acc = jnp.dot(a_ref[...], w_ref[...], preferred_element_type=jnp.float32)
    o_ref[...] = jnp.maximum(acc + b_ref[...], 0.0).astype(o_ref.dtype)


def conv3x3_s1_relu_pallas(x, weight, bias, *, tm=2048,
                           compute_dtype=jnp.float32):
    """PyTorch Conv2d(Cin, Cout, 3, stride=1, padding=0) + ReLU, NHWC input.

    Only used for conv1a (Cin == 1): the full patch matrix is K=9 -> tiny
    (~1.5 MB), and one matmul is 3x fewer MXU passes than walking kh taps.
    """
    n, h, w, cin = x.shape
    cout = weight.shape[0]
    ho, wo = h - 2, w - 2
    k = 9 * cin

    # Patch channel order: (kh*3 + kw)*Cin + c  (matches the weight packing).
    cols = [x[:, kh:kh + ho, kw:kw + wo, :]
            for kh in range(3) for kw in range(3)]
    patches = jnp.concatenate(cols, axis=3).reshape(n * ho * wo, k)
    patches = patches.astype(compute_dtype)

    w2 = jnp.transpose(weight, (2, 3, 1, 0)).reshape(k, cout)
    w2 = w2.astype(compute_dtype)
    b2 = bias.reshape(1, cout).astype(jnp.float32)

    m = n * ho * wo
    tm = min(tm, m)
    out = pl.pallas_call(
        _matmul_bias_relu_kernel,
        out_shape=jax.ShapeDtypeStruct((m, cout), jnp.float32),
        grid=(pl.cdiv(m, tm),),                 # no jnp.pad of M: boundary
        in_specs=[                              # block is masked by Pallas.
            pl.BlockSpec((tm, k), lambda i: (i, 0)),
            pl.BlockSpec((k, cout), lambda i: (0, 0)),
            pl.BlockSpec((1, cout), lambda i: (0, 0)),
        ],
        out_specs=pl.BlockSpec((tm, cout), lambda i: (i, 0)),
        compiler_params=_COMPILER_PARAMS,
    )(patches, w2, b2)
    return out.reshape(n, ho, wo, cout)


# ---------------------------------------------------------------------------
# Pallas kernel 2: fused 3x3 stride-2 conv (NHWC) with in-kernel kh taps
# ---------------------------------------------------------------------------
def _conv3x3_s2_kernel(even_ref, odd_ref, w_ref, b_ref, o_ref, *,
                       tm, n_tiles, m_total, wo):
    """One image per grid step.

    even_ref/odd_ref: (1, R, 3*Cin) width-decimated row-phase slabs, flattened
        over (input_row, out_col); row r of `even` holds input row 2r, row r
        of `odd` holds input row 2r+1.  Lane order per row: kw-major,
        cin-minor (the three kw shifts stacked along channels).
    w_ref: (3, 3*Cin, Cout) -- one (3*Cin, Cout) matrix per kh tap.
    o_ref: (1, Ho*Wo, Cout).
    Output row m = ho*Wo + wo uses even rows m and m + Wo (kh = 0, 2) and
    odd row m (kh = 1).
    """
    b_row = b_ref[...]                                      # (1, Cout)

    def body(i, carry):
        # Clamp the ragged last tile instead of padding (perf-review item):
        # a few rows get recomputed; nothing is read/written out of bounds.
        m0 = jnp.minimum(i * tm, m_total - tm)
        a0 = even_ref[0, pl.ds(m0, tm), :]                  # kh = 0
        a1 = odd_ref[0, pl.ds(m0, tm), :]                   # kh = 1
        a2 = even_ref[0, pl.ds(m0 + wo, tm), :]             # kh = 2
        acc = jnp.dot(a0, w_ref[0], preferred_element_type=jnp.float32)
        acc += jnp.dot(a1, w_ref[1], preferred_element_type=jnp.float32)
        acc += jnp.dot(a2, w_ref[2], preferred_element_type=jnp.float32)
        acc += b_row
        o_ref[0, pl.ds(m0, tm), :] = jnp.maximum(acc, 0.0).astype(o_ref.dtype)
        return carry

    lax.fori_loop(0, n_tiles, body, 0)


def _phase_slab(x, row_start, wo):
    """Every other input row starting at `row_start`, with the three kw-shifted
    width-decimated column sets stacked along channels, flattened over
    (row, out_col).  ~0.75x the input bytes per phase (1.5x total), instead of
    the 9x im2col patch matrix."""
    cols = [x[:, row_start::2, kw: kw + 2 * (wo - 1) + 1: 2, :]
            for kw in range(3)]
    g = jnp.concatenate(cols, axis=3)           # (n, r, wo, 3*cin)
    n, r = g.shape[0], g.shape[1]
    return g.reshape(n, r * wo, g.shape[3])


def conv3x3_s2_relu_pallas(x, weight, bias, *, tm=256,
                           compute_dtype=jnp.float32):
    """PyTorch Conv2d(Cin, Cout, 3, stride=2, padding=0) + ReLU, NHWC input."""
    n, h, w, cin = x.shape
    cout = weight.shape[0]
    ho = (h - 3) // 2 + 1
    wo = (w - 3) // 2 + 1
    m = ho * wo
    k = 3 * cin

    even = _phase_slab(x, 0, wo).astype(compute_dtype)   # input rows 0,2,4,...
    odd = _phase_slab(x, 1, wo).astype(compute_dtype)    # input rows 1,3,5,...
    # Row-count sanity: kh=2 reads up to even row m + wo - 1.
    assert even.shape[1] >= m + wo and odd.shape[1] >= m

    # (kh, kw, cin, cout): per-kh (3*cin, cout) matrices, kw-major / cin-minor
    # to match the slab channel order.
    w_packed = jnp.transpose(weight, (2, 3, 1, 0)).reshape(3, k, cout)
    w_packed = w_packed.astype(compute_dtype)
    b2 = bias.reshape(1, cout).astype(jnp.float32)

    tm = min(tm, m)
    n_tiles = pl.cdiv(m, tm)
    kernel = functools.partial(_conv3x3_s2_kernel, tm=tm, n_tiles=n_tiles,
                               m_total=m, wo=wo)
    out = pl.pallas_call(
        kernel,
        out_shape=jax.ShapeDtypeStruct((n, m, cout), jnp.float32),
        grid=(n,),                               # one image per grid step
        in_specs=[
            pl.BlockSpec((1,) + even.shape[1:], lambda i: (i, 0, 0)),
            pl.BlockSpec((1,) + odd.shape[1:], lambda i: (i, 0, 0)),
            pl.BlockSpec(w_packed.shape, lambda i: (0, 0, 0)),
            pl.BlockSpec((1, cout), lambda i: (0, 0)),
        ],
        out_specs=pl.BlockSpec((1, m, cout), lambda i: (i, 0, 0)),
        compiler_params=_COMPILER_PARAMS,
    )(even, odd, w_packed, b2)
    return out.reshape(n, ho, wo, cout)


# ---------------------------------------------------------------------------
# Plain-XLA pieces (tail of the network, per perf-review items 5 & 10)
# ---------------------------------------------------------------------------
def _conv3x3_relu_xla(x, weight, bias, *, stride):
    w_hwio = jnp.transpose(weight, (2, 3, 1, 0))
    y = lax.conv_general_dilated(
        x, w_hwio, window_strides=(stride, stride), padding="VALID",
        dimension_numbers=("NHWC", "HWIO", "NHWC"),
        precision=lax.Precision.HIGHEST)
    return jnp.maximum(y + bias, 0.0)


# ---------------------------------------------------------------------------
# DLean2Net (inference; Dropout2d == identity in eval mode)
# ---------------------------------------------------------------------------
CONV_CFG = [  # (name, Cin, Cout, stride)
    ("conv1a", 1, 16, 1),
    ("conv1b", 16, 16, 2),
    ("conv2", 16, 24, 2),
    ("conv3", 24, 36, 2),
    ("conv4", 36, 54, 2),
    ("conv5", 54, 81, 2),
    ("conv6", 81, 122, 2),
]


def init_params(key, input_resolution=(160, 128), num_output_nodes=2):
    params = {}
    for name, cin, cout, _stride in CONV_CFG:
        key, kw_, kb = jax.random.split(key, 3)
        fan_in = cin * 9
        scale = 1.0 / jnp.sqrt(fan_in)
        params[name + "_w"] = scale * jax.random.normal(
            kw_, (cout, cin, 3, 3), jnp.float32)        # PyTorch layout
        params[name + "_b"] = scale * jax.random.normal(kb, (cout,), jnp.float32)

    # Same last_layer_node_count recurrence as the PyTorch __init__.
    h, w = input_resolution[1], input_resolution[0]
    for _ in range(6):
        h = -(-h // 2) - 1          # ceil(h/2) - 1
        w = -(-w // 2) - 1
    last_layer_node_count = int(h * w * 122)

    key, kw_, kb = jax.random.split(key, 3)
    scale = 1.0 / jnp.sqrt(last_layer_node_count)
    params["fc1_w"] = scale * jax.random.normal(
        kw_, (last_layer_node_count, num_output_nodes), jnp.float32)  # (in, out)
    params["fc1_b"] = scale * jax.random.normal(
        kb, (num_output_nodes,), jnp.float32)
    params["last_layer_node_count"] = last_layer_node_count
    return params


def dlean2net_forward(params, x_nchw, *, compute_dtype=COMPUTE_DTYPE):
    """x_nchw: (N, 1, H, W) f32 -> (N, num_output_nodes) f32."""
    n = x_nchw.shape[0]
    x = jnp.transpose(x_nchw, (0, 2, 3, 1))              # NHWC (free, Cin==1)
    x = jnp.pad(x, ((0, 0), (1, 1), (1, 1), (0, 0)))     # ZeroPad2d((1,1,1,1))

    # conv1a..conv3: Pallas kernels (99.7% of all output rows).
    x = conv3x3_s1_relu_pallas(x, params["conv1a_w"], params["conv1a_b"],
                               tm=2048, compute_dtype=compute_dtype)
    x = conv3x3_s2_relu_pallas(x, params["conv1b_w"], params["conv1b_b"],
                               compute_dtype=compute_dtype)
    x = conv3x3_s2_relu_pallas(x, params["conv2_w"], params["conv2_b"],
                               compute_dtype=compute_dtype)
    x = conv3x3_s2_relu_pallas(x, params["conv3_w"], params["conv3_b"],
                               compute_dtype=compute_dtype)
    # conv4..conv6 + fc1: tiny (<= 126 rows/image) -> plain XLA (review 5/10).
    x = _conv3x3_relu_xla(x, params["conv4_w"], params["conv4_b"], stride=2)
    x = _conv3x3_relu_xla(x, params["conv5_w"], params["conv5_b"], stride=2)
    x = _conv3x3_relu_xla(x, params["conv6_w"], params["conv6_b"], stride=2)
    # Dropout2d layers: identity at inference.
    # x.view(-1, last_layer_node_count): PyTorch flattens NCHW in (C,H,W) order.
    flat = jnp.transpose(x, (0, 3, 1, 2)).reshape(
        n, params["last_layer_node_count"])
    out = jnp.matmul(flat, params["fc1_w"],
                     precision=lax.Precision.HIGHEST) + params["fc1_b"]
    return out


def reference_forward(params, x_nchw):
    """Pure-XLA reference (same math) used only for the numerical self-check."""
    n = x_nchw.shape[0]
    x = jnp.transpose(x_nchw, (0, 2, 3, 1))
    x = jnp.pad(x, ((0, 0), (1, 1), (1, 1), (0, 0)))
    for name, _cin, _cout, stride in CONV_CFG:
        x = _conv3x3_relu_xla(x, params[name + "_w"], params[name + "_b"],
                              stride=stride)
    flat = jnp.transpose(x, (0, 3, 1, 2)).reshape(
        n, params["last_layer_node_count"])
    return jnp.matmul(flat, params["fc1_w"],
                      precision=lax.Precision.HIGHEST) + params["fc1_b"]


if __name__ == "__main__":
    key = jax.random.PRNGKey(0)
    key_p, key_x = jax.random.split(key)

    # Smallest "nice" resolution that survives the six stride-2 convs:
    # (W=160, H=128) -> final feature map 1x1x122 -> fc1 input of 122.
    input_resolution = (160, 128)
    params = init_params(key_p, input_resolution=input_resolution,
                         num_output_nodes=2)

    batch = 2
    x = jax.random.normal(
        key_x, (batch, 1, input_resolution[1], input_resolution[0]),
        jnp.float32)

    fwd = jax.jit(functools.partial(dlean2net_forward, params))
    y = fwd(x)
    jax.block_until_ready(y)
    assert y.shape == (batch, 2) and y.dtype == jnp.float32

    # Numerical self-check against the pure-XLA reference (f32 path).
    y_ref = jax.jit(functools.partial(reference_forward, params))(x)
    jax.block_until_ready(y_ref)
    assert jnp.allclose(y, y_ref, rtol=2e-2, atol=2e-3), (y, y_ref)

    print("KERNEL_OK")
</pallas_src>

<mosaic_0001>
module attributes {stable_mosaic.version = 11 : i64} {
  func.func @_matmul_bias_relu_kernel(%arg0: i32, %arg1: memref<2048x9xf32, #tpu.memory_space<vmem>>, %arg2: memref<9x16xf32, #tpu.memory_space<vmem>>, %arg3: memref<1x16xf32, #tpu.memory_space<vmem>>, %arg4: memref<2048x16xf32, #tpu.memory_space<vmem>>) attributes {dimension_semantics = [#tpu.dimension_semantics<parallel>], iteration_bounds = array<i64: 20>, scalar_prefetch = 0 : i64, scratch_operands = 0 : i64, tpu.core_type = #tpu.core_type<tc>, window_params = [{transform_indices = @transform_0, window_bounds = array<i64: 2048, 9>}, {pipeline_mode = #tpu.pipeline_mode<synchronous>, transform_indices = @transform_1, window_bounds = array<i64: 9, 16>}, {pipeline_mode = #tpu.pipeline_mode<synchronous>, transform_indices = @transform_2, window_bounds = array<i64: 1, 16>}, {transform_indices = @transform_3, window_bounds = array<i64: 2048, 16>}]} {
    %c0 = arith.constant 0 : index
    %c0_0 = arith.constant 0 : index
    %0 = vector.load %arg1[%c0, %c0_0] : memref<2048x9xf32, #tpu.memory_space<vmem>>, vector<2048x9xf32>
    %c0_1 = arith.constant 0 : index
    %c0_2 = arith.constant 0 : index
    %1 = vector.load %arg2[%c0_1, %c0_2] : memref<9x16xf32, #tpu.memory_space<vmem>>, vector<9x16xf32>
    %cst = arith.constant dense<0.000000e+00> : vector<2048x16xf32>
    %2 = tpu.matmul %0, %1, %cst {dimension_numbers = #tpu.dot_dimension_numbers<[1], [0], [0], [1], [0, 0, 1, 1], [], []>} : vector<2048x9xf32>, vector<9x16xf32>, vector<2048x16xf32> -> vector<2048x16xf32>
    %c0_3 = arith.constant 0 : index
    %c0_4 = arith.constant 0 : index
    %3 = vector.load %arg3[%c0_3, %c0_4] : memref<1x16xf32, #tpu.memory_space<vmem>>, vector<1x16xf32>
    %4 = vector.broadcast %3 : vector<1x16xf32> to vector<2048x16xf32>
    %5 = arith.addf %2, %4 : vector<2048x16xf32>
    %cst_5 = arith.constant 0.000000e+00 : f32
    %6 = vector.broadcast %cst_5 : f32 to vector<2048x16xf32>
    %7 = arith.maximumf %5, %6 : vector<2048x16xf32>
    %c0_6 = arith.constant 0 : index
    %c0_7 = arith.constant 0 : index
    %8 = vector.load %arg4[%c0_6, %c0_7] : memref<2048x16xf32, #tpu.memory_space<vmem>>, vector<2048x16xf32>
    tpu.vector_store %arg4[%c0_6, %c0_7], %7 {strides = array<i32>} : memref<2048x16xf32, #tpu.memory_space<vmem>>, vector<2048x16xf32>,
    return
  }
  func.func @transform_0(%arg0: i32) -> (i32, i32) {
    %c0_i32 = arith.constant 0 : i32
    %c0_i32_0 = arith.constant 0 : i32
    return %arg0, %c0_i32 : i32, i32
  }
  func.func @transform_1(%arg0: i32) -> (i32, i32) {
    %c0_i32 = arith.constant 0 : i32
    %c0_i32_0 = arith.constant 0 : i32
    %c0_i32_1 = arith.constant 0 : i32
    return %c0_i32, %c0_i32_0 : i32, i32
  }
  func.func @transform_2(%arg0: i32) -> (i32, i32) {
    %c0_i32 = arith.constant 0 : i32
    %c0_i32_0 = arith.constant 0 : i32
    %c0_i32_1 = arith.constant 0 : i32
    return %c0_i32, %c0_i32_0 : i32, i32
  }
  func.func @transform_3(%arg0: i32) -> (i32, i32) {
    %c0_i32 = arith.constant 0 : i32
    %c0_i32_0 = arith.constant 0 : i32
    return %arg0, %c0_i32 : i32, i32
  }
}

module attributes {stable_mosaic.version = 11 : i64} {
  func.func @_conv3x3_s2_kernel(%arg0: i32, %arg1: memref<1x5056x48xf32, #tpu.memory_space<vmem>>, %arg2: memref<1x5056x48xf32, #tpu.memory_space<vmem>>, %arg3: memref<3x48x16xf32, #tpu.memory_space<vmem>>, %arg4: memref<1x16xf32, #tpu.memory_space<vmem>>, %arg5: memref<1x4977x16xf32, #tpu.memory_space<vmem>>) attributes {dimension_semantics = [#tpu.dimension_semantics<parallel>], iteration_bounds = array<i64: 2>, scalar_prefetch = 0 : i64, scratch_operands = 0 : i64, tpu.core_type = #tpu.core_type<tc>, window_params = [{transform_indices = @transform_0, window_bounds = array<i64: 1, 5056, 48>}, {transform_indices = @transform_1, window_bounds = array<i64: 1, 5056, 48>}, {pipeline_mode = #tpu.pipeline_mode<synchronous>, transform_indices = @transform_2, window_bounds = array<i64: 3, 48, 16>}, {pipeline_mode = #tpu.pipeline_mode<synchronous>, transform_indices = @transform_3, window_bounds = array<i64: 1, 16>}, {transform_indices = @transform_4, window_bounds = array<i64: 1, 4977, 16>}]} {
    %c0 = arith.constant 0 : index
    %c0_0 = arith.constant 0 : index
    %0 = vector.load %arg4[%c0, %c0_0] : memref<1x16xf32, #tpu.memory_space<vmem>>, vector<1x16xf32>
    %c0_i32 = arith.constant 0 : i32
    %c20_i32 = arith.constant 20 : i32
    %1 = arith.addi %c0_i32, %c20_i32 : i32
    %c1_i32 = arith.constant 1 : i32
    scf.for %arg6 = %c0_i32 to %1 step %c1_i32  : i32 {
      %c256_i32 = arith.constant 256 : i32
      %2 = arith.muli %arg6, %c256_i32 : i32
      %c4721_i32 = arith.constant 4721 : i32
      %3 = arith.minsi %2, %c4721_i32 : i32
      %c0_2 = arith.constant 0 : index
      %4 = arith.index_cast %3 : i32 to index
      %c0_3 = arith.constant 0 : index
      %5 = vector.load %arg1[%c0_2, %4, %c0_3] : memref<1x5056x48xf32, #tpu.memory_space<vmem>>, vector<1x256x48xf32>
      %6 = vector.shape_cast %5 : vector<1x256x48xf32> to vector<256x48xf32>
      %c0_4 = arith.constant 0 : index
      %7 = arith.index_cast %3 : i32 to index
      %c0_5 = arith.constant 0 : index
      %8 = vector.load %arg2[%c0_4, %7, %c0_5] : memref<1x5056x48xf32, #tpu.memory_space<vmem>>, vector<1x256x48xf32>
      %9 = vector.shape_cast %8 : vector<1x256x48xf32> to vector<256x48xf32>
      %c79_i32 = arith.constant 79 : i32
      %10 = arith.addi %3, %c79_i32 : i32
      %c0_6 = arith.constant 0 : index
      %11 = arith.index_cast %10 : i32 to index
      %c0_7 = arith.constant 0 : index
      %12 = vector.load %arg1[%c0_6, %11, %c0_7] : memref<1x5056x48xf32, #tpu.memory_space<vmem>>, vector<1x256x48xf32>
      %13 = vector.shape_cast %12 : vector<1x256x48xf32> to vector<256x48xf32>
      %c0_8 = arith.constant 0 : index
      %c0_9 = arith.constant 0 : index
      %c0_10 = arith.constant 0 : index
      %14 = vector.load %arg3[%c0_8, %c0_9, %c0_10] : memref<3x48x16xf32, #tpu.memory_space<vmem>>, vector<1x48x16xf32>
      %15 = vector.shape_cast %14 : vector<1x48x16xf32> to vector<48x16xf32>
      %cst = arith.constant dense<0.000000e+00> : vector<256x16xf32>
      %16 = tpu.matmul %6, %15, %cst {dimension_numbers = #tpu.dot_dimension_numbers<[1], [0], [0], [1], [0, 0, 1, 1], [], []>} : vector<256x48xf32>, vector<48x16xf32>, vector<256x16xf32> -> vector<256x16xf32>
      %c1 = arith.constant 1 : index
      %c0_11 = arith.constant 0 : index
      %c0_12 = arith.constant 0 : index
      %17 = vector.load %arg3[%c1, %c0_11, %c0_12] : memref<3x48x16xf32, #tpu.memory_space<vmem>>, vector<1x48x16xf32>
      %18 = vector.shape_cast %17 : vector<1x48x16xf32> to vector<48x16xf32>
      %cst_13 = arith.constant dense<0.000000e+00> : vector<256x16xf32>
      %19 = tpu.matmul %9, %18, %cst_13 {dimension_numbers = #tpu.dot_dimension_numbers<[1], [0], [0], [1], [0, 0, 1, 1], [], []>} : vector<256x48xf32>, vector<48x16xf32>, vector<256x16xf32> -> vector<256x16xf32>
      %20 = arith.addf %16, %19 : vector<256x16xf32>
      %c2 = arith.constant 2 : index
      %c0_14 = arith.constant 0 : index
      %c0_15 = arith.constant 0 : index
      %21 = vector.load %arg3[%c2, %c0_14, %c0_15] : memref<3x48x16xf32, #tpu.memory_space<vmem>>, vector<1x48x16xf32>
      %22 = vector.shape_cast %21 : vector<1x48x16xf32> to vector<48x16xf32>
      %cst_16 = arith.constant dense<0.000000e+00> : vector<256x16xf32>
      %23 = tpu.matmul %13, %22, %cst_16 {dimension_numbers = #tpu.dot_dimension_numbers<[1], [0], [0], [1], [0, 0, 1, 1], [], []>} : vector<256x48xf32>, vector<48x16xf32>, vector<256x16xf32> -> vector<256x16xf32>
      %24 = arith.addf %20, %23 : vector<256x16xf32>
      %25 = vector.broadcast %0 : vector<1x16xf32> to vector<256x16xf32>
      %26 = arith.addf %24, %25 : vector<256x16xf32>
      %cst_17 = arith.constant 0.000000e+00 : f32
      %27 = vector.broadcast %cst_17 : f32 to vector<256x16xf32>
      %28 = arith.maximumf %26, %27 : vector<256x16xf32>
      %c0_18 = arith.constant 0 : index
      %29 = arith.index_cast %3 : i32 to index
      %c0_19 = arith.constant 0 : index
      %30 = vector.load %arg5[%c0_18, %29, %c0_19] : memref<1x4977x16xf32, #tpu.memory_space<vmem>>, vector<1x256x16xf32>
      %31 = vector.shape_cast %30 : vector<1x256x16xf32> to vector<256x16xf32>
      %32 = vector.shape_cast %28 : vector<256x16xf32> to vector<1x256x16xf32>
      tpu.vector_store %arg5[%c0_18, %29, %c0_19], %32 {strides = array<i32>} : memref<1x4977x16xf32, #tpu.memory_space<vmem>>, vector<1x256x16xf32>,
    }
    %c20_i32_1 = arith.constant 20 : i32
    return
  }
  func.func @transform_0(%arg0: i32) -> (i32, i32, i32) {
    %c0_i32 = arith.constant 0 : i32
    %c0_i32_0 = arith.constant 0 : i32
    %c0_i32_1 = arith.constant 0 : i32
    return %arg0, %c0_i32, %c0_i32_0 : i32, i32, i32
  }
  func.func @transform_1(%arg0: i32) -> (i32, i32, i32) {
    %c0_i32 = arith.constant 0 : i32
    %c0_i32_0 = arith.constant 0 : i32
    %c0_i32_1 = arith.constant 0 : i32
    return %arg0, %c0_i32, %c0_i32_0 : i32, i32, i32
  }
  func.func @transform_2(%arg0: i32) -> (i32, i32, i32) {
    %c0_i32 = arith.constant 0 : i32
    %c0_i32_0 = arith.constant 0 : i32
    %c0_i32_1 = arith.constant 0 : i32
    %c0_i32_2 = arith.constant 0 : i32
    return %c0_i32, %c0_i32_0, %c0_i32_1 : i32, i32, i32
  }
  func.func @transform_3(%arg0: i32) -> (i32, i32) {
    %c0_i32 = arith.constant 0 : i32
    %c0_i32_0 = arith.constant 0 : i32
    %c0_i32_1 = arith.constant 0 : i32
    return %c0_i32, %c0_i32_0 : i32, i32
  }
  func.func @transform_4(%arg0: i32) -> (i32, i32, i32) {
    %c0_i32 = arith.constant 0 : i32
    %c0_i32_0 = arith.constant 0 : i32
    %c0_i32_1 = arith.constant 0 : i32
    return %arg0, %c0_i32, %c0_i32_0 : i32, i32, i32
  }
}

module attributes {stable_mosaic.version = 11 : i64} {
  func.func @_conv3x3_s2_kernel(%arg0: i32, %arg1: memref<1x1248x48xf32, #tpu.memory_space<vmem>>, %arg2: memref<1x1209x48xf32, #tpu.memory_space<vmem>>, %arg3: memref<3x48x24xf32, #tpu.memory_space<vmem>>, %arg4: memref<1x24xf32, #tpu.memory_space<vmem>>, %arg5: memref<1x1209x24xf32, #tpu.memory_space<vmem>>) attributes {dimension_semantics = [#tpu.dimension_semantics<parallel>], iteration_bounds = array<i64: 2>, scalar_prefetch = 0 : i64, scratch_operands = 0 : i64, tpu.core_type = #tpu.core_type<tc>, window_params = [{transform_indices = @transform_0, window_bounds = array<i64: 1, 1248, 48>}, {transform_indices = @transform_1, window_bounds = array<i64: 1, 1209, 48>}, {pipeline_mode = #tpu.pipeline_mode<synchronous>, transform_indices = @transform_2, window_bounds = array<i64: 3, 48, 24>}, {pipeline_mode = #tpu.pipeline_mode<synchronous>, transform_indices = @transform_3, window_bounds = array<i64: 1, 24>}, {transform_indices = @transform_4, window_bounds = array<i64: 1, 1209, 24>}]} {
    %c0 = arith.constant 0 : index
    %c0_0 = arith.constant 0 : index
    %0 = vector.load %arg4[%c0, %c0_0] : memref<1x24xf32, #tpu.memory_space<vmem>>, vector<1x24xf32>
    %c0_i32 = arith.constant 0 : i32
    %c5_i32 = arith.constant 5 : i32
    %1 = arith.addi %c0_i32, %c5_i32 : i32
    %c1_i32 = arith.constant 1 : i32
    scf.for %arg6 = %c0_i32 to %1 step %c1_i32  : i32 {
      %c256_i32 = arith.constant 256 : i32
      %2 = arith.muli %arg6, %c256_i32 : i32
      %c953_i32 = arith.constant 953 : i32
      %3 = arith.minsi %2, %c953_i32 : i32
      %c0_2 = arith.constant 0 : index
      %4 = arith.index_cast %3 : i32 to index
      %c0_3 = arith.constant 0 : index
      %5 = vector.load %arg1[%c0_2, %4, %c0_3] : memref<1x1248x48xf32, #tpu.memory_space<vmem>>, vector<1x256x48xf32>
      %6 = vector.shape_cast %5 : vector<1x256x48xf32> to vector<256x48xf32>
      %c0_4 = arith.constant 0 : index
      %7 = arith.index_cast %3 : i32 to index
      %c0_5 = arith.constant 0 : index
      %8 = vector.load %arg2[%c0_4, %7, %c0_5] : memref<1x1209x48xf32, #tpu.memory_space<vmem>>, vector<1x256x48xf32>
      %9 = vector.shape_cast %8 : vector<1x256x48xf32> to vector<256x48xf32>
      %c39_i32 = arith.constant 39 : i32
      %10 = arith.addi %3, %c39_i32 : i32
      %c0_6 = arith.constant 0 : index
      %11 = arith.index_cast %10 : i32 to index
      %c0_7 = arith.constant 0 : index
      %12 = vector.load %arg1[%c0_6, %11, %c0_7] : memref<1x1248x48xf32, #tpu.memory_space<vmem>>, vector<1x256x48xf32>
      %13 = vector.shape_cast %12 : vector<1x256x48xf32> to vector<256x48xf32>
      %c0_8 = arith.constant 0 : index
      %c0_9 = arith.constant 0 : index
      %c0_10 = arith.constant 0 : index
      %14 = vector.load %arg3[%c0_8, %c0_9, %c0_10] : memref<3x48x24xf32, #tpu.memory_space<vmem>>, vector<1x48x24xf32>
      %15 = vector.shape_cast %14 : vector<1x48x24xf32> to vector<48x24xf32>
      %cst = arith.constant dense<0.000000e+00> : vector<256x24xf32>
      %16 = tpu.matmul %6, %15, %cst {dimension_numbers = #tpu.dot_dimension_numbers<[1], [0], [0], [1], [0, 0, 1, 1], [], []>} : vector<256x48xf32>, vector<48x24xf32>, vector<256x24xf32> -> vector<256x24xf32>
      %c1 = arith.constant 1 : index
      %c0_11 = arith.constant 0 : index
      %c0_12 = arith.constant 0 : index
      %17 = vector.load %arg3[%c1, %c0_11, %c0_12] : memref<3x48x24xf32, #tpu.memory_space<vmem>>, vector<1x48x24xf32>
      %18 = vector.shape_cast %17 : vector<1x48x24xf32> to vector<48x24xf32>
      %cst_13 = arith.constant dense<0.000000e+00> : vector<256x24xf32>
      %19 = tpu.matmul %9, %18, %cst_13 {dimension_numbers = #tpu.dot_dimension_numbers<[1], [0], [0], [1], [0, 0, 1, 1], [], []>} : vector<256x48xf32>, vector<48x24xf32>, vector<256x24xf32> -> vector<256x24xf32>
      %20 = arith.addf %16, %19 : vector<256x24xf32>
      %c2 = arith.constant 2 : index
      %c0_14 = arith.constant 0 : index
      %c0_15 = arith.constant 0 : index
      %21 = vector.load %arg3[%c2, %c0_14, %c0_15] : memref<3x48x24xf32, #tpu.memory_space<vmem>>, vector<1x48x24xf32>
      %22 = vector.shape_cast %21 : vector<1x48x24xf32> to vector<48x24xf32>
      %cst_16 = arith.constant dense<0.000000e+00> : vector<256x24xf32>
      %23 = tpu.matmul %13, %22, %cst_16 {dimension_numbers = #tpu.dot_dimension_numbers<[1], [0], [0], [1], [0, 0, 1, 1], [], []>} : vector<256x48xf32>, vector<48x24xf32>, vector<256x24xf32> -> vector<256x24xf32>
      %24 = arith.addf %20, %23 : vector<256x24xf32>
      %25 = vector.broadcast %0 : vector<1x24xf32> to vector<256x24xf32>
      %26 = arith.addf %24, %25 : vector<256x24xf32>
      %cst_17 = arith.constant 0.000000e+00 : f32
      %27 = vector.broadcast %cst_17 : f32 to vector<256x24xf32>
      %28 = arith.maximumf %26, %27 : vector<256x24xf32>
      %c0_18 = arith.constant 0 : index
      %29 = arith.index_cast %3 : i32 to index
      %c0_19 = arith.constant 0 : index
      %30 = vector.load %arg5[%c0_18, %29, %c0_19] : memref<1x1209x24xf32, #tpu.memory_space<vmem>>, vector<1x256x24xf32>
      %31 = vector.shape_cast %30 : vector<1x256x24xf32> to vector<256x24xf32>
      %32 = vector.shape_cast %28 : vector<256x24xf32> to vector<1x256x24xf32>
      tpu.vector_store %arg5[%c0_18, %29, %c0_19], %32 {strides = array<i32>} : memref<1x1209x24xf32, #tpu.memory_space<vmem>>, vector<1x256x24xf32>,
    }
    %c5_i32_1 = arith.constant 5 : i32
    return
  }
  func.func @transform_0(%arg0: i32) -> (i32, i32, i32) {
    %c0_i32 = arith.constant 0 : i32
    %c0_i32_0 = arith.constant 0 : i32
    %c0_i32_1 = arith.constant 0 : i32
    return %arg0, %c0_i32, %c0_i32_0 : i32, i32, i32
  }
  func.func @transform_1(%arg0: i32) -> (i32, i32, i32) {
    %c0_i32 = arith.constant 0 : i32
    %c0_i32_0 = arith.constant 0 : i32
    %c0_i32_1 = arith.constant 0 : i32
    return %arg0, %c0_i32, %c0_i32_0 : i32, i32, i32
  }
  func.func @transform_2(%arg0: i32) -> (i32, i32, i32) {
    %c0_i32 = arith.constant 0 : i32
    %c0_i32_0 = arith.constant 0 : i32
    %c0_i32_1 = arith.constant 0 : i32
    %c0_i32_2 = arith.constant 0 : i32
    return %c0_i32, %c0_i32_0, %c0_i32_1 : i32, i32, i32
  }
  func.func @transform_3(%arg0: i32) -> (i32, i32) {
    %c0_i32 = arith.constant 0 : i32
    %c0_i32_0 = arith.constant 0 : i32
    %c0_i32_1 = arith.constant 0 : i32
    return %c0_i32, %c0_i32_0 : i32, i32
  }
  func.func @transform_4(%arg0: i32) -> (i32, i32, i32) {
    %c0_i32 = arith.constant 0 : i32
    %c0_i32_0 = arith.constant 0 : i32
    %c0_i32_1 = arith.constant 0 : i32
    return %arg0, %c0_i32, %c0_i32_0 : i32, i32, i32
  }
}

module attributes {stable_mosaic.version = 11 : i64} {
  func.func @_conv3x3_s2_kernel(%arg0: i32, %arg1: memref<1x304x72xf32, #tpu.memory_space<vmem>>, %arg2: memref<1x285x72xf32, #tpu.memory_space<vmem>>, %arg3: memref<3x72x36xf32, #tpu.memory_space<vmem>>, %arg4: memref<1x36xf32, #tpu.memory_space<vmem>>, %arg5: memref<1x285x36xf32, #tpu.memory_space<vmem>>) attributes {dimension_semantics = [#tpu.dimension_semantics<parallel>], iteration_bounds = array<i64: 2>, scalar_prefetch = 0 : i64, scratch_operands = 0 : i64, tpu.core_type = #tpu.core_type<tc>, window_params = [{transform_indices = @transform_0, window_bounds = array<i64: 1, 304, 72>}, {transform_indices = @transform_1, window_bounds = array<i64: 1, 285, 72>}, {pipeline_mode = #tpu.pipeline_mode<synchronous>, transform_indices = @transform_2, window_bounds = array<i64: 3, 72, 36>}, {pipeline_mode = #tpu.pipeline_mode<synchronous>, transform_indices = @transform_3, window_bounds = array<i64: 1, 36>}, {transform_indices = @transform_4, window_bounds = array<i64: 1, 285, 36>}]} {
    %c0 = arith.constant 0 : index
    %c0_0 = arith.constant 0 : index
    %0 = vector.load %arg4[%c0, %c0_0] : memref<1x36xf32, #tpu.memory_space<vmem>>, vector<1x36xf32>
    %c0_i32 = arith.constant 0 : i32
    %c2_i32 = arith.constant 2 : i32
    %1 = arith.addi %c0_i32, %c2_i32 : i32
    %c1_i32 = arith.constant 1 : i32
    scf.for %arg6 = %c0_i32 to %1 step %c1_i32  : i32 {
      %c256_i32 = arith.constant 256 : i32
      %2 = arith.muli %arg6, %c256_i32 : i32
      %c29_i32 = arith.constant 29 : i32
      %3 = arith.minsi %2, %c29_i32 : i32
      %c0_2 = arith.constant 0 : index
      %4 = arith.index_cast %3 : i32 to index
      %c0_3 = arith.constant 0 : index
      %5 = vector.load %arg1[%c0_2, %4, %c0_3] : memref<1x304x72xf32, #tpu.memory_space<vmem>>, vector<1x256x72xf32>
      %6 = vector.shape_cast %5 : vector<1x256x72xf32> to vector<256x72xf32>
      %c0_4 = arith.constant 0 : index
      %7 = arith.index_cast %3 : i32 to index
      %c0_5 = arith.constant 0 : index
      %8 = vector.load %arg2[%c0_4, %7, %c0_5] : memref<1x285x72xf32, #tpu.memory_space<vmem>>, vector<1x256x72xf32>
      %9 = vector.shape_cast %8 : vector<1x256x72xf32> to vector<256x72xf32>
      %c19_i32 = arith.constant 19 : i32
      %10 = arith.addi %3, %c19_i32 : i32
      %c0_6 = arith.constant 0 : index
      %11 = arith.index_cast %10 : i32 to index
      %c0_7 = arith.constant 0 : index
      %12 = vector.load %arg1[%c0_6, %11, %c0_7] : memref<1x304x72xf32, #tpu.memory_space<vmem>>, vector<1x256x72xf32>
      %13 = vector.shape_cast %12 : vector<1x256x72xf32> to vector<256x72xf32>
      %c0_8 = arith.constant 0 : index
      %c0_9 = arith.constant 0 : index
      %c0_10 = arith.constant 0 : index
      %14 = vector.load %arg3[%c0_8, %c0_9, %c0_10] : memref<3x72x36xf32, #tpu.memory_space<vmem>>, vector<1x72x36xf32>
      %15 = vector.shape_cast %14 : vector<1x72x36xf32> to vector<72x36xf32>
      %cst = arith.constant dense<0.000000e+00> : vector<256x36xf32>
      %16 = tpu.matmul %6, %15, %cst {dimension_numbers = #tpu.dot_dimension_numbers<[1], [0], [0], [1], [0, 0, 1, 1], [], []>} : vector<256x72xf32>, vector<72x36xf32>, vector<256x36xf32> -> vector<256x36xf32>
      %c1 = arith.constant 1 : index
      %c0_11 = arith.constant 0 : index
      %c0_12 = arith.constant 0 : index
      %17 = vector.load %arg3[%c1, %c0_11, %c0_12] : memref<3x72x36xf32, #tpu.memory_space<vmem>>, vector<1x72x36xf32>
      %18 = vector.shape_cast %17 : vector<1x72x36xf32> to vector<72x36xf32>
      %cst_13 = arith.constant dense<0.000000e+00> : vector<256x36xf32>
      %19 = tpu.matmul %9, %18, %cst_13 {dimension_numbers = #tpu.dot_dimension_numbers<[1], [0], [0], [1], [0, 0, 1, 1], [], []>} : vector<256x72xf32>, vector<72x36xf32>, vector<256x36xf32> -> vector<256x36xf32>
      %20 = arith.addf %16, %19 : vector<256x36xf32>
      %c2 = arith.constant 2 : index
      %c0_14 = arith.constant 0 : index
      %c0_15 = arith.constant 0 : index
      %21 = vector.load %arg3[%c2, %c0_14, %c0_15] : memref<3x72x36xf32, #tpu.memory_space<vmem>>, vector<1x72x36xf32>
      %22 = vector.shape_cast %21 : vector<1x72x36xf32> to vector<72x36xf32>
      %cst_16 = arith.constant dense<0.000000e+00> : vector<256x36xf32>
      %23 = tpu.matmul %13, %22, %cst_16 {dimension_numbers = #tpu.dot_dimension_numbers<[1], [0], [0], [1], [0, 0, 1, 1], [], []>} : vector<256x72xf32>, vector<72x36xf32>, vector<256x36xf32> -> vector<256x36xf32>
      %24 = arith.addf %20, %23 : vector<256x36xf32>
      %25 = vector.broadcast %0 : vector<1x36xf32> to vector<256x36xf32>
      %26 = arith.addf %24, %25 : vector<256x36xf32>
      %cst_17 = arith.constant 0.000000e+00 : f32
      %27 = vector.broadcast %cst_17 : f32 to vector<256x36xf32>
      %28 = arith.maximumf %26, %27 : vector<256x36xf32>
      %c0_18 = arith.constant 0 : index
      %29 = arith.index_cast %3 : i32 to index
      %c0_19 = arith.constant 0 : index
      %30 = vector.load %arg5[%c0_18, %29, %c0_19] : memref<1x285x36xf32, #tpu.memory_space<vmem>>, vector<1x256x36xf32>
      %31 = vector.shape_cast %30 : vector<1x256x36xf32> to vector<256x36xf32>
      %32 = vector.shape_cast %28 : vector<256x36xf32> to vector<1x256x36xf32>
      tpu.vector_store %arg5[%c0_18, %29, %c0_19], %32 {strides = array<i32>} : memref<1x285x36xf32, #tpu.memory_space<vmem>>, vector<1x256x36xf32>,
    }
    %c2_i32_1 = arith.constant 2 : i32
    return
  }
  func.func @transform_0(%arg0: i32) -> (i32, i32, i32) {
    %c0_i32 = arith.constant 0 : i32
    %c0_i32_0 = arith.constant 0 : i32
    %c0_i32_1 = arith.constant 0 : i32
    return %arg0, %c0_i32, %c0_i32_0 : i32, i32, i32
  }
  func.func @transform_1(%arg0: i32) -> (i32, i32, i32) {
    %c0_i32 = arith.constant 0 : i32
    %c0_i32_0 = arith.constant 0 : i32
    %c0_i32_1 = arith.constant 0 : i32
    return %arg0, %c0_i32, %c0_i32_0 : i32, i32, i32
  }
  func.func @transform_2(%arg0: i32) -> (i32, i32, i32) {
    %c0_i32 = arith.constant 0 : i32
    %c0_i32_0 = arith.constant 0 : i32
    %c0_i32_1 = arith.constant 0 : i32
    %c0_i32_2 = arith.constant 0 : i32
    return %c0_i32, %c0_i32_0, %c0_i32_1 : i32, i32, i32
  }
  func.func @transform_3(%arg0: i32) -> (i32, i32) {
    %c0_i32 = arith.constant 0 : i32
    %c0_i32_0 = arith.constant 0 : i32
    %c0_i32_1 = arith.constant 0 : i32
    return %c0_i32, %c0_i32_0 : i32, i32
  }
  func.func @transform_4(%arg0: i32) -> (i32, i32, i32) {
    %c0_i32 = arith.constant 0 : i32
    %c0_i32_0 = arith.constant 0 : i32
    %c0_i32_1 = arith.constant 0 : i32
    return %arg0, %c0_i32, %c0_i32_0 : i32, i32, i32
  }
}

</mosaic_0001>

<bundles_post_ra>
// kernel: dlean2net_forward.4
= control target key start
LH: loop header
LB: loop body
LE: loop exit
PB: predicated region body
PF: predicated region fallthrough
CT: control target
= control target key end

     0   :  { %8 = vsyncpa [#allocation3], 0  ;;  %s5628_s0 = inlined_call_operand.hbm [shape: f32[40960,9], index: 0, kind: input, shape index: {}]   ;;  %s5629_s1 = inlined_call_operand.vmem [shape: f32[9,16], index: 1, kind: input, shape index: {}]   ;;  %s5630_s2 = inlined_call_operand.vmem [shape: f32[1,16], index: 2, kind: input, shape index: {}]   ;;  %s5631_s3 = inlined_call_operand.vmem [shape: f32[40960,16], index: 3, kind: output, shape index: {}]  }
   0x1   :  { %10 = vsyncpa [#allocation3 + $0x1], 0  ;;  %s4216_s12 = smov 0   ;;  %s4218_s13 = smov 0  }
   0x2   :  { %s4220_s14 = smov 0   ;;  %s4222_s15 = smov 0  }
   0x3 LB: > { %s3156_s16 = sadd.s32 4294967295, %s4190_s15   ;;  %s4236_s17 = sadd.s32 1, %s4190_s15   ;;  %s4190_s15 = sphi %s4222_s15, %s5638_s15   ;;  %s4186_s14 = sphi %s4220_s14, %s5637_s14   ;;  %s4182_s13 = sphi %s4218_s13, %s5636_s13   ;;  %s4178_s12 = sphi %s4216_s12, %s5635_s12  }
   0x4   : > { %s20_s18 = ssub.s32 %s4190_s15, %s4236_s17  ;;  %s23_s19 = sadd.s32 1, %s4186_s14 }
   0x5   : > { %p21_p0 = scmp.eq.s32.totalorder %s20_s18, 0  ;;  %p30_p1 = scmp.ne.s32.totalorder %s4186_s14, %s4182_s13 }
   0x6   : > { %p31_p2 = scmp.eq.s32.totalorder %s4190_s15, 0  ;;  %p36_p3 = scmp.ne.s32.totalorder %s4182_s13, %s4178_s12 }
   0x7   : > { %s4246_s20 = scalar_select %p21_p0, %s4186_s14, %s23_s19  }
   0x8   : > { %p32_p4 = por %p31_p2, %p30_p1  ;;  %p37_p5 = scmp.eq.s32.totalorder %s3156_s16, 0 }
   0x9   : > { %p4088_p6 = scmp.lt.s32.totalorder %s4190_s15, 20  ;;  %s134_s22 = sand.u32 1, %s4186_s14  }
   0xa   : > { %p4251_p7 = por %p37_p5, %p36_p3  ;;  %s3160_s23 = sshll.u32 %s134_s22, 11 }
   0xb   : > { %s3427_s24 = sshll.u32 %s4190_s15, 15  ;;  %s138_s28 = scalar_lea.vmem [#allocation2], %s3160_s23 }
   0xc   : > { %s4260_s27 = scalar_lea.hbm %s5628_s0, %s3427_s24  ;;  %s145_s29 = sshll.u32 %s138_s28, 4  ;;  %s4262_s29 = int_to_ptr.vmem [resolvable:$true] %s145_s29 }
   0xd   : > { %p4264_p8 = pnand %p4088_p6, %p32_p4  ;;  %s4269_s4 = scalar_lea.sflag [#allocation3], %s134_s22 }
   0xe   : > { %s4126_s5 = scalar_lea.hbm %s4260_s27, 32768  ;;  %s4131_s8 = scalar_lea.hbm %s5628_s0, 655360 }
   0xf   : > { %p4127_p10 = scmp.ne.s32.totalorder %s4260_s27, %s4126_s5  ;;  %p4128_p11 = pneg %p4264_p8 }
  0x10   : > { %p4132_p0 = scmp.lt.u32.totalorder %s4260_s27, %s5628_s0  ;;  %p4133_p1 = scmp.lt.u32.totalorder %s4131_s8, %s4126_s5 }
  0x11   : > { %p4129_p12 = pnand %p4128_p11, %p4127_p10  ;;  %p4135_p3 = scmp.lt.u32.totalorder %s4126_s5, %s4260_s27 }
  0x12   : > { %p4134_p2 = por %p4133_p1, %p4132_p0 }
  0x13   : > { %p4130_p13 = pneg %p4129_p12 }
  0x14   : > { %p4136_p4 = por %p4135_p3, %p4134_p2 }
  0x16   : > { %p4137_p5 = pnand %p4136_p4, %p4130_p13 }
  0x18   : > { %4140 = shalt.err (!%p4137_p5)
}
  0x19   : > { %s4141_s11 = scalar_lea.vmem %s4262_s29, 32768  ;;  %s4192_s12 = smov [#allocation2]  }
  0x1a   : > { %p4142_p6 = scmp.ne.s32.totalorder %s4262_s29, %s4141_s11  ;;  %s4146_s18 = sshll.u32 %s4192_s12, 4  ;;  %s4147_s18 = int_to_ptr.vmem [resolvable:$false] %s4146_s18 }
  0x1b   : > { %s4148_s19 = scalar_lea.vmem %s4147_s18, 65536  ;;  %p4149_p9 = scmp.lt.s32.totalorder %s4262_s29, %s4147_s18 }
  0x1c   : > { %p4144_p10 = pnand %p4142_p6, %p4128_p11  ;;  %p4150_p0 = scmp.lt.s32.totalorder %s4148_s19, %s4141_s11 }
  0x1e   : > { %p4145_p12 = pneg %p4144_p10  ;;  %p4151_p1 = por %p4150_p0, %p4149_p9 }
  0x20   : > { %p4152_p2 = pnand %p4151_p1, %p4145_p12 }
  0x22   : > { %4155 = shalt.err (!%p4152_p2)
}
  0x23   : > { %s4193_s22 = smov 128   ;;  %s4194_s23 = smov 8  }
  0x24   : > { %4087 = dma.hbm_to_vmem [thread:$0]  (!%p4264_p8), %s4260_s27, 32768, %s4262_s29, %s4269_s4, %s4193_s22, %s4193_s22, %s4194_s23  }
  0x25   : > { %p153_p11 = scmp.lt.s32.totalorder %s4190_s15, 21  ;;  %p5634_p13 = scmp.ge.s32.totalorder %s4190_s15, 1 }
  0x27   : > { %p154_p3 = pnand %p5634_p13, %p153_p11 }
  0x28   : > { %s159_s24 = sand.u32 (!%p154_p3), 1, %s4182_s13  }
  0x29   : > { %157 = sbr.rel (%p154_p3) target bundleno = 527 (0x20f), region = 32  ;;  %s3164_s25 = sshll.u32 (!%p154_p3), %s159_s24, 11 }
  0x2a   : > { %s160_s26 = scalar_lea.sflag (!%p154_p3), [#allocation3], %s159_s24  ;;  %s4301_s28 = scalar_lea.vmem (!%p154_p3), [#allocation2], %s3164_s25 }
  0x30   : > { %4173 = dma.done.wait (%p4251_p7), %s160_s26, 32768  }
  0x31   : > { %4175 = vsyncadd (%p4251_p7), %s160_s26, 4294934528  ;;  %vm1227_vm0 = vcmask 1040384   ;;  %vm458_vm1 = vcmask 72704   ;;  %vm4195_vm2 = vmmov 1   ;;  %v449_v0 = vld [vmem:[%s5629_s1] sm:$0xff]  ;;  %v194_v5 = vld [vmem:[%s4301_s28 + $0x8] sm:$0xff] }
  0x32   : > { %vm4075_vm3 = vmpackc.low %vm1227_vm0, %vm4195_vm2  ;;  %v450_v1 = vld [vmem:[%s5629_s1 + $0x8] sm:$0x1]  ;;  %v193_v2 = vld [vmem:[%s4301_s28] sm:$0xff]  ;;  %s3165_s21 = sshll.u32 %s3156_s16, 8  ;;  %vm2832_vm4 = vcmask 130048  }
  0x33   : > { %v4074_v3 = vpack.c.bf16 %v450_v1, %v449_v0  ;;  %3690 = vmatprep.mubr.msk.f32.mxu0 %vm458_vm1, %v193_v2  ;;  %v321_v4 = vld [vmem:[%s4301_s28 + $0x400] sm:$0xff]  ;;  %v322_v6 = vld [vmem:[%s4301_s28 + $0x408] sm:$0xff]  ;;  %v195_v7 = vld [vmem:[%s4301_s28 + $0x10] sm:$0xff]  ;;  %p188_p7 = scmp.lt.s32.totalorder %s3165_s21, 5119 }
  0x34   : > { %3882 = vmatprep.mubr.msk.f32.mxu1 %vm458_vm1, %v321_v4  ;;  %v323_v8 = vld [vmem:[%s4301_s28 + $0x410] sm:$0xff]  ;;  %v196_v9 = vld [vmem:[%s4301_s28 + $0x18] sm:$0xff]  ;;  %v197_v11 = vld [vmem:[%s4301_s28 + $0x20] sm:$0xff] }
  0x35   : > { %4076 = vmatprep.subr.msk.bf16.mxu0 %vm4075_vm3, %v4074_v3  ;;  %4080 = vmatprep.subr.msk.bf16.mxu1 %vm4075_vm3, %v4074_v3  ;;  %v324_v10 = vld [vmem:[%s4301_s28 + $0x418] sm:$0xff]  ;;  %v325_v12 = vld [vmem:[%s4301_s28 + $0x420] sm:$0xff]  ;;  %v198_v13 = vld [vmem:[%s4301_s28 + $0x28] sm:$0xff]  ;;  %s5640_s21 = smov (!%p188_p7, %s3165_s21), 5119 }
  0x36   : > { %4079 = vmatpush3.bf16.msk.msra.mxu0 %vm4075_vm3, %v4074_v3  ;;  %4081 = vmatpush3.bf16.msk.msra.mxu1 %vm4075_vm3, %v4074_v3  ;;  %v326_v14 = vld [vmem:[%s4301_s28 + $0x428] sm:$0xff]  ;;  %v199_v15 = vld [vmem:[%s4301_s28 + $0x30] sm:$0xff]  ;;  %v200_v17 = vld [vmem:[%s4301_s28 + $0x38] sm:$0xff]  ;;  %s3166_s5 = sshll.u32 %s5640_s21, 3 }
  0x37   : > { %v327_v16 = vld [vmem:[%s4301_s28 + $0x430] sm:$0xff]  ;;  %v328_v18 = vld [vmem:[%s4301_s28 + $0x438] sm:$0xff]  ;;  %v201_v19 = vld [vmem:[%s4301_s28 + $0x40] sm:$0xff]  ;;  %s4759_s8 = scalar_lea.vmem %s5631_s3, %s3166_s5 }
  0x38   : > { %v329_v20 = vld [vmem:[%s4301_s28 + $0x440] sm:$0xff]  ;;  %v202_v21 = vld [vmem:[%s4301_s28 + $0x48] sm:$0xff]  ;;  %v203_v23 = vld [vmem:[%s4301_s28 + $0x50] sm:$0xff] }
  0x39   : > { %3691 = vmatmul.mubr.msk.f32.vlgmr.msra.gmra.mrb[0].mxu0 %vm458_vm1, %v194_v5  ;;  %3883 = vmatmul.mubr.msk.f32.vlgmr.msra.gmra.mrb[0].mxu1 %vm458_vm1, %v322_v6  ;;  %v330_v22 = vld [vmem:[%s4301_s28 + $0x448] sm:$0xff]  ;;  %v331_v24 = vld [vmem:[%s4301_s28 + $0x450] sm:$0xff]  ;;  %v204_v25 = vld [vmem:[%s4301_s28 + $0x58] sm:$0xff] }
  0x3a   : > { %3693 = vmatprep.mubr.msk.f32.mxu0 %vm458_vm1, %v195_v7  ;;  %3885 = vmatprep.mubr.msk.f32.mxu1 %vm458_vm1, %v323_v8  ;;  %v332_v26 = vld [vmem:[%s4301_s28 + $0x458] sm:$0xff]  ;;  %v205_v27 = vld [vmem:[%s4301_s28 + $0x60] sm:$0xff]  ;;  %v206_v29 = vld [vmem:[%s4301_s28 + $0x68] sm:$0xff] }
  0x3b   : > { %v333_v28 = vld [vmem:[%s4301_s28 + $0x460] sm:$0xff]  ;;  %v334_v30 = vld [vmem:[%s4301_s28 + $0x468] sm:$0xff]  ;;  %v207_v31 = vld [vmem:[%s4301_s28 + $0x70] sm:$0xff] }
  0x3c   : > { %v335_v32 = vld [vmem:[%s4301_s28 + $0x470] sm:$0xff]  ;;  %v208_v33 = vld [vmem:[%s4301_s28 + $0x78] sm:$0xff]  ;;  %v209_v35 = vld [vmem:[%s4301_s28 + $0x80] sm:$0xff] }
  0x3d   : > { %3694 = vmatmul.mubr.msk.f32.gmra.mrb[2].mxu0 %vm458_vm1, %v196_v9  ;;  %3886 = vmatmul.mubr.msk.f32.gmra.mrb[2].mxu1 %vm458_vm1, %v324_v10  ;;  %v336_v34 = vld [vmem:[%s4301_s28 + $0x478] sm:$0xff]  ;;  %v337_v36 = vld [vmem:[%s4301_s28 + $0x480] sm:$0xff]  ;;  %v210_v37 = vld [vmem:[%s4301_s28 + $0x88] sm:$0xff] }
  0x3e   : > { %3696 = vmatprep.mubr.msk.f32.mxu0 %vm458_vm1, %v197_v11  ;;  %3888 = vmatprep.mubr.msk.f32.mxu1 %vm458_vm1, %v325_v12  ;;  %v338_v38 = vld [vmem:[%s4301_s28 + $0x488] sm:$0xff]  ;;  %v211_v39 = vld [vmem:[%s4301_s28 + $0x90] sm:$0xff]  ;;  %v212_v41 = vld [vmem:[%s4301_s28 + $0x98] sm:$0xff] }
  0x3f   : > { %v339_v40 = vld [vmem:[%s4301_s28 + $0x490] sm:$0xff]  ;;  %v340_v42 = vld [vmem:[%s4301_s28 + $0x498] sm:$0xff]  ;;  %v213_v43 = vld [vmem:[%s4301_s28 + $0xa0] sm:$0xff] }
  0x40   : > { %v341_v44 = vld [vmem:[%s4301_s28 + $0x4a0] sm:$0xff]  ;;  %v214_v45 = vld [vmem:[%s4301_s28 + $0xa8] sm:$0xff]  ;;  %v215_v47 = vld [vmem:[%s4301_s28 + $0xb0] sm:$0xff] }
  0x41   : > { %3697 = vmatmul.mubr.msk.f32.gmra.mrb[4].mxu0 %vm458_vm1, %v198_v13  ;;  %3889 = vmatmul.mubr.msk.f32.gmra.mrb[4].mxu1 %vm458_vm1, %v326_v14  ;;  %v342_v46 = vld [vmem:[%s4301_s28 + $0x4a8] sm:$0xff]  ;;  %v343_v48 = vld [vmem:[%s4301_s28 + $0x4b0] sm:$0xff]  ;;  %v216_v49 = vld [vmem:[%s4301_s28 + $0xb8] sm:$0xff] }
  0x42   : > { %3699 = vmatprep.mubr.msk.f32.mxu0 %vm458_vm1, %v199_v15  ;;  %3891 = vmatprep.mubr.msk.f32.mxu1 %vm458_vm1, %v327_v16  ;;  %v344_v50 = vld [vmem:[%s4301_s28 + $0x4b8] sm:$0xff]  ;;  %v217_v51 = vld [vmem:[%s4301_s28 + $0xc0] sm:$0xff]  ;;  %v218_v53 = vld [vmem:[%s4301_s28 + $0xc8] sm:$0xff] }
  0x43   : > { %v345_v52 = vld [vmem:[%s4301_s28 + $0x4c0] sm:$0xff]  ;;  %v346_v54 = vld [vmem:[%s4301_s28 + $0x4c8] sm:$0xff]  ;;  %v219_v55 = vld [vmem:[%s4301_s28 + $0xd0] sm:$0xff] }
  0x44   : > { %v347_v56 = vld [vmem:[%s4301_s28 + $0x4d0] sm:$0xff]  ;;  %v220_v57 = vld [vmem:[%s4301_s28 + $0xd8] sm:$0xff]  ;;  %v221_v59 = vld [vmem:[%s4301_s28 + $0xe0] sm:$0xff] }
  0x45   : > { %3700 = vmatmul.mubr.msk.f32.gmra.mrb[6].mxu0 %vm458_vm1, %v200_v17  ;;  %3892 = vmatmul.mubr.msk.f32.gmra.mrb[6].mxu1 %vm458_vm1, %v328_v18  ;;  %v348_v58 = vld [vmem:[%s4301_s28 + $0x4d8] sm:$0xff]  ;;  %v349_v60 = vld [vmem:[%s4301_s28 + $0x4e0] sm:$0xff]  ;;  %v222_v61 = vld [vmem:[%s4301_s28 + $0xe8] sm:$0xff] }
  0x46   : > { %3702 = vmatprep.mubr.msk.f32.mxu0 %vm458_vm1, %v201_v19  ;;  %3894 = vmatprep.mubr.msk.f32.mxu1 %vm458_vm1, %v329_v20  ;;  %v350_v62 = vld [vmem:[%s4301_s28 + $0x4e8] sm:$0xff]  ;;  %v223_v63 = vld [vmem:[%s4301_s28 + $0xf0] sm:$0xff]  ;;  %v224_v1 = vld [vmem:[%s4301_s28 + $0xf8] sm:$0xff] }
  0x47   : > { %v351_v0 = vld [vmem:[%s4301_s28 + $0x4f0] sm:$0xff]  ;;  %v352_v2 = vld [vmem:[%s4301_s28 + $0x4f8] sm:$0xff]  ;;  %v225_v3 = vld [vmem:[%s4301_s28 + $0x100] sm:$0xff] }
  0x48   : > { %v353_v4 = vld [vmem:[%s4301_s28 + $0x500] sm:$0xff]  ;;  %v226_v5 = vld [vmem:[%s4301_s28 + $0x108] sm:$0xff]  ;;  %v227_v7 = vld [vmem:[%s4301_s28 + $0x110] sm:$0xff] }
  0x49   : > { %3703 = vmatmul.mubr.msk.f32.gmra.mrb[8].mxu0 %vm458_vm1, %v202_v21  ;;  %3895 = vmatmul.mubr.msk.f32.gmra.mrb[8].mxu1 %vm458_vm1, %v330_v22  ;;  %v354_v6 = vld [vmem:[%s4301_s28 + $0x508] sm:$0xff]  ;;  %v355_v8 = vld [vmem:[%s4301_s28 + $0x510] sm:$0xff]  ;;  %v228_v9 = vld [vmem:[%s4301_s28 + $0x118] sm:$0xff] }
  0x4a   : > { %3705 = vmatprep.mubr.msk.f32.mxu0 %vm458_vm1, %v203_v23  ;;  %3897 = vmatprep.mubr.msk.f32.mxu1 %vm458_vm1, %v331_v24  ;;  %v356_v10 = vld [vmem:[%s4301_s28 + $0x518] sm:$0xff]  ;;  %v229_v11 = vld [vmem:[%s4301_s28 + $0x120] sm:$0xff]  ;;  %v230_v13 = vld [vmem:[%s4301_s28 + $0x128] sm:$0xff] }
  0x4b   : > { %v357_v12 = vld [vmem:[%s4301_s28 + $0x520] sm:$0xff]  ;;  %v358_v14 = vld [vmem:[%s4301_s28 + $0x528] sm:$0xff]  ;;  %v231_v15 = vld [vmem:[%s4301_s28 + $0x130] sm:$0xff] }
  0x4c   : > { %v359_v16 = vld [vmem:[%s4301_s28 + $0x530] sm:$0xff]  ;;  %v232_v17 = vld [vmem:[%s4301_s28 + $0x138] sm:$0xff]  ;;  %v233_v19 = vld [vmem:[%s4301_s28 + $0x140] sm:$0xff] }
  0x4d   : > { %3706 = vmatmul.mubr.msk.f32.gmra.mrb[10].mxu0 %vm458_vm1, %v204_v25  ;;  %3898 = vmatmul.mubr.msk.f32.gmra.mrb[10].mxu1 %vm458_vm1, %v332_v26  ;;  %v360_v18 = vld [vmem:[%s4301_s28 + $0x538] sm:$0xff]  ;;  %v361_v20 = vld [vmem:[%s4301_s28 + $0x540] sm:$0xff]  ;;  %v234_v21 = vld [vmem:[%s4301_s28 + $0x148] sm:$0xff] }
  0x4e   : > { %3708 = vmatprep.mubr.msk.f32.mxu0 %vm458_vm1, %v205_v27  ;;  %3900 = vmatprep.mubr.msk.f32.mxu1 %vm458_vm1, %v333_v28  ;;  %v362_v22 = vld [vmem:[%s4301_s28 + $0x548] sm:$0xff]  ;;  %v235_v23 = vld [vmem:[%s4301_s28 + $0x150] sm:$0xff]  ;;  %v236_v25 = vld [vmem:[%s4301_s28 + $0x158] sm:$0xff] }
  0x4f   : > { %v363_v24 = vld [vmem:[%s4301_s28 + $0x550] sm:$0xff]  ;;  %v364_v26 = vld [vmem:[%s4301_s28 + $0x558] sm:$0xff]  ;;  %v237_v27 = vld [vmem:[%s4301_s28 + $0x160] sm:$0xff] }
  0x50   : > { %v365_v28 = vld [vmem:[%s4301_s28 + $0x560] sm:$0xff] }
  0x51   : > { %3709 = vmatmul.mubr.msk.f32.gmra.mrb[12].mxu0 %vm458_vm1, %v206_v29  ;;  %3901 = vmatmul.mubr.msk.f32.gmra.mrb[12].mxu1 %vm458_vm1, %v334_v30  ;;  %v238_v29 = vld [vmem:[%s4301_s28 + $0x168] sm:$0xff] }
  0x52   : > { %3711 = vmatprep.mubr.msk.f32.mxu0 %vm458_vm1, %v207_v31  ;;  %3903 = vmatprep.mubr.msk.f32.mxu1 %vm458_vm1, %v335_v32  ;;  %v366_v30 = vld [vmem:[%s4301_s28 + $0x568] sm:$0xff]  ;;  %v239_v31 = vld [vmem:[%s4301_s28 + $0x170] sm:$0xff] }
  0x53   : > { %v367_v32 = vld [vmem:[%s4301_s28 + $0x570] sm:$0xff] }
  0x55   : > { %3712 = vmatmul.mubr.msk.f32.gmra.mrb[14].mxu0 %vm458_vm1, %v208_v33  ;;  %3904 = vmatmul.mubr.msk.f32.gmra.mrb[14].mxu1 %vm458_vm1, %v336_v34  ;;  %v240_v33 = vld [vmem:[%s4301_s28 + $0x178] sm:$0xff] }
  0x56   : > { %3714 = vmatprep.mubr.msk.f32.mxu0 %vm458_vm1, %v209_v35  ;;  %3906 = vmatprep.mubr.msk.f32.mxu1 %vm458_vm1, %v337_v36  ;;  %v368_v34 = vld [vmem:[%s4301_s28 + $0x578] sm:$0xff]  ;;  %v241_v35 = vld [vmem:[%s4301_s28 + $0x180] sm:$0xff] }
  0x57   : > { %v369_v36 = vld [vmem:[%s4301_s28 + $0x580] sm:$0xff] }
  0x59   : > { %3715 = vmatmul.mubr.msk.f32.gmra.mrb[16].mxu0 %vm458_vm1, %v210_v37  ;;  %3907 = vmatmul.mubr.msk.f32.gmra.mrb[16].mxu1 %vm458_vm1, %v338_v38  ;;  %v242_v37 = vld [vmem:[%s4301_s28 + $0x188] sm:$0xff] }
  0x5a   : > { %3717 = vmatprep.mubr.msk.f32.mxu0 %vm458_vm1, %v211_v39  ;;  %3909 = vmatprep.mubr.msk.f32.mxu1 %vm458_vm1, %v339_v40  ;;  %v370_v38 = vld [vmem:[%s4301_s28 + $0x588] sm:$0xff]  ;;  %v243_v39 = vld [vmem:[%s4301_s28 + $0x190] sm:$0xff] }
  0x5b   : > { %v371_v40 = vld [vmem:[%s4301_s28 + $0x590] sm:$0xff] }
  0x5d   : > { %3718 = vmatmul.mubr.msk.f32.gmra.mrb[18].mxu0 %vm458_vm1, %v212_v41  ;;  %3910 = vmatmul.mubr.msk.f32.gmra.mrb[18].mxu1 %vm458_vm1, %v340_v42  ;;  %v244_v41 = vld [vmem:[%s4301_s28 + $0x198] sm:$0xff] }
  0x5e   : > { %3720 = vmatprep.mubr.msk.f32.mxu0 %vm458_vm1, %v213_v43  ;;  %3912 = vmatprep.mubr.msk.f32.mxu1 %vm458_vm1, %v341_v44  ;;  %v372_v42 = vld [vmem:[%s4301_s28 + $0x598] sm:$0xff]  ;;  %v245_v43 = vld [vmem:[%s4301_s28 + $0x1a0] sm:$0xff] }
  0x5f   : > { %v373_v44 = vld [vmem:[%s4301_s28 + $0x5a0] sm:$0xff] }
  0x61   : > { %3721 = vmatmul.mubr.msk.f32.gmra.mrb[20].mxu0 %vm458_vm1, %v214_v45  ;;  %3913 = vmatmul.mubr.msk.f32.gmra.mrb[20].mxu1 %vm458_vm1, %v342_v46  ;;  %v246_v45 = vld [vmem:[%s4301_s28 + $0x1a8] sm:$0xff] }
  0x62   : > { %3723 = vmatprep.mubr.msk.f32.mxu0 %vm458_vm1, %v215_v47  ;;  %3915 = vmatprep.mubr.msk.f32.mxu1 %vm458_vm1, %v343_v48  ;;  %v374_v46 = vld [vmem:[%s4301_s28 + $0x5a8] sm:$0xff]  ;;  %v247_v47 = vld [vmem:[%s4301_s28 + $0x1b0] sm:$0xff] }
  0x63   : > { %v375_v48 = vld [vmem:[%s4301_s28 + $0x5b0] sm:$0xff] }
  0x65   : > { %3724 = vmatmul.mubr.msk.f32.gmra.mrb[22].mxu0 %vm458_vm1, %v216_v49  ;;  %3916 = vmatmul.mubr.msk.f32.gmra.mrb[22].mxu1 %vm458_vm1, %v344_v50  ;;  %v248_v49 = vld [vmem:[%s4301_s28 + $0x1b8] sm:$0xff] }
  0x66   : > { %3726 = vmatprep.mubr.msk.f32.mxu0 %vm458_vm1, %v217_v51  ;;  %3918 = vmatprep.mubr.msk.f32.mxu1 %vm458_vm1, %v345_v52  ;;  %v376_v50 = vld [vmem:[%s4301_s28 + $0x5b8] sm:$0xff]  ;;  %v249_v51 = vld [vmem:[%s4301_s28 + $0x1c0] sm:$0xff] }
  0x67   : > { %v377_v52 = vld [vmem:[%s4301_s28 + $0x5c0] sm:$0xff] }
  0x69   : > { %3727 = vmatmul.mubr.msk.f32.gmra.mrb[24].mxu0 %vm458_vm1, %v218_v53  ;;  %3919 = vmatmul.mubr.msk.f32.gmra.mrb[24].mxu1 %vm458_vm1, %v346_v54  ;;  %v250_v53 = vld [vmem:[%s4301_s28 + $0x1c8] sm:$0xff] }
  0x6a   : > { %3729 = vmatprep.mubr.msk.f32.mxu0 %vm458_vm1, %v219_v55  ;;  %3921 = vmatprep.mubr.msk.f32.mxu1 %vm458_vm1, %v347_v56  ;;  %v378_v54 = vld [vmem:[%s4301_s28 + $0x5c8] sm:$0xff]  ;;  %v251_v55 = vld [vmem:[%s4301_s28 + $0x1d0] sm:$0xff] }
  0x6b   : > { %v379_v56 = vld [vmem:[%s4301_s28 + $0x5d0] sm:$0xff] }
  0x6d   : > { %3730 = vmatmul.mubr.msk.f32.gmra.mrb[26].mxu0 %vm458_vm1, %v220_v57  ;;  %3922 = vmatmul.mubr.msk.f32.gmra.mrb[26].mxu1 %vm458_vm1, %v348_v58  ;;  %v252_v57 = vld [vmem:[%s4301_s28 + $0x1d8] sm:$0xff] }
  0x6e   : > { %3732 = vmatprep.mubr.msk.f32.mxu0 %vm458_vm1, %v221_v59  ;;  %3924 = vmatprep.mubr.msk.f32.mxu1 %vm458_vm1, %v349_v60  ;;  %v380_v58 = vld [vmem:[%s4301_s28 + $0x5d8] sm:$0xff]  ;;  %v253_v59 = vld [vmem:[%s4301_s28 + $0x1e0] sm:$0xff] }
  0x6f   : > { %v381_v60 = vld [vmem:[%s4301_s28 + $0x5e0] sm:$0xff] }
  0x71   : > { %3733 = vmatmul.mubr.msk.f32.gmra.mrb[28].mxu0 %vm458_vm1, %v222_v61  ;;  %3925 = vmatmul.mubr.msk.f32.gmra.mrb[28].mxu1 %vm458_vm1, %v350_v62  ;;  %v254_v61 = vld [vmem:[%s4301_s28 + $0x1e8] sm:$0xff] }
  0x72   : > { %3735 = vmatprep.mubr.msk.f32.mxu0 %vm458_vm1, %v223_v63  ;;  %3927 = vmatprep.mubr.msk.f32.mxu1 %vm458_vm1, %v351_v0  ;;  %v382_v62 = vld [vmem:[%s4301_s28 + $0x5e8] sm:$0xff]  ;;  %v255_v63 = vld [vmem:[%s4301_s28 + $0x1f0] sm:$0xff] }
  0x73   : > { %v383_v0 = vld [vmem:[%s4301_s28 + $0x5f0] sm:$0xff] }
  0x75   : > { %3736 = vmatmul.mubr.msk.f32.gmra.mrb[30].mxu0 %vm458_vm1, %v224_v1  ;;  %3928 = vmatmul.mubr.msk.f32.gmra.mrb[30].mxu1 %vm458_vm1, %v352_v2  ;;  %v256_v1 = vld [vmem:[%s4301_s28 + $0x1f8] sm:$0xff] }
  0x76   : > { %3738 = vmatprep.mubr.msk.f32.mxu0 %vm458_vm1, %v225_v3  ;;  %3930 = vmatprep.mubr.msk.f32.mxu1 %vm458_vm1, %v353_v4  ;;  %v384_v2 = vld [vmem:[%s4301_s28 + $0x5f8] sm:$0xff]  ;;  %v257_v3 = vld [vmem:[%s4301_s28 + $0x200] sm:$0xff] }
  0x77   : > { %v385_v4 = vld [vmem:[%s4301_s28 + $0x600] sm:$0xff] }
  0x79   : > { %3739 = vmatmul.mubr.msk.f32.gmra.mrb[32].mxu0 %vm458_vm1, %v226_v5  ;;  %3931 = vmatmul.mubr.msk.f32.gmra.mrb[32].mxu1 %vm458_vm1, %v354_v6  ;;  %v258_v5 = vld [vmem:[%s4301_s28 + $0x208] sm:$0xff] }
  0x7a   : > { %3741 = vmatprep.mubr.msk.f32.mxu0 %vm458_vm1, %v227_v7  ;;  %3933 = vmatprep.mubr.msk.f32.mxu1 %vm458_vm1, %v355_v8  ;;  %v386_v6 = vld [vmem:[%s4301_s28 + $0x608] sm:$0xff]  ;;  %v259_v7 = vld [vmem:[%s4301_s28 + $0x210] sm:$0xff] }
  0x7b   : > { %v387_v8 = vld [vmem:[%s4301_s28 + $0x610] sm:$0xff] }
  0x7d   : > { %3742 = vmatmul.mubr.msk.f32.gmra.mrb[34].mxu0 %vm458_vm1, %v228_v9  ;;  %3934 = vmatmul.mubr.msk.f32.gmra.mrb[34].mxu1 %vm458_vm1, %v356_v10  ;;  %v260_v9 = vld [vmem:[%s4301_s28 + $0x218] sm:$0xff] }
  0x7e   : > { %3744 = vmatprep.mubr.msk.f32.mxu0 %vm458_vm1, %v229_v11  ;;  %3936 = vmatprep.mubr.msk.f32.mxu1 %vm458_vm1, %v357_v12  ;;  %v388_v10 = vld [vmem:[%s4301_s28 + $0x618] sm:$0xff]  ;;  %v261_v11 = vld [vmem:[%s4301_s28 + $0x220] sm:$0xff] }
  0x7f   : > { %v389_v12 = vld [vmem:[%s4301_s28 + $0x620] sm:$0xff] }
  0x81   : > { %3745 = vmatmul.mubr.msk.f32.gmra.mrb[36].mxu0 %vm458_vm1, %v230_v13  ;;  %3937 = vmatmul.mubr.msk.f32.gmra.mrb[36].mxu1 %vm458_vm1, %v358_v14  ;;  %v262_v13 = vld [vmem:[%s4301_s28 + $0x228] sm:$0xff] }
  0x82   : > { %3747 = vmatprep.mubr.msk.f32.mxu0 %vm458_vm1, %v231_v15  ;;  %3939 = vmatprep.mubr.msk.f32.mxu1 %vm458_vm1, %v359_v16  ;;  %v390_v14 = vld [vmem:[%s4301_s28 + $0x628] sm:$0xff]  ;;  %v263_v15 = vld [vmem:[%s4301_s28 + $0x230] sm:$0xff] }
  0x83   : > { %v391_v16 = vld [vmem:[%s4301_s28 + $0x630] sm:$0xff] }
  0x85   : > { %3748 = vmatmul.mubr.msk.f32.gmra.mrb[38].mxu0 %vm458_vm1, %v232_v17  ;;  %3940 = vmatmul.mubr.msk.f32.gmra.mrb[38].mxu1 %vm458_vm1, %v360_v18  ;;  %v264_v17 = vld [vmem:[%s4301_s28 + $0x238] sm:$0xff] }
  0x86   : > { %3750 = vmatprep.mubr.msk.f32.mxu0 %vm458_vm1, %v233_v19  ;;  %3942 = vmatprep.mubr.msk.f32.mxu1 %vm458_vm1, %v361_v20  ;;  %v392_v18 = vld [vmem:[%s4301_s28 + $0x638] sm:$0xff]  ;;  %v265_v19 = vld [vmem:[%s4301_s28 + $0x240] sm:$0xff] }
  0x87   : > { %v393_v20 = vld [vmem:[%s4301_s28 + $0x640] sm:$0xff] }
  0x89   : > { %3751 = vmatmul.mubr.msk.f32.gmra.mrb[40].mxu0 %vm458_vm1, %v234_v21  ;;  %3943 = vmatmul.mubr.msk.f32.gmra.mrb[40].mxu1 %vm458_vm1, %v362_v22  ;;  %v266_v21 = vld [vmem:[%s4301_s28 + $0x248] sm:$0xff] }
  0x8a   : > { %3753 = vmatprep.mubr.msk.f32.mxu0 %vm458_vm1, %v235_v23  ;;  %3945 = vmatprep.mubr.msk.f32.mxu1 %vm458_vm1, %v363_v24  ;;  %v394_v22 = vld [vmem:[%s4301_s28 + $0x648] sm:$0xff]  ;;  %v267_v23 = vld [vmem:[%s4301_s28 + $0x250] sm:$0xff] }
  0x8b   : > { %v395_v24 = vld [vmem:[%s4301_s28 + $0x650] sm:$0xff] }
  0x8d   : > { %3754 = vmatmul.mubr.msk.f32.gmra.mrb[42].mxu0 %vm458_vm1, %v236_v25  ;;  %3946 = vmatmul.mubr.msk.f32.gmra.mrb[42].mxu1 %vm458_vm1, %v364_v26  ;;  %v268_v25 = vld [vmem:[%s4301_s28 + $0x258] sm:$0xff] }
  0x8e   : > { %3756 = vmatprep.mubr.msk.f32.mxu0 %vm458_vm1, %v237_v27  ;;  %3948 = vmatprep.mubr.msk.f32.mxu1 %vm458_vm1, %v365_v28  ;;  %v396_v26 = vld [vmem:[%s4301_s28 + $0x658] sm:$0xff]  ;;  %v269_v27 = vld [vmem:[%s4301_s28 + $0x260] sm:$0xff] }
  0x8f   : > { %v397_v28 = vld [vmem:[%s4301_s28 + $0x660] sm:$0xff] }
  0x91   : > { %3757 = vmatmul.mubr.msk.f32.gmra.mrb[44].mxu0 %vm458_vm1, %v238_v29  ;;  %3949 = vmatmul.mubr.msk.f32.gmra.mrb[44].mxu1 %vm458_vm1, %v366_v30  ;;  %v270_v29 = vld [vmem:[%s4301_s28 + $0x268] sm:$0xff] }
  0x92   : > { %3759 = vmatprep.mubr.msk.f32.mxu0 %vm458_vm1, %v239_v31  ;;  %3951 = vmatprep.mubr.msk.f32.mxu1 %vm458_vm1, %v367_v32  ;;  %v398_v30 = vld [vmem:[%s4301_s28 + $0x668] sm:$0xff]  ;;  %v271_v31 = vld [vmem:[%s4301_s28 + $0x270] sm:$0xff] }
  0x93   : > { %v399_v32 = vld [vmem:[%s4301_s28 + $0x670] sm:$0xff] }
  0x95   : > { %3760 = vmatmul.mubr.msk.f32.gmra.mrb[46].mxu0 %vm458_vm1, %v240_v33  ;;  %3952 = vmatmul.mubr.msk.f32.gmra.mrb[46].mxu1 %vm458_vm1, %v368_v34  ;;  %v272_v33 = vld [vmem:[%s4301_s28 + $0x278] sm:$0xff] }
  0x96   : > { %3762 = vmatprep.mubr.msk.f32.mxu0 %vm458_vm1, %v241_v35  ;;  %3954 = vmatprep.mubr.msk.f32.mxu1 %vm458_vm1, %v369_v36  ;;  %v400_v34 = vld [vmem:[%s4301_s28 + $0x678] sm:$0xff]  ;;  %v273_v35 = vld [vmem:[%s4301_s28 + $0x280] sm:$0xff] }
  0x97   : > { %v401_v36 = vld [vmem:[%s4301_s28 + $0x680] sm:$0xff] }
  0x99   : > { %3763 = vmatmul.mubr.msk.f32.gmra.mrb[48].mxu0 %vm458_vm1, %v242_v37  ;;  %3955 = vmatmul.mubr.msk.f32.gmra.mrb[48].mxu1 %vm458_vm1, %v370_v38  ;;  %v274_v37 = vld [vmem:[%s4301_s28 + $0x288] sm:$0xff] }
  0x9a   : > { %3765 = vmatprep.mubr.msk.f32.mxu0 %vm458_vm1, %v243_v39  ;;  %3957 = vmatprep.mubr.msk.f32.mxu1 %vm458_vm1, %v371_v40  ;;  %v402_v38 = vld [vmem:[%s4301_s28 + $0x688] sm:$0xff]  ;;  %v275_v39 = vld [vmem:[%s4301_s28 + $0x290] sm:$0xff] }
  0x9b   : > { %v403_v40 = vld [vmem:[%s4301_s28 + $0x690] sm:$0xff] }
  0x9d   : > { %3766 = vmatmul.mubr.msk.f32.gmra.mrb[50].mxu0 %vm458_vm1, %v244_v41  ;;  %3958 = vmatmul.mubr.msk.f32.gmra.mrb[50].mxu1 %vm458_vm1, %v372_v42  ;;  %v276_v41 = vld [vmem:[%s4301_s28 + $0x298] sm:$0xff] }
  0x9e   : > { %3768 = vmatprep.mubr.msk.f32.mxu0 %vm458_vm1, %v245_v43  ;;  %3960 = vmatprep.mubr.msk.f32.mxu1 %vm458_vm1, %v373_v44  ;;  %v404_v42 = vld [vmem:[%s4301_s28 + $0x698] sm:$0xff]  ;;  %v277_v43 = vld [vmem:[%s4301_s28 + $0x2a0] sm:$0xff] }
  0x9f   : > { %v405_v44 = vld [vmem:[%s4301_s28 + $0x6a0] sm:$0xff] }
  0xa1   : > { %3769 = vmatmul.mubr.msk.f32.gmra.mrb[52].mxu0 %vm458_vm1, %v246_v45  ;;  %3961 = vmatmul.mubr.msk.f32.gmra.mrb[52].mxu1 %vm458_vm1, %v374_v46  ;;  %v278_v45 = vld [vmem:[%s4301_s28 + $0x2a8] sm:$0xff] }
  0xa2   : > { %3771 = vmatprep.mubr.msk.f32.mxu0 %vm458_vm1, %v247_v47  ;;  %3963 = vmatprep.mubr.msk.f32.mxu1 %vm458_vm1, %v375_v48  ;;  %v406_v46 = vld [vmem:[%s4301_s28 + $0x6a8] sm:$0xff]  ;;  %v279_v47 = vld [vmem:[%s4301_s28 + $0x2b0] sm:$0xff] }
  0xa3   : > { %v407_v48 = vld [vmem:[%s4301_s28 + $0x6b0] sm:$0xff] }
  0xa5   : > { %3772 = vmatmul.mubr.msk.f32.gmra.mrb[54].mxu0 %vm458_vm1, %v248_v49  ;;  %3964 = vmatmul.mubr.msk.f32.gmra.mrb[54].mxu1 %vm458_vm1, %v376_v50  ;;  %v280_v49 = vld [vmem:[%s4301_s28 + $0x2b8] sm:$0xff] }
  0xa6   : > { %3774 = vmatprep.mubr.msk.f32.mxu0 %vm458_vm1, %v249_v51  ;;  %3966 = vmatprep.mubr.msk.f32.mxu1 %vm458_vm1, %v377_v52  ;;  %v408_v50 = vld [vmem:[%s4301_s28 + $0x6b8] sm:$0xff]  ;;  %v281_v51 = vld [vmem:[%s4301_s28 + $0x2c0] sm:$0xff] }
  0xa7   : > { %v409_v52 = vld [vmem:[%s4301_s28 + $0x6c0] sm:$0xff] }
  0xa9   : > { %3775 = vmatmul.mubr.msk.f32.gmra.mrb[56].mxu0 %vm458_vm1, %v250_v53  ;;  %3967 = vmatmul.mubr.msk.f32.gmra.mrb[56].mxu1 %vm458_vm1, %v378_v54  ;;  %v282_v53 = vld [vmem:[%s4301_s28 + $0x2c8] sm:$0xff] }
  0xaa   : > { %3777 = vmatprep.mubr.msk.f32.mxu0 %vm458_vm1, %v251_v55  ;;  %3969 = vmatprep.mubr.msk.f32.mxu1 %vm458_vm1, %v379_v56  ;;  %v410_v54 = vld [vmem:[%s4301_s28 + $0x6c8] sm:$0xff]  ;;  %v283_v55 = vld [vmem:[%s4301_s28 + $0x2d0] sm:$0xff] }
  0xab   : > { %v411_v56 = vld [vmem:[%s4301_s28 + $0x6d0] sm:$0xff] }
  0xad   : > { %3778 = vmatmul.mubr.msk.f32.gmra.mrb[58].mxu0 %vm458_vm1, %v252_v57  ;;  %3970 = vmatmul.mubr.msk.f32.gmra.mrb[58].mxu1 %vm458_vm1, %v380_v58  ;;  %v284_v57 = vld [vmem:[%s4301_s28 + $0x2d8] sm:$0xff] }
  0xae   : > { %3780 = vmatprep.mubr.msk.f32.mxu0 %vm458_vm1, %v253_v59  ;;  %3972 = vmatprep.mubr.msk.f32.mxu1 %vm458_vm1, %v381_v60  ;;  %v412_v58 = vld [vmem:[%s4301_s28 + $0x6d8] sm:$0xff]  ;;  %v285_v59 = vld [vmem:[%s4301_s28 + $0x2e0] sm:$0xff] }
  0xaf   : > { %v413_v60 = vld [vmem:[%s4301_s28 + $0x6e0] sm:$0xff] }
  0xb1   : > { %3781 = vmatmul.mubr.msk.f32.gmra.mrb[60].mxu0 %vm458_vm1, %v254_v61  ;;  %3973 = vmatmul.mubr.msk.f32.gmra.mrb[60].mxu1 %vm458_vm1, %v382_v62  ;;  %v286_v61 = vld [vmem:[%s4301_s28 + $0x2e8] sm:$0xff] }
  0xb2   : > { %3783 = vmatprep.mubr.msk.f32.mxu0 %vm458_vm1, %v255_v63  ;;  %3975 = vmatprep.mubr.msk.f32.mxu1 %vm458_vm1, %v383_v0  ;;  %v414_v62 = vld [vmem:[%s4301_s28 + $0x6e8] sm:$0xff]  ;;  %v287_v63 = vld [vmem:[%s4301_s28 + $0x2f0] sm:$0xff] }
  0xb3   : > { %v415_v0 = vld [vmem:[%s4301_s28 + $0x6f0] sm:$0xff] }
  0xb5   : > { %3784 = vmatmul.mubr.msk.f32.gmra.mrb[62].mxu0 %vm458_vm1, %v256_v1  ;;  %3976 = vmatmul.mubr.msk.f32.gmra.mrb[62].mxu1 %vm458_vm1, %v384_v2  ;;  %v288_v1 = vld [vmem:[%s4301_s28 + $0x2f8] sm:$0xff] }
  0xb6   : > { %3786 = vmatprep.mubr.msk.f32.mxu0 %vm458_vm1, %v257_v3  ;;  %3978 = vmatprep.mubr.msk.f32.mxu1 %vm458_vm1, %v385_v4  ;;  %v416_v2 = vld [vmem:[%s4301_s28 + $0x6f8] sm:$0xff]  ;;  %v289_v3 = vld [vmem:[%s4301_s28 + $0x300] sm:$0xff] }
  0xb7   : > { %v417_v4 = vld [vmem:[%s4301_s28 + $0x700] sm:$0xff] }
  0xb9   : > { %3787 = vmatmul.mubr.msk.f32.gmra.mrb[64].mxu0 %vm458_vm1, %v258_v5  ;;  %3979 = vmatmul.mubr.msk.f32.gmra.mrb[64].mxu1 %vm458_vm1, %v386_v6  ;;  %v290_v5 = vld [vmem:[%s4301_s28 + $0x308] sm:$0xff] }
  0xba   : > { %3789 = vmatprep.mubr.msk.f32.mxu0 %vm458_vm1, %v259_v7  ;;  %3981 = vmatprep.mubr.msk.f32.mxu1 %vm458_vm1, %v387_v8  ;;  %v418_v6 = vld [vmem:[%s4301_s28 + $0x708] sm:$0xff]  ;;  %v291_v7 = vld [vmem:[%s4301_s28 + $0x310] sm:$0xff] }
  0xbb   : > { %v419_v8 = vld [vmem:[%s4301_s28 + $0x710] sm:$0xff] }
  0xbd   : > { %3790 = vmatmul.mubr.msk.f32.gmra.mrb[66].mxu0 %vm458_vm1, %v260_v9  ;;  %3982 = vmatmul.mubr.msk.f32.gmra.mrb[66].mxu1 %vm458_vm1, %v388_v10  ;;  %v292_v9 = vld [vmem:[%s4301_s28 + $0x318] sm:$0xff] }
  0xbe   : > { %3792 = vmatprep.mubr.msk.f32.mxu0 %vm458_vm1, %v261_v11  ;;  %3984 = vmatprep.mubr.msk.f32.mxu1 %vm458_vm1, %v389_v12  ;;  %v420_v10 = vld [vmem:[%s4301_s28 + $0x718] sm:$0xff]  ;;  %v293_v11 = vld [vmem:[%s4301_s28 + $0x320] sm:$0xff] }
  0xbf   : > { %v421_v12 = vld [vmem:[%s4301_s28 + $0x720] sm:$0xff] }
  0xc1   : > { %3793 = vmatmul.mubr.msk.f32.gmra.mrb[68].mxu0 %vm458_vm1, %v262_v13  ;;  %3985 = vmatmul.mubr.msk.f32.gmra.mrb[68].mxu1 %vm458_vm1, %v390_v14  ;;  %v294_v13 = vld [vmem:[%s4301_s28 + $0x328] sm:$0xff] }
  0xc2   : > { %3795 = vmatprep.mubr.msk.f32.mxu0 %vm458_vm1, %v263_v15  ;;  %3987 = vmatprep.mubr.msk.f32.mxu1 %vm458_vm1, %v391_v16  ;;  %v422_v14 = vld [vmem:[%s4301_s28 + $0x728] sm:$0xff]  ;;  %v295_v15 = vld [vmem:[%s4301_s28 + $0x330] sm:$0xff] }
  0xc3   : > { %v423_v16 = vld [vmem:[%s4301_s28 + $0x730] sm:$0xff] }
  0xc5   : > { %3796 = vmatmul.mubr.msk.f32.gmra.mrb[70].mxu0 %vm458_vm1, %v264_v17  ;;  %3988 = vmatmul.mubr.msk.f32.gmra.mrb[70].mxu1 %vm458_vm1, %v392_v18  ;;  %v296_v17 = vld [vmem:[%s4301_s28 + $0x338] sm:$0xff] }
  0xc6   : > { %3798 = vmatprep.mubr.msk.f32.mxu0 %vm458_vm1, %v265_v19  ;;  %3990 = vmatprep.mubr.msk.f32.mxu1 %vm458_vm1, %v393_v20  ;;  %v424_v18 = vld [vmem:[%s4301_s28 + $0x738] sm:$0xff]  ;;  %v297_v19 = vld [vmem:[%s4301_s28 + $0x340] sm:$0xff] }
  0xc7   : > { %v425_v20 = vld [vmem:[%s4301_s28 + $0x740] sm:$0xff] }
  0xc9   : > { %3799 = vmatmul.mubr.msk.f32.gmra.mrb[72].mxu0 %vm458_vm1, %v266_v21  ;;  %3991 = vmatmul.mubr.msk.f32.gmra.mrb[72].mxu1 %vm458_vm1, %v394_v22  ;;  %v298_v21 = vld [vmem:[%s4301_s28 + $0x348] sm:$0xff] }
  0xca   : > { %3801 = vmatprep.mubr.msk.f32.mxu0 %vm458_vm1, %v267_v23  ;;  %3993 = vmatprep.mubr.msk.f32.mxu1 %vm458_vm1, %v395_v24  ;;  %v426_v22 = vld [vmem:[%s4301_s28 + $0x748] sm:$0xff]  ;;  %v299_v23 = vld [vmem:[%s4301_s28 + $0x350] sm:$0xff] }
  0xcb   : > { %v427_v24 = vld [vmem:[%s4301_s28 + $0x750] sm:$0xff] }
  0xcd   : > { %3802 = vmatmul.mubr.msk.f32.gmra.mrb[74].mxu0 %vm458_vm1, %v268_v25  ;;  %3994 = vmatmul.mubr.msk.f32.gmra.mrb[74].mxu1 %vm458_vm1, %v396_v26  ;;  %v4744_v25 = vld [vmem:[%s5630_s2] ss:$0 sm:$0xff]  ;;  %v300_v26 = vld [vmem:[%s4301_s28 + $0x358] sm:$0xff] }
  0xce   : > { %3804 = vmatprep.mubr.msk.f32.mxu0 %vm458_vm1, %v269_v27  ;;  %3996 = vmatprep.mubr.msk.f32.mxu1 %vm458_vm1, %v397_v28  ;;  %v428_v27 = vld [vmem:[%s4301_s28 + $0x758] sm:$0xff]  ;;  %v301_v28 = vld [vmem:[%s4301_s28 + $0x360] sm:$0xff] }
  0xd1   : > { %3805 = vmatmul.mubr.msk.f32.gmra.mrb[76].mxu0 %vm458_vm1, %v270_v29  ;;  %3997 = vmatmul.mubr.msk.f32.gmra.mrb[76].mxu1 %vm458_vm1, %v398_v30  ;;  %v429_v29 = vld [vmem:[%s4301_s28 + $0x760] sm:$0xff] }
  0xd2   : > { %3807 = vmatprep.mubr.msk.f32.mxu0 %vm458_vm1, %v271_v31  ;;  %3999 = vmatprep.mubr.msk.f32.mxu1 %vm458_vm1, %v399_v32 }
  0xd5   : > { %3808 = vmatmul.mubr.msk.f32.gmra.mrb[78].mxu0 %vm458_vm1, %v272_v33  ;;  %4000 = vmatmul.mubr.msk.f32.gmra.mrb[78].mxu1 %vm458_vm1, %v400_v34 }
  0xd6   : > { %3810 = vmatprep.mubr.msk.f32.mxu0 %vm458_vm1, %v273_v35  ;;  %4002 = vmatprep.mubr.msk.f32.mxu1 %vm458_vm1, %v401_v36 }
  0xd9   : > { %3811 = vmatmul.mubr.msk.f32.gmra.mrb[80].mxu0 %vm458_vm1, %v274_v37  ;;  %4003 = vmatmul.mubr.msk.f32.gmra.mrb[80].mxu1 %vm458_vm1, %v402_v38  ;;  %v302_v38 = vld [vmem:[%s4301_s28 + $0x368] sm:$0xff] }
  0xda   : > { %3813 = vmatprep.mubr.msk.f32.mxu0 %vm458_vm1, %v275_v39  ;;  %4005 = vmatprep.mubr.msk.f32.mxu1 %vm458_vm1, %v403_v40  ;;  %v430_v39 = vld [vmem:[%s4301_s28 + $0x768] sm:$0xff] }
  0xdd   : > { %3814 = vmatmul.mubr.msk.f32.gmra.mrb[82].mxu0 %vm458_vm1, %v276_v41  ;;  %4006 = vmatmul.mubr.msk.f32.gmra.mrb[82].mxu1 %vm458_vm1, %v404_v42  ;;  %v303_v42 = vld [vmem:[%s4301_s28 + $0x370] sm:$0xff] }
  0xde   : > { %3816 = vmatprep.mubr.msk.f32.mxu0 %vm458_vm1, %v277_v43  ;;  %4008 = vmatprep.mubr.msk.f32.mxu1 %vm458_vm1, %v405_v44  ;;  %v431_v43 = vld [vmem:[%s4301_s28 + $0x770] sm:$0xff] }
  0xe1   : > { %3817 = vmatmul.mubr.msk.f32.gmra.mrb[84].mxu0 %vm458_vm1, %v278_v45  ;;  %4009 = vmatmul.mubr.msk.f32.gmra.mrb[84].mxu1 %vm458_vm1, %v406_v46 }
  0xe2   : > { %3819 = vmatprep.mubr.msk.f32.mxu0 %vm458_vm1, %v279_v47  ;;  %4011 = vmatprep.mubr.msk.f32.mxu1 %vm458_vm1, %v407_v48 }
  0xe5   : > { %3820 = vmatmul.mubr.msk.f32.gmra.mrb[86].mxu0 %vm458_vm1, %v280_v49  ;;  %4012 = vmatmul.mubr.msk.f32.gmra.mrb[86].mxu1 %vm458_vm1, %v408_v50 }
  0xe6   : > { %3822 = vmatprep.mubr.msk.f32.mxu0 %vm458_vm1, %v281_v51  ;;  %4014 = vmatprep.mubr.msk.f32.mxu1 %vm458_vm1, %v409_v52 }
  0xe9   : > { %3823 = vmatmul.mubr.msk.f32.gmra.mrb[88].mxu0 %vm458_vm1, %v282_v53  ;;  %4015 = vmatmul.mubr.msk.f32.gmra.mrb[88].mxu1 %vm458_vm1, %v410_v54  ;;  %v304_v54 = vld [vmem:[%s4301_s28 + $0x378] sm:$0xff] }
  0xea   : > { %3825 = vmatprep.mubr.msk.f32.mxu0 %vm458_vm1, %v283_v55  ;;  %4017 = vmatprep.mubr.msk.f32.mxu1 %vm458_vm1, %v411_v56  ;;  %v432_v55 = vld [vmem:[%s4301_s28 + $0x778] sm:$0xff] }
  0xed   : > { %3826 = vmatmul.mubr.msk.f32.gmra.mrb[90].mxu0 %vm458_vm1, %v284_v57  ;;  %4018 = vmatmul.mubr.msk.f32.gmra.mrb[90].mxu1 %vm458_vm1, %v412_v58  ;;  %v305_v58 = vld [vmem:[%s4301_s28 + $0x380] sm:$0xff] }
  0xee   : > { %3828 = vmatprep.mubr.msk.f32.mxu0 %vm458_vm1, %v285_v59  ;;  %4020 = vmatprep.mubr.msk.f32.mxu1 %vm458_vm1, %v413_v60  ;;  %v433_v59 = vld [vmem:[%s4301_s28 + $0x780] sm:$0xff] }
  0xf1   : > { %3829 = vmatmul.mubr.msk.f32.gmra.mrb[92].mxu0 %vm458_vm1, %v286_v61  ;;  %4021 = vmatmul.mubr.msk.f32.gmra.mrb[92].mxu1 %vm458_vm1, %v414_v62 }
  0xf2   : > { %3831 = vmatprep.mubr.msk.f32.mxu0 %vm458_vm1, %v287_v63  ;;  %4023 = vmatprep.mubr.msk.f32.mxu1 %vm458_vm1, %v415_v0 }
  0xf5   : > { %3832 = vmatmul.mubr.msk.f32.gmra.mrb[94].mxu0 %vm458_vm1, %v288_v1  ;;  %4024 = vmatmul.mubr.msk.f32.gmra.mrb[94].mxu1 %vm458_vm1, %v416_v2 }
  0xf6   : > { %3834 = vmatprep.mubr.msk.f32.mxu0 %vm458_vm1, %v289_v3  ;;  %4026 = vmatprep.mubr.msk.f32.mxu1 %vm458_vm1, %v417_v4 }
  0xf9   : > { %3835 = vmatmul.mubr.msk.f32.gmra.mrb[96].mxu0 %vm458_vm1, %v290_v5  ;;  %4027 = vmatmul.mubr.msk.f32.gmra.mrb[96].mxu1 %vm458_vm1, %v418_v6  ;;  %v306_v6 = vld [vmem:[%s4301_s28 + $0x388] sm:$0xff] }
  0xfa   : > { %3837 = vmatprep.mubr.msk.f32.mxu0 %vm458_vm1, %v291_v7  ;;  %4029 = vmatprep.mubr.msk.f32.mxu1 %vm458_vm1, %v419_v8  ;;  %v434_v7 = vld [vmem:[%s4301_s28 + $0x788] sm:$0xff] }
  0xfd   : > { %3838 = vmatmul.mubr.msk.f32.gmra.mrb[98].mxu0 %vm458_vm1, %v292_v9  ;;  %4030 = vmatmul.mubr.msk.f32.gmra.mrb[98].mxu1 %vm458_vm1, %v420_v10  ;;  %v307_v10 = vld [vmem:[%s4301_s28 + $0x390] sm:$0xff] }
  0xfe   : > { %3840 = vmatprep.mubr.msk.f32.mxu0 %vm458_vm1, %v293_v11  ;;  %4032 = vmatprep.mubr.msk.f32.mxu1 %vm458_vm1, %v421_v12  ;;  %v435_v11 = vld [vmem:[%s4301_s28 + $0x790] sm:$0xff] }
 0x101   : > { %3841 = vmatmul.mubr.msk.f32.gmra.mrb[100].mxu0 %vm458_vm1, %v294_v13  ;;  %4033 = vmatmul.mubr.msk.f32.gmra.mrb[100].mxu1 %vm458_vm1, %v422_v14 }
 0x102   : > { %3843 = vmatprep.mubr.msk.f32.mxu0 %vm458_vm1, %v295_v15  ;;  %4035 = vmatprep.mubr.msk.f32.mxu1 %vm458_vm1, %v423_v16 }
 0x105   : > { %3844 = vmatmul.mubr.msk.f32.gmra.mrb[102].mxu0 %vm458_vm1, %v296_v17  ;;  %4036 = vmatmul.mubr.msk.f32.gmra.mrb[102].mxu1 %vm458_vm1, %v424_v18 }
 0x106   : > { %3846 = vmatprep.mubr.msk.f32.mxu0 %vm458_vm1, %v297_v19  ;;  %4038 = vmatprep.mubr.msk.f32.mxu1 %vm458_vm1, %v425_v20 }
 0x109   : > { %3847 = vmatmul.mubr.msk.f32.gmra.mrb[104].mxu0 %vm458_vm1, %v298_v21  ;;  %4039 = vmatmul.mubr.msk.f32.gmra.mrb[104].mxu1 %vm458_vm1, %v426_v22  ;;  %v308_v22 = vld [vmem:[%s4301_s28 + $0x398] sm:$0xff] }
 0x10a   : > { %3849 = vmatprep.mubr.msk.f32.mxu0 %vm458_vm1, %v299_v23  ;;  %4041 = vmatprep.mubr.msk.f32.mxu1 %vm458_vm1, %v427_v24  ;;  %v436_v23 = vld [vmem:[%s4301_s28 + $0x798] sm:$0xff] }
 0x10c   : > { %v3692_v30 = vpop.f32.mrb[0].mxu0  ;;  %v3884_v31 = vpop.f32.mrb[0].mxu1 }
 0x10d   : > { %v1303_v32 = vadd.f32 %v3692_v30, %v4744_v25  ;;  %v1943_v33 = vadd.f32 %v3884_v31, %v4744_v25  ;;  %v1297_v34 = vpop.f32.mrb[1].mxu0  ;;  %3850 = vmatmul.mubr.msk.f32.gmra.mrb[106].mxu0 %vm458_vm1, %v300_v26  ;;  %v1937_v35 = vpop.f32.mrb[1].mxu1  ;;  %4042 = vmatmul.mubr.msk.f32.gmra.mrb[106].mxu1 %vm458_vm1, %v428_v27  ;;  %v309_v27 = vld [vmem:[%s4301_s28 + $0x3a0] sm:$0xff] }
 0x10e   : > { %v1298_v36 = vadd.f32 %v4744_v25, %v1297_v34  ;;  %v1938_v37 = vadd.f32 %v4744_v25, %v1937_v35  ;;  %3852 = vmatprep.mubr.msk.f32.mxu0 %vm458_vm1, %v301_v28  ;;  %4044 = vmatprep.mubr.msk.f32.mxu1 %vm458_vm1, %v429_v29  ;;  %v437_v28 = vld [vmem:[%s4301_s28 + $0x7a0] sm:$0xff] }
 0x10f   : > { %v2577_v40 = vmax.f32 %v1303_v32, 0.0  ;;  %v2705_v41 = vmax.f32 %v1943_v33, 0.0 }
 0x110   : > { %v2576_v44 = vmax.f32 %v1298_v36, 0.0  ;;  %v2704_v45 = vmax.f32 %v1938_v37, 0.0  ;;  %v3695_v46 = vpop.f32.mrb[2].mxu0  ;;  %v3887_v47 = vpop.f32.mrb[2].mxu1 }
 0x111   : > { %2834 = vst.msk [vmem:[%s4759_s8 + $0x8] sm:$0xff] %vm2832_vm4, %v2577_v40  ;;  %2962 = vst.msk [vmem:[%s4759_s8 + $0x408] sm:$0xff] %vm2832_vm4, %v2705_v41  ;;  %v1313_v48 = vadd.f32 %v3695_v46, %v4744_v25  ;;  %v1953_v49 = vadd.f32 %v3887_v47, %v4744_v25  ;;  %v1307_v50 = vpop.f32.mrb[3].mxu0  ;;  %3853 = vmatmul.mubr.msk.f32.gmra.mrb[108].mxu0 %vm458_vm1, %v302_v38  ;;  %v1947_v51 = vpop.f32.mrb[3].mxu1  ;;  %4045 = vmatmul.mubr.msk.f32.gmra.mrb[108].mxu1 %vm458_vm1, %v430_v39  ;;  %v310_v39 = vld [vmem:[%s4301_s28 + $0x3a8] sm:$0xff] }
 0x112   : > { %2833 = vst.msk [vmem:[%s4759_s8] sm:$0xff] %vm2832_vm4, %v2576_v44  ;;  %2961 = vst.msk [vmem:[%s4759_s8 + $0x400] sm:$0xff] %vm2832_vm4, %v2704_v45  ;;  %v1308_v52 = vadd.f32 %v4744_v25, %v1307_v50  ;;  %v1948_v53 = vadd.f32 %v4744_v25, %v1947_v51  ;;  %3855 = vmatprep.mubr.msk.f32.mxu0 %vm458_vm1, %v303_v42  ;;  %4047 = vmatprep.mubr.msk.f32.mxu1 %vm458_vm1, %v431_v43  ;;  %v438_v40 = vld [vmem:[%s4301_s28 + $0x7a8] sm:$0xff]  ;;  %v311_v43 = vld [vmem:[%s4301_s28 + $0x3b0] sm:$0xff] }
 0x113   : > { %v2579_v56 = vmax.f32 %v1313_v48, 0.0  ;;  %v2707_v57 = vmax.f32 %v1953_v49, 0.0  ;;  %v439_v44 = vld [vmem:[%s4301_s28 + $0x7b0] sm:$0xff] }
 0x114   : > { %v2578_v60 = vmax.f32 %v1308_v52, 0.0  ;;  %v2706_v61 = vmax.f32 %v1948_v53, 0.0  ;;  %v3698_v62 = vpop.f32.mrb[4].mxu0  ;;  %v3890_v63 = vpop.f32.mrb[4].mxu1 }
 0x115   : > { %2836 = vst.msk [vmem:[%s4759_s8 + $0x18] sm:$0xff] %vm2832_vm4, %v2579_v56  ;;  %2964 = vst.msk [vmem:[%s4759_s8 + $0x418] sm:$0xff] %vm2832_vm4, %v2707_v57  ;;  %v1323_v0 = vadd.f32 %v3698_v62, %v4744_v25  ;;  %v1963_v1 = vadd.f32 %v3890_v63, %v4744_v25  ;;  %v1317_v2 = vpop.f32.mrb[5].mxu0  ;;  %3856 = vmatmul.mubr.msk.f32.gmra.mrb[110].mxu0 %vm458_vm1, %v304_v54  ;;  %v1957_v3 = vpop.f32.mrb[5].mxu1  ;;  %4048 = vmatmul.mubr.msk.f32.gmra.mrb[110].mxu1 %vm458_vm1, %v432_v55  ;;  %v312_v55 = vld [vmem:[%s4301_s28 + $0x3b8] sm:$0xff] }
 0x116   : > { %2835 = vst.msk [vmem:[%s4759_s8 + $0x10] sm:$0xff] %vm2832_vm4, %v2578_v60  ;;  %2963 = vst.msk [vmem:[%s4759_s8 + $0x410] sm:$0xff] %vm2832_vm4, %v2706_v61  ;;  %v1318_v4 = vadd.f32 %v4744_v25, %v1317_v2  ;;  %v1958_v5 = vadd.f32 %v4744_v25, %v1957_v3  ;;  %3858 = vmatprep.mubr.msk.f32.mxu0 %vm458_vm1, %v305_v58  ;;  %4050 = vmatprep.mubr.msk.f32.mxu1 %vm458_vm1, %v433_v59  ;;  %v440_v56 = vld [vmem:[%s4301_s28 + $0x7b8] sm:$0xff]  ;;  %v313_v59 = vld [vmem:[%s4301_s28 + $0x3c0] sm:$0xff] }
 0x117   : > { %v2581_v8 = vmax.f32 %v1323_v0, 0.0  ;;  %v2709_v9 = vmax.f32 %v1963_v1, 0.0  ;;  %v441_v60 = vld [vmem:[%s4301_s28 + $0x7c0] sm:$0xff] }
 0x118   : > { %v2580_v12 = vmax.f32 %v1318_v4, 0.0  ;;  %v2708_v13 = vmax.f32 %v1958_v5, 0.0  ;;  %v3701_v14 = vpop.f32.mrb[6].mxu0  ;;  %v3893_v15 = vpop.f32.mrb[6].mxu1 }
 0x119   : > { %2838 = vst.msk [vmem:[%s4759_s8 + $0x28] sm:$0xff] %vm2832_vm4, %v2581_v8  ;;  %2966 = vst.msk [vmem:[%s4759_s8 + $0x428] sm:$0xff] %vm2832_vm4, %v2709_v9  ;;  %v1333_v16 = vadd.f32 %v3701_v14, %v4744_v25  ;;  %v1973_v17 = vadd.f32 %v3893_v15, %v4744_v25  ;;  %v1327_v18 = vpop.f32.mrb[7].mxu0  ;;  %3859 = vmatmul.mubr.msk.f32.gmra.mrb[112].mxu0 %vm458_vm1, %v306_v6  ;;  %v1967_v19 = vpop.f32.mrb[7].mxu1  ;;  %4051 = vmatmul.mubr.msk.f32.gmra.mrb[112].mxu1 %vm458_vm1, %v434_v7  ;;  %v314_v7 = vld [vmem:[%s4301_s28 + $0x3c8] sm:$0xff] }
 0x11a   : > { %2837 = vst.msk [vmem:[%s4759_s8 + $0x20] sm:$0xff] %vm2832_vm4, %v2580_v12  ;;  %2965 = vst.msk [vmem:[%s4759_s8 + $0x420] sm:$0xff] %vm2832_vm4, %v2708_v13  ;;  %v1328_v20 = vadd.f32 %v4744_v25, %v1327_v18  ;;  %v1968_v21 = vadd.f32 %v4744_v25, %v1967_v19  ;;  %3861 = vmatprep.mubr.msk.f32.mxu0 %vm458_vm1, %v307_v10  ;;  %4053 = vmatprep.mubr.msk.f32.mxu1 %vm458_vm1, %v435_v11  ;;  %v442_v8 = vld [vmem:[%s4301_s28 + $0x7c8] sm:$0xff]  ;;  %v315_v11 = vld [vmem:[%s4301_s28 + $0x3d0] sm:$0xff] }
 0x11b   : > { %v2583_v24 = vmax.f32 %v1333_v16, 0.0  ;;  %v2711_v26 = vmax.f32 %v1973_v17, 0.0  ;;  %v443_v12 = vld [vmem:[%s4301_s28 + $0x7d0] sm:$0xff] }
 0x11c   : > { %v2582_v29 = vmax.f32 %v1328_v20, 0.0  ;;  %v2710_v30 = vmax.f32 %v1968_v21, 0.0  ;;  %v3704_v31 = vpop.f32.mrb[8].mxu0  ;;  %v3896_v32 = vpop.f32.mrb[8].mxu1 }
 0x11d   : > { %2840 = vst.msk [vmem:[%s4759_s8 + $0x38] sm:$0xff] %vm2832_vm4, %v2583_v24  ;;  %2968 = vst.msk [vmem:[%s4759_s8 + $0x438] sm:$0xff] %vm2832_vm4, %v2711_v26  ;;  %v1343_v33 = vadd.f32 %v3704_v31, %v4744_v25  ;;  %v1983_v34 = vadd.f32 %v3896_v32, %v4744_v25  ;;  %v1337_v35 = vpop.f32.mrb[9].mxu0  ;;  %3862 = vmatmul.mubr.msk.f32.gmra.mrb[114].mxu0 %vm458_vm1, %v308_v22  ;;  %v1977_v36 = vpop.f32.mrb[9].mxu1  ;;  %4054 = vmatmul.mubr.msk.f32.gmra.mrb[114].mxu1 %vm458_vm1, %v436_v23  ;;  %v316_v23 = vld [vmem:[%s4301_s28 + $0x3d8] sm:$0xff] }
 0x11e   : > { %2839 = vst.msk [vmem:[%s4759_s8 + $0x30] sm:$0xff] %vm2832_vm4, %v2582_v29  ;;  %2967 = vst.msk [vmem:[%s4759_s8 + $0x430] sm:$0xff] %vm2832_vm4, %v2710_v30  ;;  %v1338_v37 = vadd.f32 %v4744_v25, %v1337_v35  ;;  %v1978_v38 = vadd.f32 %v4744_v25, %v1977_v36  ;;  %3864 = vmatprep.mubr.msk.f32.mxu0 %vm458_vm1, %v309_v27  ;;  %4056 = vmatprep.mubr.msk.f32.mxu1 %vm458_vm1, %v437_v28  ;;  %v444_v24 = vld [vmem:[%s4301_s28 + $0x7d8] sm:$0xff]  ;;  %v317_v28 = vld [vmem:[%s4301_s28 + $0x3e0] sm:$0xff] }
 0x11f   : > { %v2585_v41 = vmax.f32 %v1343_v33, 0.0  ;;  %v2713_v42 = vmax.f32 %v1983_v34, 0.0  ;;  %v445_v29 = vld [vmem:[%s4301_s28 + $0x7e0] sm:$0xff] }
 0x120   : > { %v2584_v45 = vmax.f32 %v1338_v37, 0.0  ;;  %v2712_v46 = vmax.f32 %v1978_v38, 0.0  ;;  %v3707_v47 = vpop.f32.mrb[10].mxu0  ;;  %v3899_v48 = vpop.f32.mrb[10].mxu1 }
 0x121   : > { %2842 = vst.msk [vmem:[%s4759_s8 + $0x48] sm:$0xff] %vm2832_vm4, %v2585_v41  ;;  %2970 = vst.msk [vmem:[%s4759_s8 + $0x448] sm:$0xff] %vm2832_vm4, %v2713_v42  ;;  %v1353_v49 = vadd.f32 %v3707_v47, %v4744_v25  ;;  %v1993_v50 = vadd.f32 %v3899_v48, %v4744_v25  ;;  %v1347_v51 = vpop.f32.mrb[11].mxu0  ;;  %3865 = vmatmul.mubr.msk.f32.gmra.mrb[116].mxu0 %vm458_vm1, %v310_v39  ;;  %v1987_v52 = vpop.f32.mrb[11].mxu1  ;;  %4057 = vmatmul.mubr.msk.f32.gmra.mrb[116].mxu1 %vm458_vm1, %v438_v40  ;;  %v318_v40 = vld [vmem:[%s4301_s28 + $0x3e8] sm:$0xff] }
 0x122   : > { %2841 = vst.msk [vmem:[%s4759_s8 + $0x40] sm:$0xff] %vm2832_vm4, %v2584_v45  ;;  %2969 = vst.msk [vmem:[%s4759_s8 + $0x440] sm:$0xff] %vm2832_vm4, %v2712_v46  ;;  %v1348_v53 = vadd.f32 %v4744_v25, %v1347_v51  ;;  %v1988_v54 = vadd.f32 %v4744_v25, %v1987_v52  ;;  %3867 = vmatprep.mubr.msk.f32.mxu0 %vm458_vm1, %v311_v43  ;;  %4059 = vmatprep.mubr.msk.f32.mxu1 %vm458_vm1, %v439_v44  ;;  %v446_v41 = vld [vmem:[%s4301_s28 + $0x7e8] sm:$0xff]  ;;  %v319_v44 = vld [vmem:[%s4301_s28 + $0x3f0] sm:$0xff] }
 0x123   : > { %v2587_v57 = vmax.f32 %v1353_v49, 0.0  ;;  %v2715_v58 = vmax.f32 %v1993_v50, 0.0  ;;  %v447_v45 = vld [vmem:[%s4301_s28 + $0x7f0] sm:$0xff] }
 0x124   : > { %v2586_v61 = vmax.f32 %v1348_v53, 0.0  ;;  %v2714_v62 = vmax.f32 %v1988_v54, 0.0  ;;  %v3710_v63 = vpop.f32.mrb[12].mxu0  ;;  %v3902_v0 = vpop.f32.mrb[12].mxu1 }
 0x125   : > { %2844 = vst.msk [vmem:[%s4759_s8 + $0x58] sm:$0xff] %vm2832_vm4, %v2587_v57  ;;  %2972 = vst.msk [vmem:[%s4759_s8 + $0x458] sm:$0xff] %vm2832_vm4, %v2715_v58  ;;  %v1363_v1 = vadd.f32 %v3710_v63, %v4744_v25  ;;  %v2003_v2 = vadd.f32 %v3902_v0, %v4744_v25  ;;  %v1357_v3 = vpop.f32.mrb[13].mxu0  ;;  %3868 = vmatmul.mubr.msk.f32.gmra.mrb[118].mxu0 %vm458_vm1, %v312_v55  ;;  %v1997_v4 = vpop.f32.mrb[13].mxu1  ;;  %4060 = vmatmul.mubr.msk.f32.gmra.mrb[118].mxu1 %vm458_vm1, %v440_v56  ;;  %v320_v56 = vld [vmem:[%s4301_s28 + $0x3f8] sm:$0xff] }
 0x126   : > { %2843 = vst.msk [vmem:[%s4759_s8 + $0x50] sm:$0xff] %vm2832_vm4, %v2586_v61  ;;  %2971 = vst.msk [vmem:[%s4759_s8 + $0x450] sm:$0xff] %vm2832_vm4, %v2714_v62  ;;  %v1358_v5 = vadd.f32 %v4744_v25, %v1357_v3  ;;  %v1998_v6 = vadd.f32 %v4744_v25, %v1997_v4  ;;  %3870 = vmatprep.mubr.msk.f32.mxu0 %vm458_vm1, %v313_v59  ;;  %4062 = vmatprep.mubr.msk.f32.mxu1 %vm458_vm1, %v441_v60  ;;  %v448_v57 = vld [vmem:[%s4301_s28 + $0x7f8] sm:$0xff] }
 0x127   : > { %v2589_v9 = vmax.f32 %v1363_v1, 0.0  ;;  %v2717_v10 = vmax.f32 %v2003_v2, 0.0 }
 0x128   : > { %v2588_v13 = vmax.f32 %v1358_v5, 0.0  ;;  %v2716_v14 = vmax.f32 %v1998_v6, 0.0  ;;  %v3713_v15 = vpop.f32.mrb[14].mxu0  ;;  %v3905_v16 = vpop.f32.mrb[14].mxu1 }
 0x129   : > { %2846 = vst.msk [vmem:[%s4759_s8 + $0x68] sm:$0xff] %vm2832_vm4, %v2589_v9  ;;  %2974 = vst.msk [vmem:[%s4759_s8 + $0x468] sm:$0xff] %vm2832_vm4, %v2717_v10  ;;  %v1373_v17 = vadd.f32 %v3713_v15, %v4744_v25  ;;  %v2013_v18 = vadd.f32 %v3905_v16, %v4744_v25  ;;  %v1367_v19 = vpop.f32.mrb[15].mxu0  ;;  %3871 = vmatmul.mubr.msk.f32.gmra.mrb[120].mxu0 %vm458_vm1, %v314_v7  ;;  %v2007_v20 = vpop.f32.mrb[15].mxu1  ;;  %4063 = vmatmul.mubr.msk.f32.gmra.mrb[120].mxu1 %vm458_vm1, %v442_v8 }
 0x12a   : > { %2845 = vst.msk [vmem:[%s4759_s8 + $0x60] sm:$0xff] %vm2832_vm4, %v2588_v13  ;;  %2973 = vst.msk [vmem:[%s4759_s8 + $0x460] sm:$0xff] %vm2832_vm4, %v2716_v14  ;;  %v1368_v21 = vadd.f32 %v4744_v25, %v1367_v19  ;;  %v2008_v22 = vadd.f32 %v4744_v25, %v2007_v20  ;;  %3873 = vmatprep.mubr.msk.f32.mxu0 %vm458_vm1, %v315_v11  ;;  %4065 = vmatprep.mubr.msk.f32.mxu1 %vm458_vm1, %v443_v12 }
 0x12b   : > { %v2591_v26 = vmax.f32 %v1373_v17, 0.0  ;;  %v2719_v27 = vmax.f32 %v2013_v18, 0.0 }
 0x12c   : > { %v2590_v30 = vmax.f32 %v1368_v21, 0.0  ;;  %v2718_v31 = vmax.f32 %v2008_v22, 0.0  ;;  %v3716_v32 = vpop.f32.mrb[16].mxu0  ;;  %v3908_v33 = vpop.f32.mrb[16].mxu1 }
 0x12d   : > { %2848 = vst.msk [vmem:[%s4759_s8 + $0x78] sm:$0xff] %vm2832_vm4, %v2591_v26  ;;  %2976 = vst.msk [vmem:[%s4759_s8 + $0x478] sm:$0xff] %vm2832_vm4, %v2719_v27  ;;  %v1383_v34 = vadd.f32 %v3716_v32, %v4744_v25  ;;  %v2023_v35 = vadd.f32 %v3908_v33, %v4744_v25  ;;  %v1377_v36 = vpop.f32.mrb[17].mxu0  ;;  %3874 = vmatmul.mubr.msk.f32.gmra.mrb[122].mxu0 %vm458_vm1, %v316_v23  ;;  %v2017_v37 = vpop.f32.mrb[17].mxu1  ;;  %4066 = vmatmul.mubr.msk.f32.gmra.mrb[122].mxu1 %vm458_vm1, %v444_v24 }
 0x12e   : > { %2847 = vst.msk [vmem:[%s4759_s8 + $0x70] sm:$0xff] %vm2832_vm4, %v2590_v30  ;;  %2975 = vst.msk [vmem:[%s4759_s8 + $0x470] sm:$0xff] %vm2832_vm4, %v2718_v31  ;;  %v1378_v38 = vadd.f32 %v4744_v25, %v1377_v36  ;;  %v2018_v39 = vadd.f32 %v4744_v25, %v2017_v37  ;;  %3876 = vmatprep.mubr.msk.f32.mxu0 %vm458_vm1, %v317_v28  ;;  %4068 = vmatprep.mubr.msk.f32.mxu1 %vm458_vm1, %v445_v29 }
 0x12f   : > { %v2593_v42 = vmax.f32 %v1383_v34, 0.0  ;;  %v2721_v43 = vmax.f32 %v2023_v35, 0.0 }
 0x130   : > { %v2592_v46 = vmax.f32 %v1378_v38, 0.0  ;;  %v2720_v47 = vmax.f32 %v2018_v39, 0.0  ;;  %v3719_v48 = vpop.f32.mrb[18].mxu0  ;;  %v3911_v49 = vpop.f32.mrb[18].mxu1 }
 0x131   : > { %2850 = vst.msk [vmem:[%s4759_s8 + $0x88] sm:$0xff] %vm2832_vm4, %v2593_v42  ;;  %2978 = vst.msk [vmem:[%s4759_s8 + $0x488] sm:$0xff] %vm2832_vm4, %v2721_v43  ;;  %v1393_v50 = vadd.f32 %v3719_v48, %v4744_v25  ;;  %v2033_v51 = vadd.f32 %v3911_v49, %v4744_v25  ;;  %v1387_v52 = vpop.f32.mrb[19].mxu0  ;;  %3877 = vmatmul.mubr.msk.f32.gmra.mrb[124].mxu0 %vm458_vm1, %v318_v40  ;;  %v2027_v53 = vpop.f32.mrb[19].mxu1  ;;  %4069 = vmatmul.mubr.msk.f32.gmra.mrb[124].mxu1 %vm458_vm1, %v446_v41 }
 0x132   : > { %2849 = vst.msk [vmem:[%s4759_s8 + $0x80] sm:$0xff] %vm2832_vm4, %v2592_v46  ;;  %2977 = vst.msk [vmem:[%s4759_s8 + $0x480] sm:$0xff] %vm2832_vm4, %v2720_v47  ;;  %v1388_v54 = vadd.f32 %v4744_v25, %v1387_v52  ;;  %v2028_v55 = vadd.f32 %v4744_v25, %v2027_v53  ;;  %3879 = vmatprep.mubr.msk.f32.mxu0 %vm458_vm1, %v319_v44  ;;  %4071 = vmatprep.mubr.msk.f32.mxu1 %vm458_vm1, %v447_v45 }
 0x133   : > { %v2595_v58 = vmax.f32 %v1393_v50, 0.0  ;;  %v2723_v59 = vmax.f32 %v2033_v51, 0.0 }
 0x134   : > { %v2594_v60 = vmax.f32 %v1388_v54, 0.0  ;;  %v2722_v61 = vmax.f32 %v2028_v55, 0.0  ;;  %v3722_v62 = vpop.f32.mrb[20].mxu0  ;;  %v3914_v63 = vpop.f32.mrb[20].mxu1 }
 0x135   : > { %2852 = vst.msk [vmem:[%s4759_s8 + $0x98] sm:$0xff] %vm2832_vm4, %v2595_v58  ;;  %2980 = vst.msk [vmem:[%s4759_s8 + $0x498] sm:$0xff] %vm2832_vm4, %v2723_v59  ;;  %v1403_v0 = vadd.f32 %v3722_v62, %v4744_v25  ;;  %v2043_v1 = vadd.f32 %v3914_v63, %v4744_v25  ;;  %v1397_v2 = vpop.f32.mrb[21].mxu0  ;;  %3880 = vmatmul.mubr.msk.f32.gmra.mrb[126].mxu0 %vm458_vm1, %v320_v56  ;;  %v2037_v3 = vpop.f32.mrb[21].mxu1  ;;  %4072 = vmatmul.mubr.msk.f32.gmra.mrb[126].mxu1 %vm458_vm1, %v448_v57 }
 0x136   : > { %2851 = vst.msk [vmem:[%s4759_s8 + $0x90] sm:$0xff] %vm2832_vm4, %v2594_v60  ;;  %2979 = vst.msk [vmem:[%s4759_s8 + $0x490] sm:$0xff] %vm2832_vm4, %v2722_v61  ;;  %v1398_v4 = vadd.f32 %v4744_v25, %v1397_v2  ;;  %v2038_v5 = vadd.f32 %v4744_v25, %v2037_v3 }
 0x137   : > { %v2597_v6 = vmax.f32 %v1403_v0, 0.0  ;;  %v2725_v7 = vmax.f32 %v2043_v1, 0.0 }
 0x138   : > { %v2596_v8 = vmax.f32 %v1398_v4, 0.0  ;;  %v2724_v9 = vmax.f32 %v2038_v5, 0.0  ;;  %v3725_v10 = vpop.f32.mrb[22].mxu0  ;;  %v3917_v11 = vpop.f32.mrb[22].mxu1 }
 0x139   : > { %2854 = vst.msk [vmem:[%s4759_s8 + $0xa8] sm:$0xff] %vm2832_vm4, %v2597_v6  ;;  %2982 = vst.msk [vmem:[%s4759_s8 + $0x4a8] sm:$0xff] %vm2832_vm4, %v2725_v7  ;;  %v1413_v12 = vadd.f32 %v3725_v10, %v4744_v25  ;;  %v2053_v13 = vadd.f32 %v3917_v11, %v4744_v25  ;;  %v1407_v14 = vpop.f32.mrb[23].mxu0  ;;  %v2047_v15 = vpop.f32.mrb[23].mxu1 }
 0x13a   : > { %2853 = vst.msk [vmem:[%s4759_s8 + $0xa0] sm:$0xff] %vm2832_vm4, %v2596_v8  ;;  %2981 = vst.msk [vmem:[%s4759_s8 + $0x4a0] sm:$0xff] %vm2832_vm4, %v2724_v9  ;;  %v1408_v16 = vadd.f32 %v4744_v25, %v1407_v14  ;;  %v2048_v17 = vadd.f32 %v4744_v25, %v2047_v15 }
 0x13b   : > { %v2599_v18 = vmax.f32 %v1413_v12, 0.0  ;;  %v2727_v19 = vmax.f32 %v2053_v13, 0.0 }
 0x13c   : > { %v2598_v20 = vmax.f32 %v1408_v16, 0.0  ;;  %v2726_v21 = vmax.f32 %v2048_v17, 0.0  ;;  %v3728_v22 = vpop.f32.mrb[24].mxu0  ;;  %v3920_v23 = vpop.f32.mrb[24].mxu1 }
 0x13d   : > { %2856 = vst.msk [vmem:[%s4759_s8 + $0xb8] sm:$0xff] %vm2832_vm4, %v2599_v18  ;;  %2984 = vst.msk [vmem:[%s4759_s8 + $0x4b8] sm:$0xff] %vm2832_vm4, %v2727_v19  ;;  %v1423_v24 = vadd.f32 %v3728_v22, %v4744_v25  ;;  %v2063_v26 = vadd.f32 %v3920_v23, %v4744_v25  ;;  %v1417_v27 = vpop.f32.mrb[25].mxu0  ;;  %v2057_v28 = vpop.f32.mrb[25].mxu1 }
 0x13e   : > { %2855 = vst.msk [vmem:[%s4759_s8 + $0xb0] sm:$0xff] %vm2832_vm4, %v2598_v20  ;;  %2983 = vst.msk [vmem:[%s4759_s8 + $0x4b0] sm:$0xff] %vm2832_vm4, %v2726_v21  ;;  %v1418_v29 = vadd.f32 %v4744_v25, %v1417_v27  ;;  %v2058_v30 = vadd.f32 %v4744_v25, %v2057_v28 }
 0x13f   : > { %v2601_v31 = vmax.f32 %v1423_v24, 0.0  ;;  %v2729_v32 = vmax.f32 %v2063_v26, 0.0 }
 0x140   : > { %v2600_v33 = vmax.f32 %v1418_v29, 0.0  ;;  %v2728_v34 = vmax.f32 %v2058_v30, 0.0  ;;  %v3731_v35 = vpop.f32.mrb[26].mxu0  ;;  %v3923_v36 = vpop.f32.mrb[26].mxu1 }
 0x141   : > { %2858 = vst.msk [vmem:[%s4759_s8 + $0xc8] sm:$0xff] %vm2832_vm4, %v2601_v31  ;;  %2986 = vst.msk [vmem:[%s4759_s8 + $0x4c8] sm:$0xff] %vm2832_vm4, %v2729_v32  ;;  %v1433_v37 = vadd.f32 %v3731_v35, %v4744_v25  ;;  %v2073_v38 = vadd.f32 %v3923_v36, %v4744_v25  ;;  %v1427_v39 = vpop.f32.mrb[27].mxu0  ;;  %v2067_v40 = vpop.f32.mrb[27].mxu1 }
 0x142   : > { %2857 = vst.msk [vmem:[%s4759_s8 + $0xc0] sm:$0xff] %vm2832_vm4, %v2600_v33  ;;  %2985 = vst.msk [vmem:[%s4759_s8 + $0x4c0] sm:$0xff] %vm2832_vm4, %v2728_v34  ;;  %v1428_v41 = vadd.f32 %v4744_v25, %v1427_v39  ;;  %v2068_v42 = vadd.f32 %v4744_v25, %v2067_v40 }
 0x143   : > { %v2603_v43 = vmax.f32 %v1433_v37, 0.0  ;;  %v2731_v44 = vmax.f32 %v2073_v38, 0.0 }
 0x144   : > { %v2602_v45 = vmax.f32 %v1428_v41, 0.0  ;;  %v2730_v46 = vmax.f32 %v2068_v42, 0.0  ;;  %v3734_v47 = vpop.f32.mrb[28].mxu0  ;;  %v3926_v48 = vpop.f32.mrb[28].mxu1 }
 0x145   : > { %2860 = vst.msk [vmem:[%s4759_s8 + $0xd8] sm:$0xff] %vm2832_vm4, %v2603_v43  ;;  %2988 = vst.msk [vmem:[%s4759_s8 + $0x4d8] sm:$0xff] %vm2832_vm4, %v2731_v44  ;;  %v1443_v49 = vadd.f32 %v3734_v47, %v4744_v25  ;;  %v2083_v50 = vadd.f32 %v3926_v48, %v4744_v25  ;;  %v1437_v51 = vpop.f32.mrb[29].mxu0  ;;  %v2077_v52 = vpop.f32.mrb[29].mxu1 }
 0x146   : > { %2859 = vst.msk [vmem:[%s4759_s8 + $0xd0] sm:$0xff] %vm2832_vm4, %v2602_v45  ;;  %2987 = vst.msk [vmem:[%s4759_s8 + $0x4d0] sm:$0xff] %vm2832_vm4, %v2730_v46  ;;  %v1438_v53 = vadd.f32 %v4744_v25, %v1437_v51  ;;  %v2078_v54 = vadd.f32 %v4744_v25, %v2077_v52 }
 0x147   : > { %v2605_v55 = vmax.f32 %v1443_v49, 0.0  ;;  %v2733_v56 = vmax.f32 %v2083_v50, 0.0 }
 0x148   : > { %v2604_v57 = vmax.f32 %v1438_v53, 0.0  ;;  %v2732_v58 = vmax.f32 %v2078_v54, 0.0  ;;  %v3737_v59 = vpop.f32.mrb[30].mxu0  ;;  %v3929_v60 = vpop.f32.mrb[30].mxu1 }
 0x149   : > { %2862 = vst.msk [vmem:[%s4759_s8 + $0xe8] sm:$0xff] %vm2832_vm4, %v2605_v55  ;;  %2990 = vst.msk [vmem:[%s4759_s8 + $0x4e8] sm:$0xff] %vm2832_vm4, %v2733_v56  ;;  %v1453_v61 = vadd.f32 %v3737_v59, %v4744_v25  ;;  %v2093_v62 = vadd.f32 %v3929_v60, %v4744_v25  ;;  %v1447_v63 = vpop.f32.mrb[31].mxu0  ;;  %v2087_v0 = vpop.f32.mrb[31].mxu1 }
 0x14a   : > { %2861 = vst.msk [vmem:[%s4759_s8 + $0xe0] sm:$0xff] %vm2832_vm4, %v2604_v57  ;;  %2989 = vst.msk [vmem:[%s4759_s8 + $0x4e0] sm:$0xff] %vm2832_vm4, %v2732_v58  ;;  %v1448_v1 = vadd.f32 %v4744_v25, %v1447_v63  ;;  %v2088_v2 = vadd.f32 %v4744_v25, %v2087_v0 }
 0x14b   : > { %v2607_v3 = vmax.f32 %v1453_v61, 0.0  ;;  %v2735_v4 = vmax.f32 %v2093_v62, 0.0 }
 0x14c   : > { %v2606_v5 = vmax.f32 %v1448_v1, 0.0  ;;  %v2734_v6 = vmax.f32 %v2088_v2, 0.0  ;;  %v3740_v7 = vpop.f32.mrb[32].mxu0  ;;  %v3932_v8 = vpop.f32.mrb[32].mxu1 }
 0x14d   : > { %2864 = vst.msk [vmem:[%s4759_s8 + $0xf8] sm:$0xff] %vm2832_vm4, %v2607_v3  ;;  %2992 = vst.msk [vmem:[%s4759_s8 + $0x4f8] sm:$0xff] %vm2832_vm4, %v2735_v4  ;;  %v1463_v9 = vadd.f32 %v3740_v7, %v4744_v25  ;;  %v2103_v10 = vadd.f32 %v3932_v8, %v4744_v25  ;;  %v1457_v11 = vpop.f32.mrb[33].mxu0  ;;  %v2097_v12 = vpop.f32.mrb[33].mxu1 }
 0x14e   : > { %2863 = vst.msk [vmem:[%s4759_s8 + $0xf0] sm:$0xff] %vm2832_vm4, %v2606_v5  ;;  %2991 = vst.msk [vmem:[%s4759_s8 + $0x4f0] sm:$0xff] %vm2832_vm4, %v2734_v6  ;;  %v1458_v13 = vadd.f32 %v4744_v25, %v1457_v11  ;;  %v2098_v14 = vadd.f32 %v4744_v25, %v2097_v12 }
 0x14f   : > { %v2609_v15 = vmax.f32 %v1463_v9, 0.0  ;;  %v2737_v16 = vmax.f32 %v2103_v10, 0.0 }
 0x150   : > { %v2608_v17 = vmax.f32 %v1458_v13, 0.0  ;;  %v2736_v18 = vmax.f32 %v2098_v14, 0.0  ;;  %v3743_v19 = vpop.f32.mrb[34].mxu0  ;;  %v3935_v20 = vpop.f32.mrb[34].mxu1 }
 0x151   : > { %2866 = vst.msk [vmem:[%s4759_s8 + $0x108] sm:$0xff] %vm2832_vm4, %v2609_v15  ;;  %2994 = vst.msk [vmem:[%s4759_s8 + $0x508] sm:$0xff] %vm2832_vm4, %v2737_v16  ;;  %v1473_v21 = vadd.f32 %v3743_v19, %v4744_v25  ;;  %v2113_v22 = vadd.f32 %v3935_v20, %v4744_v25  ;;  %v1467_v23 = vpop.f32.mrb[35].mxu0  ;;  %v2107_v24 = vpop.f32.mrb[35].mxu1 }
 0x152   : > { %2865 = vst.msk [vmem:[%s4759_s8 + $0x100] sm:$0xff] %vm2832_vm4, %v2608_v17  ;;  %2993 = vst.msk [vmem:[%s4759_s8 + $0x500] sm:$0xff] %vm2832_vm4, %v2736_v18  ;;  %v1468_v26 = vadd.f32 %v4744_v25, %v1467_v23  ;;  %v2108_v27 = vadd.f32 %v4744_v25, %v2107_v24 }
 0x153   : > { %v2611_v28 = vmax.f32 %v1473_v21, 0.0  ;;  %v2739_v29 = vmax.f32 %v2113_v22, 0.0 }
 0x154   : > { %v2610_v30 = vmax.f32 %v1468_v26, 0.0  ;;  %v2738_v31 = vmax.f32 %v2108_v27, 0.0  ;;  %v3746_v32 = vpop.f32.mrb[36].mxu0  ;;  %v3938_v33 = vpop.f32.mrb[36].mxu1 }
 0x155   : > { %2868 = vst.msk [vmem:[%s4759_s8 + $0x118] sm:$0xff] %vm2832_vm4, %v2611_v28  ;;  %2996 = vst.msk [vmem:[%s4759_s8 + $0x518] sm:$0xff] %vm2832_vm4, %v2739_v29  ;;  %v1483_v34 = vadd.f32 %v3746_v32, %v4744_v25  ;;  %v2123_v35 = vadd.f32 %v3938_v33, %v4744_v25  ;;  %v1477_v36 = vpop.f32.mrb[37].mxu0  ;;  %v2117_v37 = vpop.f32.mrb[37].mxu1 }
 0x156   : > { %2867 = vst.msk [vmem:[%s4759_s8 + $0x110] sm:$0xff] %vm2832_vm4, %v2610_v30  ;;  %2995 = vst.msk [vmem:[%s4759_s8 + $0x510] sm:$0xff] %vm2832_vm4, %v2738_v31  ;;  %v1478_v38 = vadd.f32 %v4744_v25, %v1477_v36  ;;  %v2118_v39 = vadd.f32 %v4744_v25, %v2117_v37 }
 0x157   : > { %v2613_v40 = vmax.f32 %v1483_v34, 0.0  ;;  %v2741_v41 = vmax.f32 %v2123_v35, 0.0 }
 0x158   : > { %v2612_v42 = vmax.f32 %v1478_v38, 0.0  ;;  %v2740_v43 = vmax.f32 %v2118_v39, 0.0  ;;  %v3749_v44 = vpop.f32.mrb[38].mxu0  ;;  %v3941_v45 = vpop.f32.mrb[38].mxu1 }
 0x159   : > { %2870 = vst.msk [vmem:[%s4759_s8 + $0x128] sm:$0xff] %vm2832_vm4, %v2613_v40  ;;  %2998 = vst.msk [vmem:[%s4759_s8 + $0x528] sm:$0xff] %vm2832_vm4, %v2741_v41  ;;  %v1493_v46 = vadd.f32 %v3749_v44, %v4744_v25  ;;  %v2133_v47 = vadd.f32 %v3941_v45, %v4744_v25  ;;  %v1487_v48 = vpop.f32.mrb[39].mxu0  ;;  %v2127_v49 = vpop.f32.mrb[39].mxu1 }
 0x15a   : > { %2869 = vst.msk [vmem:[%s4759_s8 + $0x120] sm:$0xff] %vm2832_vm4, %v2612_v42  ;;  %2997 = vst.msk [vmem:[%s4759_s8 + $0x520] sm:$0xff] %vm2832_vm4, %v2740_v43  ;;  %v1488_v50 = vadd.f32 %v4744_v25, %v1487_v48  ;;  %v2128_v51 = vadd.f32 %v4744_v25, %v2127_v49 }
 0x15b   : > { %v2615_v52 = vmax.f32 %v1493_v46, 0.0  ;;  %v2743_v53 = vmax.f32 %v2133_v47, 0.0 }
 0x15c   : > { %v2614_v54 = vmax.f32 %v1488_v50, 0.0  ;;  %v2742_v55 = vmax.f32 %v2128_v51, 0.0  ;;  %v3752_v56 = vpop.f32.mrb[40].mxu0  ;;  %v3944_v57 = vpop.f32.mrb[40].mxu1 }
 0x15d   : > { %2872 = vst.msk [vmem:[%s4759_s8 + $0x138] sm:$0xff] %vm2832_vm4, %v2615_v52  ;;  %3000 = vst.msk [vmem:[%s4759_s8 + $0x538] sm:$0xff] %vm2832_vm4, %v2743_v53  ;;  %v1503_v58 = vadd.f32 %v3752_v56, %v4744_v25  ;;  %v2143_v59 = vadd.f32 %v3944_v57, %v4744_v25  ;;  %v1497_v60 = vpop.f32.mrb[41].mxu0  ;;  %v2137_v61 = vpop.f32.mrb[41].mxu1 }
 0x15e   : > { %2871 = vst.msk [vmem:[%s4759_s8 + $0x130] sm:$0xff] %vm2832_vm4, %v2614_v54  ;;  %2999 = vst.msk [vmem:[%s4759_s8 + $0x530] sm:$0xff] %vm2832_vm4, %v2742_v55  ;;  %v1498_v62 = vadd.f32 %v4744_v25, %v1497_v60  ;;  %v2138_v63 = vadd.f32 %v4744_v25, %v2137_v61 }
 0x15f   : > { %v2617_v0 = vmax.f32 %v1503_v58, 0.0  ;;  %v2745_v1 = vmax.f32 %v2143_v59, 0.0 }
 0x160   : > { %v2616_v2 = vmax.f32 %v1498_v62, 0.0  ;;  %v2744_v3 = vmax.f32 %v2138_v63, 0.0  ;;  %v3755_v4 = vpop.f32.mrb[42].mxu0  ;;  %v3947_v5 = vpop.f32.mrb[42].mxu1 }
 0x161   : > { %2874 = vst.msk [vmem:[%s4759_s8 + $0x148] sm:$0xff] %vm2832_vm4, %v2617_v0  ;;  %3002 = vst.msk [vmem:[%s4759_s8 + $0x548] sm:$0xff] %vm2832_vm4, %v2745_v1  ;;  %v1513_v6 = vadd.f32 %v3755_v4, %v4744_v25  ;;  %v2153_v7 = vadd.f32 %v3947_v5, %v4744_v25  ;;  %v1507_v8 = vpop.f32.mrb[43].mxu0  ;;  %v2147_v9 = vpop.f32.mrb[43].mxu1 }
 0x162   : > { %2873 = vst.msk [vmem:[%s4759_s8 + $0x140] sm:$0xff] %vm2832_vm4, %v2616_v2  ;;  %3001 = vst.msk [vmem:[%s4759_s8 + $0x540] sm:$0xff] %vm2832_vm4, %v2744_v3  ;;  %v1508_v10 = vadd.f32 %v4744_v25, %v1507_v8  ;;  %v2148_v11 = vadd.f32 %v4744_v25, %v2147_v9 }
 0x163   : > { %v2619_v12 = vmax.f32 %v1513_v6, 0.0  ;;  %v2747_v13 = vmax.f32 %v2153_v7, 0.0  ;;  %v5154_v7 = vld [vmem:[%s5630_s2] ss:$0 sm:$0xff] }
 0x164   : > { %v2618_v14 = vmax.f32 %v1508_v10, 0.0  ;;  %v2746_v15 = vmax.f32 %v2148_v11, 0.0  ;;  %v3758_v16 = vpop.f32.mrb[44].mxu0  ;;  %v3950_v17 = vpop.f32.mrb[44].mxu1 }
 0x165   : > { %2876 = vst.msk [vmem:[%s4759_s8 + $0x158] sm:$0xff] %vm2832_vm4, %v2619_v12  ;;  %3004 = vst.msk [vmem:[%s4759_s8 + $0x558] sm:$0xff] %vm2832_vm4, %v2747_v13  ;;  %v1523_v18 = vadd.f32 %v3758_v16, %v4744_v25  ;;  %v2163_v19 = vadd.f32 %v3950_v17, %v4744_v25  ;;  %v1517_v20 = vpop.f32.mrb[45].mxu0  ;;  %v2157_v21 = vpop.f32.mrb[45].mxu1 }
 0x166   : > { %2875 = vst.msk [vmem:[%s4759_s8 + $0x150] sm:$0xff] %vm2832_vm4, %v2618_v14  ;;  %3003 = vst.msk [vmem:[%s4759_s8 + $0x550] sm:$0xff] %vm2832_vm4, %v2746_v15  ;;  %v1518_v22 = vadd.f32 %v4744_v25, %v1517_v20  ;;  %v2158_v23 = vadd.f32 %v4744_v25, %v2157_v21 }
 0x167   : > { %v2621_v24 = vmax.f32 %v1523_v18, 0.0  ;;  %v2749_v26 = vmax.f32 %v2163_v19, 0.0 }
 0x168   : > { %v2620_v27 = vmax.f32 %v1518_v22, 0.0  ;;  %v2748_v28 = vmax.f32 %v2158_v23, 0.0  ;;  %v3761_v29 = vpop.f32.mrb[46].mxu0  ;;  %v3953_v30 = vpop.f32.mrb[46].mxu1 }
 0x169   : > { %2878 = vst.msk [vmem:[%s4759_s8 + $0x168] sm:$0xff] %vm2832_vm4, %v2621_v24  ;;  %3006 = vst.msk [vmem:[%s4759_s8 + $0x568] sm:$0xff] %vm2832_vm4, %v2749_v26  ;;  %v1533_v31 = vadd.f32 %v3761_v29, %v4744_v25  ;;  %v2173_v32 = vadd.f32 %v3953_v30, %v4744_v25  ;;  %v1527_v33 = vpop.f32.mrb[47].mxu0  ;;  %v2167_v34 = vpop.f32.mrb[47].mxu1 }
 0x16a   : > { %2877 = vst.msk [vmem:[%s4759_s8 + $0x160] sm:$0xff] %vm2832_vm4, %v2620_v27  ;;  %3005 = vst.msk [vmem:[%s4759_s8 + $0x560] sm:$0xff] %vm2832_vm4, %v2748_v28  ;;  %v1528_v35 = vadd.f32 %v4744_v25, %v1527_v33  ;;  %v2168_v36 = vadd.f32 %v4744_v25, %v2167_v34 }
 0x16b   : > { %v2623_v37 = vmax.f32 %v1533_v31, 0.0  ;;  %v2751_v38 = vmax.f32 %v2173_v32, 0.0 }
 0x16c   : > { %v2622_v39 = vmax.f32 %v1528_v35, 0.0  ;;  %v2750_v40 = vmax.f32 %v2168_v36, 0.0  ;;  %v3764_v41 = vpop.f32.mrb[48].mxu0  ;;  %v3956_v42 = vpop.f32.mrb[48].mxu1 }
 0x16d   : > { %2880 = vst.msk [vmem:[%s4759_s8 + $0x178] sm:$0xff] %vm2832_vm4, %v2623_v37  ;;  %3008 = vst.msk [vmem:[%s4759_s8 + $0x578] sm:$0xff] %vm2832_vm4, %v2751_v38  ;;  %v1543_v43 = vadd.f32 %v3764_v41, %v4744_v25  ;;  %v2183_v44 = vadd.f32 %v3956_v42, %v4744_v25  ;;  %v1537_v45 = vpop.f32.mrb[49].mxu0  ;;  %v2177_v46 = vpop.f32.mrb[49].mxu1 }
 0x16e   : > { %2879 = vst.msk [vmem:[%s4759_s8 + $0x170] sm:$0xff] %vm2832_vm4, %v2622_v39  ;;  %3007 = vst.msk [vmem:[%s4759_s8 + $0x570] sm:$0xff] %vm2832_vm4, %v2750_v40  ;;  %v1538_v47 = vadd.f32 %v4744_v25, %v1537_v45  ;;  %v2178_v48 = vadd.f32 %v4744_v25, %v2177_v46 }
 0x16f   : > { %v2625_v49 = vmax.f32 %v1543_v43, 0.0  ;;  %v2753_v50 = vmax.f32 %v2183_v44, 0.0 }
 0x170   : > { %v2624_v51 = vmax.f32 %v1538_v47, 0.0  ;;  %v2752_v52 = vmax.f32 %v2178_v48, 0.0  ;;  %v3767_v53 = vpop.f32.mrb[50].mxu0  ;;  %v3959_v54 = vpop.f32.mrb[50].mxu1 }
 0x171   : > { %2882 = vst.msk [vmem:[%s4759_s8 + $0x188] sm:$0xff] %vm2832_vm4, %v2625_v49  ;;  %3010 = vst.msk [vmem:[%s4759_s8 + $0x588] sm:$0xff] %vm2832_vm4, %v2753_v50  ;;  %v1553_v55 = vadd.f32 %v3767_v53, %v4744_v25  ;;  %v2193_v56 = vadd.f32 %v3959_v54, %v4744_v25  ;;  %v1547_v57 = vpop.f32.mrb[51].mxu0  ;;  %v2187_v58 = vpop.f32.mrb[51].mxu1 }
 0x172   : > { %2881 = vst.msk [vmem:[%s4759_s8 + $0x180] sm:$0xff] %vm2832_vm4, %v2624_v51  ;;  %3009 = vst.msk [vmem:[%s4759_s8 + $0x580] sm:$0xff] %vm2832_vm4, %v2752_v52  ;;  %v1548_v59 = vadd.f32 %v4744_v25, %v1547_v57  ;;  %v2188_v60 = vadd.f32 %v4744_v25, %v2187_v58 }
 0x173   : > { %v2627_v61 = vmax.f32 %v1553_v55, 0.0  ;;  %v2755_v62 = vmax.f32 %v2193_v56, 0.0 }
 0x174   : > { %v2626_v63 = vmax.f32 %v1548_v59, 0.0  ;;  %v2754_v0 = vmax.f32 %v2188_v60, 0.0  ;;  %v3770_v1 = vpop.f32.mrb[52].mxu0  ;;  %v3962_v2 = vpop.f32.mrb[52].mxu1 }
 0x175   : > { %2884 = vst.msk [vmem:[%s4759_s8 + $0x198] sm:$0xff] %vm2832_vm4, %v2627_v61  ;;  %3012 = vst.msk [vmem:[%s4759_s8 + $0x598] sm:$0xff] %vm2832_vm4, %v2755_v62  ;;  %v1563_v3 = vadd.f32 %v3770_v1, %v4744_v25  ;;  %v2203_v4 = vadd.f32 %v3962_v2, %v4744_v25  ;;  %v1557_v5 = vpop.f32.mrb[53].mxu0  ;;  %v2197_v6 = vpop.f32.mrb[53].mxu1 }
 0x176   : > { %2883 = vst.msk [vmem:[%s4759_s8 + $0x190] sm:$0xff] %vm2832_vm4, %v2626_v63  ;;  %3011 = vst.msk [vmem:[%s4759_s8 + $0x590] sm:$0xff] %vm2832_vm4, %v2754_v0  ;;  %v1558_v8 = vadd.f32 %v5154_v7, %v1557_v5  ;;  %v2198_v9 = vadd.f32 %v5154_v7, %v2197_v6 }
 0x177   : > { %v2629_v10 = vmax.f32 %v1563_v3, 0.0  ;;  %v2757_v11 = vmax.f32 %v2203_v4, 0.0 }
 0x178   : > { %v2628_v25 = vmax.f32 %v1558_v8, 0.0  ;;  %v2756_v12 = vmax.f32 %v2198_v9, 0.0  ;;  %v3773_v13 = vpop.f32.mrb[54].mxu0  ;;  %v3965_v14 = vpop.f32.mrb[54].mxu1 }
 0x179   : > { %2886 = vst.msk [vmem:[%s4759_s8 + $0x1a8] sm:$0xff] %vm2832_vm4, %v2629_v10  ;;  %3014 = vst.msk [vmem:[%s4759_s8 + $0x5a8] sm:$0xff] %vm2832_vm4, %v2757_v11  ;;  %v1573_v15 = vadd.f32 %v5154_v7, %v3773_v13  ;;  %v2213_v16 = vadd.f32 %v5154_v7, %v3965_v14  ;;  %v1567_v17 = vpop.f32.mrb[55].mxu0  ;;  %v2207_v18 = vpop.f32.mrb[55].mxu1 }
 0x17a   : > { %2885 = vst.msk [vmem:[%s4759_s8 + $0x1a0] sm:$0xff] %vm2832_vm4, %v2628_v25  ;;  %3013 = vst.msk [vmem:[%s4759_s8 + $0x5a0] sm:$0xff] %vm2832_vm4, %v2756_v12  ;;  %v1568_v19 = vadd.f32 %v5154_v7, %v1567_v17  ;;  %v2208_v20 = vadd.f32 %v5154_v7, %v2207_v18 }
 0x17b   : > { %v2631_v21 = vmax.f32 %v1573_v15, 0.0  ;;  %v2759_v22 = vmax.f32 %v2213_v16, 0.0 }
 0x17c   : > { %v2630_v23 = vmax.f32 %v1568_v19, 0.0  ;;  %v2758_v24 = vmax.f32 %v2208_v20, 0.0  ;;  %v3776_v26 = vpop.f32.mrb[56].mxu0  ;;  %v3968_v27 = vpop.f32.mrb[56].mxu1 }
 0x17d   : > { %2888 = vst.msk [vmem:[%s4759_s8 + $0x1b8] sm:$0xff] %vm2832_vm4, %v2631_v21  ;;  %3016 = vst.msk [vmem:[%s4759_s8 + $0x5b8] sm:$0xff] %vm2832_vm4, %v2759_v22  ;;  %v1583_v28 = vadd.f32 %v5154_v7, %v3776_v26  ;;  %v2223_v29 = vadd.f32 %v5154_v7, %v3968_v27  ;;  %v1577_v30 = vpop.f32.mrb[57].mxu0  ;;  %v2217_v31 = vpop.f32.mrb[57].mxu1 }
 0x17e   : > { %2887 = vst.msk [vmem:[%s4759_s8 + $0x1b0] sm:$0xff] %vm2832_vm4, %v2630_v23  ;;  %3015 = vst.msk [vmem:[%s4759_s8 + $0x5b0] sm:$0xff] %vm2832_vm4, %v2758_v24  ;;  %v1578_v32 = vadd.f32 %v5154_v7, %v1577_v30  ;;  %v2218_v33 = vadd.f32 %v5154_v7, %v2217_v31 }
 0x17f   : > { %v2633_v34 = vmax.f32 %v1583_v28, 0.0  ;;  %v2761_v35 = vmax.f32 %v2223_v29, 0.0 }
 0x180   : > { %v2632_v36 = vmax.f32 %v1578_v32, 0.0  ;;  %v2760_v37 = vmax.f32 %v2218_v33, 0.0  ;;  %v3779_v38 = vpop.f32.mrb[58].mxu0  ;;  %v3971_v39 = vpop.f32.mrb[58].mxu1 }
 0x181   : > { %2890 = vst.msk [vmem:[%s4759_s8 + $0x1c8] sm:$0xff] %vm2832_vm4, %v2633_v34  ;;  %3018 = vst.msk [vmem:[%s4759_s8 + $0x5c8] sm:$0xff] %vm2832_vm4, %v2761_v35  ;;  %v1593_v40 = vadd.f32 %v5154_v7, %v3779_v38  ;;  %v2233_v41 = vadd.f32 %v5154_v7, %v3971_v39  ;;  %v1587_v42 = vpop.f32.mrb[59].mxu0  ;;  %v2227_v43 = vpop.f32.mrb[59].mxu1 }
 0x182   : > { %2889 = vst.msk [vmem:[%s4759_s8 + $0x1c0] sm:$0xff] %vm2832_vm4, %v2632_v36  ;;  %3017 = vst.msk [vmem:[%s4759_s8 + $0x5c0] sm:$0xff] %vm2832_vm4, %v2760_v37  ;;  %v1588_v44 = vadd.f32 %v5154_v7, %v1587_v42  ;;  %v2228_v45 = vadd.f32 %v5154_v7, %v2227_v43 }
 0x183   : > { %v2635_v46 = vmax.f32 %v1593_v40, 0.0  ;;  %v2763_v47 = vmax.f32 %v2233_v41, 0.0 }
 0x184   : > { %v2634_v48 = vmax.f32 %v1588_v44, 0.0  ;;  %v2762_v49 = vmax.f32 %v2228_v45, 0.0  ;;  %v3782_v50 = vpop.f32.mrb[60].mxu0  ;;  %v3974_v51 = vpop.f32.mrb[60].mxu1 }
 0x185   : > { %2892 = vst.msk [vmem:[%s4759_s8 + $0x1d8] sm:$0xff] %vm2832_vm4, %v2635_v46  ;;  %3020 = vst.msk [vmem:[%s4759_s8 + $0x5d8] sm:$0xff] %vm2832_vm4, %v2763_v47  ;;  %v1603_v52 = vadd.f32 %v5154_v7, %v3782_v50  ;;  %v2243_v53 = vadd.f32 %v5154_v7, %v3974_v51  ;;  %v1597_v54 = vpop.f32.mrb[61].mxu0  ;;  %v2237_v55 = vpop.f32.mrb[61].mxu1 }
 0x186   : > { %2891 = vst.msk [vmem:[%s4759_s8 + $0x1d0] sm:$0xff] %vm2832_vm4, %v2634_v48  ;;  %3019 = vst.msk [vmem:[%s4759_s8 + $0x5d0] sm:$0xff] %vm2832_vm4, %v2762_v49  ;;  %v1598_v56 = vadd.f32 %v5154_v7, %v1597_v54  ;;  %v2238_v57 = vadd.f32 %v5154_v7, %v2237_v55 }
 0x187   : > { %v2637_v58 = vmax.f32 %v1603_v52, 0.0  ;;  %v2765_v59 = vmax.f32 %v2243_v53, 0.0 }
 0x188   : > { %v2636_v60 = vmax.f32 %v1598_v56, 0.0  ;;  %v2764_v61 = vmax.f32 %v2238_v57, 0.0  ;;  %v3785_v62 = vpop.f32.mrb[62].mxu0  ;;  %v3977_v63 = vpop.f32.mrb[62].mxu1 }
 0x189   : > { %2894 = vst.msk [vmem:[%s4759_s8 + $0x1e8] sm:$0xff] %vm2832_vm4, %v2637_v58  ;;  %3022 = vst.msk [vmem:[%s4759_s8 + $0x5e8] sm:$0xff] %vm2832_vm4, %v2765_v59  ;;  %v1613_v0 = vadd.f32 %v5154_v7, %v3785_v62  ;;  %v2253_v1 = vadd.f32 %v5154_v7, %v3977_v63  ;;  %v1607_v2 = vpop.f32.mrb[63].mxu0  ;;  %v2247_v3 = vpop.f32.mrb[63].mxu1 }
 0x18a   : > { %2893 = vst.msk [vmem:[%s4759_s8 + $0x1e0] sm:$0xff] %vm2832_vm4, %v2636_v60  ;;  %3021 = vst.msk [vmem:[%s4759_s8 + $0x5e0] sm:$0xff] %vm2832_vm4, %v2764_v61  ;;  %v1608_v4 = vadd.f32 %v5154_v7, %v1607_v2  ;;  %v2248_v5 = vadd.f32 %v5154_v7, %v2247_v3 }
 0x18b   : > { %v2639_v6 = vmax.f32 %v1613_v0, 0.0  ;;  %v2767_v8 = vmax.f32 %v2253_v1, 0.0 }
 0x18c   : > { %v2638_v9 = vmax.f32 %v1608_v4, 0.0  ;;  %v2766_v10 = vmax.f32 %v2248_v5, 0.0  ;;  %v3788_v11 = vpop.f32.mrb[64].mxu0  ;;  %v3980_v25 = vpop.f32.mrb[64].mxu1 }
 0x18d   : > { %2896 = vst.msk [vmem:[%s4759_s8 + $0x1f8] sm:$0xff] %vm2832_vm4, %v2639_v6  ;;  %3024 = vst.msk [vmem:[%s4759_s8 + $0x5f8] sm:$0xff] %vm2832_vm4, %v2767_v8  ;;  %v1623_v12 = vadd.f32 %v5154_v7, %v3788_v11  ;;  %v2263_v13 = vadd.f32 %v5154_v7, %v3980_v25  ;;  %v1617_v14 = vpop.f32.mrb[65].mxu0  ;;  %v2257_v15 = vpop.f32.mrb[65].mxu1 }
 0x18e   : > { %2895 = vst.msk [vmem:[%s4759_s8 + $0x1f0] sm:$0xff] %vm2832_vm4, %v2638_v9  ;;  %3023 = vst.msk [vmem:[%s4759_s8 + $0x5f0] sm:$0xff] %vm2832_vm4, %v2766_v10  ;;  %v1618_v16 = vadd.f32 %v5154_v7, %v1617_v14  ;;  %v2258_v17 = vadd.f32 %v5154_v7, %v2257_v15 }
 0x18f   : > { %v2641_v18 = vmax.f32 %v1623_v12, 0.0  ;;  %v2769_v19 = vmax.f32 %v2263_v13, 0.0 }
 0x190   : > { %v2640_v20 = vmax.f32 %v1618_v16, 0.0  ;;  %v2768_v21 = vmax.f32 %v2258_v17, 0.0  ;;  %v3791_v22 = vpop.f32.mrb[66].mxu0  ;;  %v3983_v23 = vpop.f32.mrb[66].mxu1 }
 0x191   : > { %2898 = vst.msk [vmem:[%s4759_s8 + $0x208] sm:$0xff] %vm2832_vm4, %v2641_v18  ;;  %3026 = vst.msk [vmem:[%s4759_s8 + $0x608] sm:$0xff] %vm2832_vm4, %v2769_v19  ;;  %v1633_v24 = vadd.f32 %v5154_v7, %v3791_v22  ;;  %v2273_v26 = vadd.f32 %v5154_v7, %v3983_v23  ;;  %v1627_v27 = vpop.f32.mrb[67].mxu0  ;;  %v2267_v28 = vpop.f32.mrb[67].mxu1 }
 0x192   : > { %2897 = vst.msk [vmem:[%s4759_s8 + $0x200] sm:$0xff] %vm2832_vm4, %v2640_v20  ;;  %3025 = vst.msk [vmem:[%s4759_s8 + $0x600] sm:$0xff] %vm2832_vm4, %v2768_v21  ;;  %v1628_v29 = vadd.f32 %v5154_v7, %v1627_v27  ;;  %v2268_v30 = vadd.f32 %v5154_v7, %v2267_v28 }
 0x193   : > { %v2643_v31 = vmax.f32 %v1633_v24, 0.0  ;;  %v2771_v32 = vmax.f32 %v2273_v26, 0.0 }
 0x194   : > { %v2642_v33 = vmax.f32 %v1628_v29, 0.0  ;;  %v2770_v34 = vmax.f32 %v2268_v30, 0.0  ;;  %v3794_v35 = vpop.f32.mrb[68].mxu0  ;;  %v3986_v36 = vpop.f32.mrb[68].mxu1 }
 0x195   : > { %2900 = vst.msk [vmem:[%s4759_s8 + $0x218] sm:$0xff] %vm2832_vm4, %v2643_v31  ;;  %3028 = vst.msk [vmem:[%s4759_s8 + $0x618] sm:$0xff] %vm2832_vm4, %v2771_v32  ;;  %v1643_v37 = vadd.f32 %v5154_v7, %v3794_v35  ;;  %v2283_v38 = vadd.f32 %v5154_v7, %v3986_v36  ;;  %v1637_v39 = vpop.f32.mrb[69].mxu0  ;;  %v2277_v40 = vpop.f32.mrb[69].mxu1 }
 0x196   : > { %2899 = vst.msk [vmem:[%s4759_s8 + $0x210] sm:$0xff] %vm2832_vm4, %v2642_v33  ;;  %3027 = vst.msk [vmem:[%s4759_s8 + $0x610] sm:$0xff] %vm2832_vm4, %v2770_v34  ;;  %v1638_v41 = vadd.f32 %v5154_v7, %v1637_v39  ;;  %v2278_v42 = vadd.f32 %v5154_v7, %v2277_v40 }
 0x197   : > { %v2645_v43 = vmax.f32 %v1643_v37, 0.0  ;;  %v2773_v44 = vmax.f32 %v2283_v38, 0.0 }
 0x198   : > { %v2644_v45 = vmax.f32 %v1638_v41, 0.0  ;;  %v2772_v46 = vmax.f32 %v2278_v42, 0.0  ;;  %v3797_v47 = vpop.f32.mrb[70].mxu0  ;;  %v3989_v48 = vpop.f32.mrb[70].mxu1 }
 0x199   : > { %2902 = vst.msk [vmem:[%s4759_s8 + $0x228] sm:$0xff] %vm2832_vm4, %v2645_v43  ;;  %3030 = vst.msk [vmem:[%s4759_s8 + $0x628] sm:$0xff] %vm2832_vm4, %v2773_v44  ;;  %v1653_v49 = vadd.f32 %v5154_v7, %v3797_v47  ;;  %v2293_v50 = vadd.f32 %v5154_v7, %v3989_v48  ;;  %v1647_v51 = vpop.f32.mrb[71].mxu0  ;;  %v2287_v52 = vpop.f32.mrb[71].mxu1 }
 0x19a   : > { %2901 = vst.msk [vmem:[%s4759_s8 + $0x220] sm:$0xff] %vm2832_vm4, %v2644_v45  ;;  %3029 = vst.msk [vmem:[%s4759_s8 + $0x620] sm:$0xff] %vm2832_vm4, %v2772_v46  ;;  %v1648_v53 = vadd.f32 %v5154_v7, %v1647_v51  ;;  %v2288_v54 = vadd.f32 %v5154_v7, %v2287_v52 }
 0x19b   : > { %v2647_v55 = vmax.f32 %v1653_v49, 0.0  ;;  %v2775_v56 = vmax.f32 %v2293_v50, 0.0 }
 0x19c   : > { %v2646_v57 = vmax.f32 %v1648_v53, 0.0  ;;  %v2774_v58 = vmax.f32 %v2288_v54, 0.0  ;;  %v3800_v59 = vpop.f32.mrb[72].mxu0  ;;  %v3992_v60 = vpop.f32.mrb[72].mxu1 }
 0x19d   : > { %2904 = vst.msk [vmem:[%s4759_s8 + $0x238] sm:$0xff] %vm2832_vm4, %v2647_v55  ;;  %3032 = vst.msk [vmem:[%s4759_s8 + $0x638] sm:$0xff] %vm2832_vm4, %v2775_v56  ;;  %v1663_v61 = vadd.f32 %v5154_v7, %v3800_v59  ;;  %v2303_v62 = vadd.f32 %v5154_v7, %v3992_v60  ;;  %v1657_v63 = vpop.f32.mrb[73].mxu0  ;;  %v2297_v0 = vpop.f32.mrb[73].mxu1 }
 0x19e   : > { %2903 = vst.msk [vmem:[%s4759_s8 + $0x230] sm:$0xff] %vm2832_vm4, %v2646_v57  ;;  %3031 = vst.msk [vmem:[%s4759_s8 + $0x630] sm:$0xff] %vm2832_vm4, %v2774_v58  ;;  %v1658_v1 = vadd.f32 %v5154_v7, %v1657_v63  ;;  %v2298_v2 = vadd.f32 %v5154_v7, %v2297_v0 }
 0x19f   : > { %v2649_v3 = vmax.f32 %v1663_v61, 0.0  ;;  %v2777_v4 = vmax.f32 %v2303_v62, 0.0 }
 0x1a0   : > { %v2648_v5 = vmax.f32 %v1658_v1, 0.0  ;;  %v2776_v6 = vmax.f32 %v2298_v2, 0.0  ;;  %v3803_v8 = vpop.f32.mrb[74].mxu0  ;;  %v3995_v9 = vpop.f32.mrb[74].mxu1 }
 0x1a1   : > { %2906 = vst.msk [vmem:[%s4759_s8 + $0x248] sm:$0xff] %vm2832_vm4, %v2649_v3  ;;  %3034 = vst.msk [vmem:[%s4759_s8 + $0x648] sm:$0xff] %vm2832_vm4, %v2777_v4  ;;  %v1673_v10 = vadd.f32 %v5154_v7, %v3803_v8  ;;  %v2313_v11 = vadd.f32 %v5154_v7, %v3995_v9  ;;  %v1667_v25 = vpop.f32.mrb[75].mxu0  ;;  %v2307_v12 = vpop.f32.mrb[75].mxu1 }
 0x1a2   : > { %2905 = vst.msk [vmem:[%s4759_s8 + $0x240] sm:$0xff] %vm2832_vm4, %v2648_v5  ;;  %3033 = vst.msk [vmem:[%s4759_s8 + $0x640] sm:$0xff] %vm2832_vm4, %v2776_v6  ;;  %v1668_v13 = vadd.f32 %v5154_v7, %v1667_v25  ;;  %v2308_v14 = vadd.f32 %v5154_v7, %v2307_v12 }
 0x1a3   : > { %v2651_v15 = vmax.f32 %v1673_v10, 0.0  ;;  %v2779_v16 = vmax.f32 %v2313_v11, 0.0 }
 0x1a4   : > { %v2650_v17 = vmax.f32 %v1668_v13, 0.0  ;;  %v2778_v18 = vmax.f32 %v2308_v14, 0.0  ;;  %v3806_v19 = vpop.f32.mrb[76].mxu0  ;;  %v3998_v20 = vpop.f32.mrb[76].mxu1 }
 0x1a5   : > { %2908 = vst.msk [vmem:[%s4759_s8 + $0x258] sm:$0xff] %vm2832_vm4, %v2651_v15  ;;  %3036 = vst.msk [vmem:[%s4759_s8 + $0x658] sm:$0xff] %vm2832_vm4, %v2779_v16  ;;  %v1683_v21 = vadd.f32 %v5154_v7, %v3806_v19  ;;  %v2323_v22 = vadd.f32 %v5154_v7, %v3998_v20  ;;  %v1677_v23 = vpop.f32.mrb[77].mxu0  ;;  %v2317_v24 = vpop.f32.mrb[77].mxu1 }
 0x1a6   : > { %2907 = vst.msk [vmem:[%s4759_s8 + $0x250] sm:$0xff] %vm2832_vm4, %v2650_v17  ;;  %3035 = vst.msk [vmem:[%s4759_s8 + $0x650] sm:$0xff] %vm2832_vm4, %v2778_v18  ;;  %v1678_v26 = vadd.f32 %v5154_v7, %v1677_v23  ;;  %v2318_v27 = vadd.f32 %v5154_v7, %v2317_v24 }
 0x1a7   : > { %v2653_v28 = vmax.f32 %v1683_v21, 0.0  ;;  %v2781_v29 = vmax.f32 %v2323_v22, 0.0 }
 0x1a8   : > { %v2652_v30 = vmax.f32 %v1678_v26, 0.0  ;;  %v2780_v31 = vmax.f32 %v2318_v27, 0.0  ;;  %v3809_v32 = vpop.f32.mrb[78].mxu0  ;;  %v4001_v33 = vpop.f32.mrb[78].mxu1 }
 0x1a9   : > { %2910 = vst.msk [vmem:[%s4759_s8 + $0x268] sm:$0xff] %vm2832_vm4, %v2653_v28  ;;  %3038 = vst.msk [vmem:[%s4759_s8 + $0x668] sm:$0xff] %vm2832_vm4, %v2781_v29  ;;  %v1693_v34 = vadd.f32 %v5154_v7, %v3809_v32  ;;  %v2333_v35 = vadd.f32 %v5154_v7, %v4001_v33  ;;  %v1687_v36 = vpop.f32.mrb[79].mxu0  ;;  %v2327_v37 = vpop.f32.mrb[79].mxu1 }
 0x1aa   : > { %2909 = vst.msk [vmem:[%s4759_s8 + $0x260] sm:$0xff] %vm2832_vm4, %v2652_v30  ;;  %3037 = vst.msk [vmem:[%s4759_s8 + $0x660] sm:$0xff] %vm2832_vm4, %v2780_v31  ;;  %v1688_v38 = vadd.f32 %v5154_v7, %v1687_v36  ;;  %v2328_v39 = vadd.f32 %v5154_v7, %v2327_v37 }
 0x1ab   : > { %v2655_v40 = vmax.f32 %v1693_v34, 0.0  ;;  %v2783_v41 = vmax.f32 %v2333_v35, 0.0 }
 0x1ac   : > { %v2654_v42 = vmax.f32 %v1688_v38, 0.0  ;;  %v2782_v43 = vmax.f32 %v2328_v39, 0.0  ;;  %v3812_v44 = vpop.f32.mrb[80].mxu0  ;;  %v4004_v45 = vpop.f32.mrb[80].mxu1 }
 0x1ad   : > { %2912 = vst.msk [vmem:[%s4759_s8 + $0x278] sm:$0xff] %vm2832_vm4, %v2655_v40  ;;  %3040 = vst.msk [vmem:[%s4759_s8 + $0x678] sm:$0xff] %vm2832_vm4, %v2783_v41  ;;  %v1703_v46 = vadd.f32 %v5154_v7, %v3812_v44  ;;  %v2343_v47 = vadd.f32 %v5154_v7, %v4004_v45  ;;  %v1697_v48 = vpop.f32.mrb[81].mxu0  ;;  %v2337_v49 = vpop.f32.mrb[81].mxu1 }
 0x1ae   : > { %2911 = vst.msk [vmem:[%s4759_s8 + $0x270] sm:$0xff] %vm2832_vm4, %v2654_v42  ;;  %3039 = vst.msk [vmem:[%s4759_s8 + $0x670] sm:$0xff] %vm2832_vm4, %v2782_v43  ;;  %v1698_v50 = vadd.f32 %v5154_v7, %v1697_v48  ;;  %v2338_v51 = vadd.f32 %v5154_v7, %v2337_v49 }
 0x1af   : > { %v2657_v52 = vmax.f32 %v1703_v46, 0.0  ;;  %v2785_v53 = vmax.f32 %v2343_v47, 0.0 }
 0x1b0   : > { %v2656_v54 = vmax.f32 %v1698_v50, 0.0  ;;  %v2784_v55 = vmax.f32 %v2338_v51, 0.0  ;;  %v3815_v56 = vpop.f32.mrb[82].mxu0  ;;  %v4007_v57 = vpop.f32.mrb[82].mxu1 }
 0x1b1   : > { %2914 = vst.msk [vmem:[%s4759_s8 + $0x288] sm:$0xff] %vm2832_vm4, %v2657_v52  ;;  %3042 = vst.msk [vmem:[%s4759_s8 + $0x688] sm:$0xff] %vm2832_vm4, %v2785_v53  ;;  %v1713_v58 = vadd.f32 %v5154_v7, %v3815_v56  ;;  %v2353_v59 = vadd.f32 %v5154_v7, %v4007_v57  ;;  %v1707_v60 = vpop.f32.mrb[83].mxu0  ;;  %v2347_v61 = vpop.f32.mrb[83].mxu1 }
 0x1b2   : > { %2913 = vst.msk [vmem:[%s4759_s8 + $0x280] sm:$0xff] %vm2832_vm4, %v2656_v54  ;;  %3041 = vst.msk [vmem:[%s4759_s8 + $0x680] sm:$0xff] %vm2832_vm4, %v2784_v55  ;;  %v1708_v62 = vadd.f32 %v5154_v7, %v1707_v60  ;;  %v2348_v63 = vadd.f32 %v5154_v7, %v2347_v61 }
 0x1b3   : > { %v2659_v0 = vmax.f32 %v1713_v58, 0.0  ;;  %v2787_v1 = vmax.f32 %v2353_v59, 0.0 }
 0x1b4   : > { %v2658_v2 = vmax.f32 %v1708_v62, 0.0  ;;  %v2786_v3 = vmax.f32 %v2348_v63, 0.0  ;;  %v3818_v4 = vpop.f32.mrb[84].mxu0  ;;  %v4010_v5 = vpop.f32.mrb[84].mxu1 }
 0x1b5   : > { %2916 = vst.msk [vmem:[%s4759_s8 + $0x298] sm:$0xff] %vm2832_vm4, %v2659_v0  ;;  %3044 = vst.msk [vmem:[%s4759_s8 + $0x698] sm:$0xff] %vm2832_vm4, %v2787_v1  ;;  %v1723_v6 = vadd.f32 %v5154_v7, %v3818_v4  ;;  %v2363_v8 = vadd.f32 %v5154_v7, %v4010_v5  ;;  %v1717_v9 = vpop.f32.mrb[85].mxu0  ;;  %v2357_v10 = vpop.f32.mrb[85].mxu1 }
 0x1b6   : > { %2915 = vst.msk [vmem:[%s4759_s8 + $0x290] sm:$0xff] %vm2832_vm4, %v2658_v2  ;;  %3043 = vst.msk [vmem:[%s4759_s8 + $0x690] sm:$0xff] %vm2832_vm4, %v2786_v3  ;;  %v1718_v11 = vadd.f32 %v5154_v7, %v1717_v9  ;;  %v2358_v25 = vadd.f32 %v5154_v7, %v2357_v10 }
 0x1b7   : > { %v2661_v12 = vmax.f32 %v1723_v6, 0.0  ;;  %v2789_v13 = vmax.f32 %v2363_v8, 0.0 }
 0x1b8   : > { %v2660_v14 = vmax.f32 %v1718_v11, 0.0  ;;  %v2788_v15 = vmax.f32 %v2358_v25, 0.0  ;;  %v3821_v16 = vpop.f32.mrb[86].mxu0  ;;  %v4013_v17 = vpop.f32.mrb[86].mxu1 }
 0x1b9   : > { %2918 = vst.msk [vmem:[%s4759_s8 + $0x2a8] sm:$0xff] %vm2832_vm4, %v2661_v12  ;;  %3046 = vst.msk [vmem:[%s4759_s8 + $0x6a8] sm:$0xff] %vm2832_vm4, %v2789_v13  ;;  %v1733_v18 = vadd.f32 %v5154_v7, %v3821_v16  ;;  %v2373_v19 = vadd.f32 %v5154_v7, %v4013_v17  ;;  %v1727_v20 = vpop.f32.mrb[87].mxu0  ;;  %v2367_v21 = vpop.f32.mrb[87].mxu1 }
 0x1ba   : > { %2917 = vst.msk [vmem:[%s4759_s8 + $0x2a0] sm:$0xff] %vm2832_vm4, %v2660_v14  ;;  %3045 = vst.msk [vmem:[%s4759_s8 + $0x6a0] sm:$0xff] %vm2832_vm4, %v2788_v15  ;;  %v1728_v22 = vadd.f32 %v5154_v7, %v1727_v20  ;;  %v2368_v23 = vadd.f32 %v5154_v7, %v2367_v21 }
 0x1bb   : > { %v2663_v24 = vmax.f32 %v1733_v18, 0.0  ;;  %v2791_v26 = vmax.f32 %v2373_v19, 0.0 }
 0x1bc   : > { %v2662_v27 = vmax.f32 %v1728_v22, 0.0  ;;  %v2790_v28 = vmax.f32 %v2368_v23, 0.0  ;;  %v3824_v29 = vpop.f32.mrb[88].mxu0  ;;  %v4016_v30 = vpop.f32.mrb[88].mxu1 }
 0x1bd   : > { %2920 = vst.msk [vmem:[%s4759_s8 + $0x2b8] sm:$0xff] %vm2832_vm4, %v2663_v24  ;;  %3048 = vst.msk [vmem:[%s4759_s8 + $0x6b8] sm:$0xff] %vm2832_vm4, %v2791_v26  ;;  %v1743_v31 = vadd.f32 %v5154_v7, %v3824_v29  ;;  %v2383_v32 = vadd.f32 %v5154_v7, %v4016_v30  ;;  %v1737_v33 = vpop.f32.mrb[89].mxu0  ;;  %v2377_v34 = vpop.f32.mrb[89].mxu1 }
 0x1be   : > { %2919 = vst.msk [vmem:[%s4759_s8 + $0x2b0] sm:$0xff] %vm2832_vm4, %v2662_v27  ;;  %3047 = vst.msk [vmem:[%s4759_s8 + $0x6b0] sm:$0xff] %vm2832_vm4, %v2790_v28  ;;  %v1738_v35 = vadd.f32 %v5154_v7, %v1737_v33  ;;  %v2378_v36 = vadd.f32 %v5154_v7, %v2377_v34 }
 0x1bf   : > { %v2665_v37 = vmax.f32 %v1743_v31, 0.0  ;;  %v2793_v38 = vmax.f32 %v2383_v32, 0.0 }
 0x1c0   : > { %v2664_v39 = vmax.f32 %v1738_v35, 0.0  ;;  %v2792_v40 = vmax.f32 %v2378_v36, 0.0  ;;  %v3827_v41 = vpop.f32.mrb[90].mxu0  ;;  %v4019_v42 = vpop.f32.mrb[90].mxu1 }
 0x1c1   : > { %2922 = vst.msk [vmem:[%s4759_s8 + $0x2c8] sm:$0xff] %vm2832_vm4, %v2665_v37  ;;  %3050 = vst.msk [vmem:[%s4759_s8 + $0x6c8] sm:$0xff] %vm2832_vm4, %v2793_v38  ;;  %v1753_v43 = vadd.f32 %v5154_v7, %v3827_v41  ;;  %v2393_v44 = vadd.f32 %v5154_v7, %v4019_v42  ;;  %v1747_v45 = vpop.f32.mrb[91].mxu0  ;;  %v2387_v46 = vpop.f32.mrb[91].mxu1 }
 0x1c2   : > { %2921 = vst.msk [vmem:[%s4759_s8 + $0x2c0] sm:$0xff] %vm2832_vm4, %v2664_v39  ;;  %3049 = vst.msk [vmem:[%s4759_s8 + $0x6c0] sm:$0xff] %vm2832_vm4, %v2792_v40  ;;  %v1748_v47 = vadd.f32 %v5154_v7, %v1747_v45  ;;  %v2388_v48 = vadd.f32 %v5154_v7, %v2387_v46 }
 0x1c3   : > { %v2667_v49 = vmax.f32 %v1753_v43, 0.0  ;;  %v2795_v50 = vmax.f32 %v2393_v44, 0.0 }
 0x1c4   : > { %v2666_v51 = vmax.f32 %v1748_v47, 0.0  ;;  %v2794_v52 = vmax.f32 %v2388_v48, 0.0  ;;  %v3830_v53 = vpop.f32.mrb[92].mxu0  ;;  %v4022_v54 = vpop.f32.mrb[92].mxu1 }
 0x1c5   : > { %2924 = vst.msk [vmem:[%s4759_s8 + $0x2d8] sm:$0xff] %vm2832_vm4, %v2667_v49  ;;  %3052 = vst.msk [vmem:[%s4759_s8 + $0x6d8] sm:$0xff] %vm2832_vm4, %v2795_v50  ;;  %v1763_v55 = vadd.f32 %v5154_v7, %v3830_v53  ;;  %v2403_v56 = vadd.f32 %v5154_v7, %v4022_v54  ;;  %v1757_v57 = vpop.f32.mrb[93].mxu0  ;;  %v2397_v58 = vpop.f32.mrb[93].mxu1 }
 0x1c6   : > { %2923 = vst.msk [vmem:[%s4759_s8 + $0x2d0] sm:$0xff] %vm2832_vm4, %v2666_v51  ;;  %3051 = vst.msk [vmem:[%s4759_s8 + $0x6d0] sm:$0xff] %vm2832_vm4, %v2794_v52  ;;  %v1758_v59 = vadd.f32 %v5154_v7, %v1757_v57  ;;  %v2398_v60 = vadd.f32 %v5154_v7, %v2397_v58 }
 0x1c7   : > { %v2669_v61 = vmax.f32 %v1763_v55, 0.0  ;;  %v2797_v62 = vmax.f32 %v2403_v56, 0.0 }
 0x1c8   : > { %v2668_v63 = vmax.f32 %v1758_v59, 0.0  ;;  %v2796_v0 = vmax.f32 %v2398_v60, 0.0  ;;  %v3833_v1 = vpop.f32.mrb[94].mxu0  ;;  %v4025_v2 = vpop.f32.mrb[94].mxu1 }
 0x1c9   : > { %2926 = vst.msk [vmem:[%s4759_s8 + $0x2e8] sm:$0xff] %vm2832_vm4, %v2669_v61  ;;  %3054 = vst.msk [vmem:[%s4759_s8 + $0x6e8] sm:$0xff] %vm2832_vm4, %v2797_v62  ;;  %v1773_v3 = vadd.f32 %v5154_v7, %v3833_v1  ;;  %v2413_v4 = vadd.f32 %v5154_v7, %v4025_v2  ;;  %v1767_v5 = vpop.f32.mrb[95].mxu0  ;;  %v2407_v6 = vpop.f32.mrb[95].mxu1 }
 0x1ca   : > { %2925 = vst.msk [vmem:[%s4759_s8 + $0x2e0] sm:$0xff] %vm2832_vm4, %v2668_v63  ;;  %3053 = vst.msk [vmem:[%s4759_s8 + $0x6e0] sm:$0xff] %vm2832_vm4, %v2796_v0  ;;  %v1768_v8 = vadd.f32 %v5154_v7, %v1767_v5  ;;  %v2408_v9 = vadd.f32 %v5154_v7, %v2407_v6 }
 0x1cb   : > { %v2671_v10 = vmax.f32 %v1773_v3, 0.0  ;;  %v2799_v11 = vmax.f32 %v2413_v4, 0.0 }
 0x1cc   : > { %v2670_v25 = vmax.f32 %v1768_v8, 0.0  ;;  %v2798_v12 = vmax.f32 %v2408_v9, 0.0  ;;  %v3836_v13 = vpop.f32.mrb[96].mxu0  ;;  %v4028_v14 = vpop.f32.mrb[96].mxu1 }
 0x1cd   : > { %2928 = vst.msk [vmem:[%s4759_s8 + $0x2f8] sm:$0xff] %vm2832_vm4, %v2671_v10  ;;  %3056 = vst.msk [vmem:[%s4759_s8 + $0x6f8] sm:$0xff] %vm2832_vm4, %v2799_v11  ;;  %v1783_v15 = vadd.f32 %v5154_v7, %v3836_v13  ;;  %v2423_v16 = vadd.f32 %v5154_v7, %v4028_v14  ;;  %v1777_v17 = vpop.f32.mrb[97].mxu0  ;;  %v2417_v18 = vpop.f32.mrb[97].mxu1 }
 0x1ce   : > { %2927 = vst.msk [vmem:[%s4759_s8 + $0x2f0] sm:$0xff] %vm2832_vm4, %v2670_v25  ;;  %3055 = vst.msk [vmem:[%s4759_s8 + $0x6f0] sm:$0xff] %vm2832_vm4, %v2798_v12  ;;  %v1778_v19 = vadd.f32 %v5154_v7, %v1777_v17  ;;  %v2418_v20 = vadd.f32 %v5154_v7, %v2417_v18 }
 0x1cf   : > { %v2673_v21 = vmax.f32 %v1783_v15, 0.0  ;;  %v2801_v22 = vmax.f32 %v2423_v16, 0.0 }
 0x1d0   : > { %v2672_v23 = vmax.f32 %v1778_v19, 0.0  ;;  %v2800_v24 = vmax.f32 %v2418_v20, 0.0  ;;  %v3839_v26 = vpop.f32.mrb[98].mxu0  ;;  %v4031_v27 = vpop.f32.mrb[98].mxu1 }
 0x1d1   : > { %2930 = vst.msk [vmem:[%s4759_s8 + $0x308] sm:$0xff] %vm2832_vm4, %v2673_v21  ;;  %3058 = vst.msk [vmem:[%s4759_s8 + $0x708] sm:$0xff] %vm2832_vm4, %v2801_v22  ;;  %v1793_v28 = vadd.f32 %v5154_v7, %v3839_v26  ;;  %v2433_v29 = vadd.f32 %v5154_v7, %v4031_v27  ;;  %v1787_v30 = vpop.f32.mrb[99].mxu0  ;;  %v2427_v31 = vpop.f32.mrb[99].mxu1 }
 0x1d2   : > { %2929 = vst.msk [vmem:[%s4759_s8 + $0x300] sm:$0xff] %vm2832_vm4, %v2672_v23  ;;  %3057 = vst.msk [vmem:[%s4759_s8 + $0x700] sm:$0xff] %vm2832_vm4, %v2800_v24  ;;  %v1788_v32 = vadd.f32 %v5154_v7, %v1787_v30  ;;  %v2428_v33 = vadd.f32 %v5154_v7, %v2427_v31 }
 0x1d3   : > { %v2675_v34 = vmax.f32 %v1793_v28, 0.0  ;;  %v2803_v35 = vmax.f32 %v2433_v29, 0.0 }
 0x1d4   : > { %v2674_v36 = vmax.f32 %v1788_v32, 0.0  ;;  %v2802_v37 = vmax.f32 %v2428_v33, 0.0  ;;  %v3842_v38 = vpop.f32.mrb[100].mxu0  ;;  %v4034_v39 = vpop.f32.mrb[100].mxu1 }
 0x1d5   : > { %2932 = vst.msk [vmem:[%s4759_s8 + $0x318] sm:$0xff] %vm2832_vm4, %v2675_v34  ;;  %3060 = vst.msk [vmem:[%s4759_s8 + $0x718] sm:$0xff] %vm2832_vm4, %v2803_v35  ;;  %v1803_v40 = vadd.f32 %v5154_v7, %v3842_v38  ;;  %v2443_v41 = vadd.f32 %v5154_v7, %v4034_v39  ;;  %v1797_v42 = vpop.f32.mrb[101].mxu0  ;;  %v2437_v43 = vpop.f32.mrb[101].mxu1 }
 0x1d6   : > { %2931 = vst.msk [vmem:[%s4759_s8 + $0x310] sm:$0xff] %vm2832_vm4, %v2674_v36  ;;  %3059 = vst.msk [vmem:[%s4759_s8 + $0x710] sm:$0xff] %vm2832_vm4, %v2802_v37  ;;  %v1798_v44 = vadd.f32 %v5154_v7, %v1797_v42  ;;  %v2438_v45 = vadd.f32 %v5154_v7, %v2437_v43 }
 0x1d7   : > { %v2677_v46 = vmax.f32 %v1803_v40, 0.0  ;;  %v2805_v47 = vmax.f32 %v2443_v41, 0.0 }
 0x1d8   : > { %v2676_v48 = vmax.f32 %v1798_v44, 0.0  ;;  %v2804_v49 = vmax.f32 %v2438_v45, 0.0  ;;  %v3845_v50 = vpop.f32.mrb[102].mxu0  ;;  %v4037_v51 = vpop.f32.mrb[102].mxu1 }
 0x1d9   : > { %2934 = vst.msk [vmem:[%s4759_s8 + $0x328] sm:$0xff] %vm2832_vm4, %v2677_v46  ;;  %3062 = vst.msk [vmem:[%s4759_s8 + $0x728] sm:$0xff] %vm2832_vm4, %v2805_v47  ;;  %v1813_v52 = vadd.f32 %v5154_v7, %v3845_v50  ;;  %v2453_v53 = vadd.f32 %v5154_v7, %v4037_v51  ;;  %v1807_v54 = vpop.f32.mrb[103].mxu0  ;;  %v2447_v55 = vpop.f32.mrb[103].mxu1 }
 0x1da   : > { %2933 = vst.msk [vmem:[%s4759_s8 + $0x320] sm:$0xff] %vm2832_vm4, %v2676_v48  ;;  %3061 = vst.msk [vmem:[%s4759_s8 + $0x720] sm:$0xff] %vm2832_vm4, %v2804_v49  ;;  %v1808_v56 = vadd.f32 %v5154_v7, %v1807_v54  ;;  %v2448_v57 = vadd.f32 %v5154_v7, %v2447_v55 }
 0x1db   : > { %v2679_v58 = vmax.f32 %v1813_v52, 0.0  ;;  %v2807_v59 = vmax.f32 %v2453_v53, 0.0 }
 0x1dc   : > { %v2678_v60 = vmax.f32 %v1808_v56, 0.0  ;;  %v2806_v61 = vmax.f32 %v2448_v57, 0.0  ;;  %v3848_v62 = vpop.f32.mrb[104].mxu0  ;;  %v4040_v63 = vpop.f32.mrb[104].mxu1 }
 0x1dd   : > { %2936 = vst.msk [vmem:[%s4759_s8 + $0x338] sm:$0xff] %vm2832_vm4, %v2679_v58  ;;  %3064 = vst.msk [vmem:[%s4759_s8 + $0x738] sm:$0xff] %vm2832_vm4, %v2807_v59  ;;  %v1823_v0 = vadd.f32 %v5154_v7, %v3848_v62  ;;  %v2463_v1 = vadd.f32 %v5154_v7, %v4040_v63  ;;  %v1817_v2 = vpop.f32.mrb[105].mxu0  ;;  %v2457_v3 = vpop.f32.mrb[105].mxu1 }
 0x1de   : > { %2935 = vst.msk [vmem:[%s4759_s8 + $0x330] sm:$0xff] %vm2832_vm4, %v2678_v60  ;;  %3063 = vst.msk [vmem:[%s4759_s8 + $0x730] sm:$0xff] %vm2832_vm4, %v2806_v61  ;;  %v1818_v4 = vadd.f32 %v5154_v7, %v1817_v2  ;;  %v2458_v5 = vadd.f32 %v5154_v7, %v2457_v3 }
 0x1df   : > { %v2681_v6 = vmax.f32 %v1823_v0, 0.0  ;;  %v2809_v8 = vmax.f32 %v2463_v1, 0.0 }
 0x1e0   : > { %v2680_v9 = vmax.f32 %v1818_v4, 0.0  ;;  %v2808_v10 = vmax.f32 %v2458_v5, 0.0  ;;  %v3851_v11 = vpop.f32.mrb[106].mxu0  ;;  %v4043_v25 = vpop.f32.mrb[106].mxu1 }
 0x1e1   : > { %2938 = vst.msk [vmem:[%s4759_s8 + $0x348] sm:$0xff] %vm2832_vm4, %v2681_v6  ;;  %3066 = vst.msk [vmem:[%s4759_s8 + $0x748] sm:$0xff] %vm2832_vm4, %v2809_v8  ;;  %v1833_v12 = vadd.f32 %v5154_v7, %v3851_v11  ;;  %v2473_v13 = vadd.f32 %v5154_v7, %v4043_v25  ;;  %v1827_v14 = vpop.f32.mrb[107].mxu0  ;;  %v2467_v15 = vpop.f32.mrb[107].mxu1 }
 0x1e2   : > { %2937 = vst.msk [vmem:[%s4759_s8 + $0x340] sm:$0xff] %vm2832_vm4, %v2680_v9  ;;  %3065 = vst.msk [vmem:[%s4759_s8 + $0x740] sm:$0xff] %vm2832_vm4, %v2808_v10  ;;  %v1828_v16 = vadd.f32 %v5154_v7, %v1827_v14  ;;  %v2468_v17 = vadd.f32 %v5154_v7, %v2467_v15 }
 0x1e3   : > { %v2683_v18 = vmax.f32 %v1833_v12, 0.0  ;;  %v2811_v19 = vmax.f32 %v2473_v13, 0.0  ;;  %v5543_v13 = vld [vmem:[%s5630_s2] ss:$0 sm:$0xff] }
 0x1e4   : > { %v2682_v20 = vmax.f32 %v1828_v16, 0.0  ;;  %v2810_v21 = vmax.f32 %v2468_v17, 0.0  ;;  %v3854_v22 = vpop.f32.mrb[108].mxu0  ;;  %v4046_v23 = vpop.f32.mrb[108].mxu1 }
 0x1e5   : > { %2940 = vst.msk [vmem:[%s4759_s8 + $0x358] sm:$0xff] %vm2832_vm4, %v2683_v18  ;;  %3068 = vst.msk [vmem:[%s4759_s8 + $0x758] sm:$0xff] %vm2832_vm4, %v2811_v19  ;;  %v1843_v24 = vadd.f32 %v5154_v7, %v3854_v22  ;;  %v2483_v26 = vadd.f32 %v5154_v7, %v4046_v23  ;;  %v1837_v27 = vpop.f32.mrb[109].mxu0  ;;  %v2477_v28 = vpop.f32.mrb[109].mxu1 }
 0x1e6   : > { %2939 = vst.msk [vmem:[%s4759_s8 + $0x350] sm:$0xff] %vm2832_vm4, %v2682_v20  ;;  %3067 = vst.msk [vmem:[%s4759_s8 + $0x750] sm:$0xff] %vm2832_vm4, %v2810_v21  ;;  %v1838_v29 = vadd.f32 %v5154_v7, %v1837_v27  ;;  %v2478_v30 = vadd.f32 %v5154_v7, %v2477_v28 }
 0x1e7   : > { %v2685_v31 = vmax.f32 %v1843_v24, 0.0  ;;  %v2813_v32 = vmax.f32 %v2483_v26, 0.0 }
 0x1e8   : > { %v2684_v33 = vmax.f32 %v1838_v29, 0.0  ;;  %v2812_v34 = vmax.f32 %v2478_v30, 0.0  ;;  %v3857_v35 = vpop.f32.mrb[110].mxu0  ;;  %v4049_v36 = vpop.f32.mrb[110].mxu1 }
 0x1e9   : > { %2942 = vst.msk [vmem:[%s4759_s8 + $0x368] sm:$0xff] %vm2832_vm4, %v2685_v31  ;;  %3070 = vst.msk [vmem:[%s4759_s8 + $0x768] sm:$0xff] %vm2832_vm4, %v2813_v32  ;;  %v1853_v37 = vadd.f32 %v5154_v7, %v3857_v35  ;;  %v2493_v38 = vadd.f32 %v5154_v7, %v4049_v36  ;;  %v1847_v39 = vpop.f32.mrb[111].mxu0  ;;  %v2487_v40 = vpop.f32.mrb[111].mxu1 }
 0x1ea   : > { %2941 = vst.msk [vmem:[%s4759_s8 + $0x360] sm:$0xff] %vm2832_vm4, %v2684_v33  ;;  %3069 = vst.msk [vmem:[%s4759_s8 + $0x760] sm:$0xff] %vm2832_vm4, %v2812_v34  ;;  %v1848_v41 = vadd.f32 %v5154_v7, %v1847_v39  ;;  %v2488_v42 = vadd.f32 %v5154_v7, %v2487_v40 }
 0x1eb   : > { %v2687_v43 = vmax.f32 %v1853_v37, 0.0  ;;  %v2815_v44 = vmax.f32 %v2493_v38, 0.0 }
 0x1ec   : > { %v2686_v45 = vmax.f32 %v1848_v41, 0.0  ;;  %v2814_v46 = vmax.f32 %v2488_v42, 0.0  ;;  %v3860_v47 = vpop.f32.mrb[112].mxu0  ;;  %v4052_v48 = vpop.f32.mrb[112].mxu1 }
 0x1ed   : > { %2944 = vst.msk [vmem:[%s4759_s8 + $0x378] sm:$0xff] %vm2832_vm4, %v2687_v43  ;;  %3072 = vst.msk [vmem:[%s4759_s8 + $0x778] sm:$0xff] %vm2832_vm4, %v2815_v44  ;;  %v1863_v49 = vadd.f32 %v5154_v7, %v3860_v47  ;;  %v2503_v50 = vadd.f32 %v5154_v7, %v4052_v48  ;;  %v1857_v51 = vpop.f32.mrb[113].mxu0  ;;  %v2497_v52 = vpop.f32.mrb[113].mxu1 }
 0x1ee   : > { %2943 = vst.msk [vmem:[%s4759_s8 + $0x370] sm:$0xff] %vm2832_vm4, %v2686_v45  ;;  %3071 = vst.msk [vmem:[%s4759_s8 + $0x770] sm:$0xff] %vm2832_vm4, %v2814_v46  ;;  %v1858_v53 = vadd.f32 %v5154_v7, %v1857_v51  ;;  %v2498_v54 = vadd.f32 %v5154_v7, %v2497_v52 }
 0x1ef   : > { %v2689_v55 = vmax.f32 %v1863_v49, 0.0  ;;  %v2817_v56 = vmax.f32 %v2503_v50, 0.0 }
 0x1f0   : > { %v2688_v57 = vmax.f32 %v1858_v53, 0.0  ;;  %v2816_v58 = vmax.f32 %v2498_v54, 0.0  ;;  %v3863_v59 = vpop.f32.mrb[114].mxu0  ;;  %v4055_v60 = vpop.f32.mrb[114].mxu1 }
 0x1f1   : > { %2946 = vst.msk [vmem:[%s4759_s8 + $0x388] sm:$0xff] %vm2832_vm4, %v2689_v55  ;;  %3074 = vst.msk [vmem:[%s4759_s8 + $0x788] sm:$0xff] %vm2832_vm4, %v2817_v56  ;;  %v1873_v61 = vadd.f32 %v5154_v7, %v3863_v59  ;;  %v2513_v62 = vadd.f32 %v5154_v7, %v4055_v60  ;;  %v1867_v63 = vpop.f32.mrb[115].mxu0  ;;  %v2507_v0 = vpop.f32.mrb[115].mxu1 }
 0x1f2   : > { %2945 = vst.msk [vmem:[%s4759_s8 + $0x380] sm:$0xff] %vm2832_vm4, %v2688_v57  ;;  %3073 = vst.msk [vmem:[%s4759_s8 + $0x780] sm:$0xff] %vm2832_vm4, %v2816_v58  ;;  %v1868_v1 = vadd.f32 %v5154_v7, %v1867_v63  ;;  %v2508_v2 = vadd.f32 %v5154_v7, %v2507_v0 }
 0x1f3   : > { %v2691_v3 = vmax.f32 %v1873_v61, 0.0  ;;  %v2819_v4 = vmax.f32 %v2513_v62, 0.0 }
 0x1f4   : > { %v2690_v5 = vmax.f32 %v1868_v1, 0.0  ;;  %v2818_v6 = vmax.f32 %v2508_v2, 0.0  ;;  %v3866_v8 = vpop.f32.mrb[116].mxu0  ;;  %v4058_v9 = vpop.f32.mrb[116].mxu1 }
 0x1f5   : > { %2948 = vst.msk [vmem:[%s4759_s8 + $0x398] sm:$0xff] %vm2832_vm4, %v2691_v3  ;;  %3076 = vst.msk [vmem:[%s4759_s8 + $0x798] sm:$0xff] %vm2832_vm4, %v2819_v4  ;;  %v1883_v10 = vadd.f32 %v5154_v7, %v3866_v8  ;;  %v2523_v11 = vadd.f32 %v5154_v7, %v4058_v9  ;;  %v1877_v25 = vpop.f32.mrb[117].mxu0  ;;  %v2517_v12 = vpop.f32.mrb[117].mxu1 }
 0x1f6   : > { %2947 = vst.msk [vmem:[%s4759_s8 + $0x390] sm:$0xff] %vm2832_vm4, %v2690_v5  ;;  %3075 = vst.msk [vmem:[%s4759_s8 + $0x790] sm:$0xff] %vm2832_vm4, %v2818_v6  ;;  %v1878_v14 = vadd.f32 %v5543_v13, %v1877_v25  ;;  %v2518_v15 = vadd.f32 %v5543_v13, %v2517_v12 }
 0x1f7   : > { %v2693_v16 = vmax.f32 %v1883_v10, 0.0  ;;  %v2821_v17 = vmax.f32 %v2523_v11, 0.0 }
 0x1f8   : > { %v2692_v7 = vmax.f32 %v1878_v14, 0.0  ;;  %v2820_v18 = vmax.f32 %v2518_v15, 0.0  ;;  %v3869_v19 = vpop.f32.mrb[118].mxu0  ;;  %v4061_v20 = vpop.f32.mrb[118].mxu1 }
 0x1f9   : > { %2950 = vst.msk [vmem:[%s4759_s8 + $0x3a8] sm:$0xff] %vm2832_vm4, %v2693_v16  ;;  %3078 = vst.msk [vmem:[%s4759_s8 + $0x7a8] sm:$0xff] %vm2832_vm4, %v2821_v17  ;;  %v1893_v21 = vadd.f32 %v5543_v13, %v3869_v19  ;;  %v2533_v22 = vadd.f32 %v5543_v13, %v4061_v20  ;;  %v1887_v23 = vpop.f32.mrb[119].mxu0  ;;  %v2527_v24 = vpop.f32.mrb[119].mxu1 }
 0x1fa   : > { %2949 = vst.msk [vmem:[%s4759_s8 + $0x3a0] sm:$0xff] %vm2832_vm4, %v2692_v7  ;;  %3077 = vst.msk [vmem:[%s4759_s8 + $0x7a0] sm:$0xff] %vm2832_vm4, %v2820_v18  ;;  %v1888_v26 = vadd.f32 %v5543_v13, %v1887_v23  ;;  %v2528_v27 = vadd.f32 %v5543_v13, %v2527_v24 }
 0x1fb   : > { %v2695_v28 = vmax.f32 %v1893_v21, 0.0  ;;  %v2823_v29 = vmax.f32 %v2533_v22, 0.0 }
 0x1fc   : > { %v2694_v30 = vmax.f32 %v1888_v26, 0.0  ;;  %v2822_v31 = vmax.f32 %v2528_v27, 0.0  ;;  %v3872_v32 = vpop.f32.mrb[120].mxu0  ;;  %v4064_v33 = vpop.f32.mrb[120].mxu1 }
 0x1fd   : > { %2952 = vst.msk [vmem:[%s4759_s8 + $0x3b8] sm:$0xff] %vm2832_vm4, %v2695_v28  ;;  %3080 = vst.msk [vmem:[%s4759_s8 + $0x7b8] sm:$0xff] %vm2832_vm4, %v2823_v29  ;;  %v1903_v34 = vadd.f32 %v5543_v13, %v3872_v32  ;;  %v2543_v35 = vadd.f32 %v5543_v13, %v4064_v33  ;;  %v1897_v36 = vpop.f32.mrb[121].mxu0  ;;  %v2537_v37 = vpop.f32.mrb[121].mxu1 }
 0x1fe   : > { %2951 = vst.msk [vmem:[%s4759_s8 + $0x3b0] sm:$0xff] %vm2832_vm4, %v2694_v30  ;;  %3079 = vst.msk [vmem:[%s4759_s8 + $0x7b0] sm:$0xff] %vm2832_vm4, %v2822_v31  ;;  %v1898_v38 = vadd.f32 %v5543_v13, %v1897_v36  ;;  %v2538_v39 = vadd.f32 %v5543_v13, %v2537_v37 }
 0x1ff   : > { %v2697_v40 = vmax.f32 %v1903_v34, 0.0  ;;  %v2825_v41 = vmax.f32 %v2543_v35, 0.0 }
 0x200   : > { %v2696_v42 = vmax.f32 %v1898_v38, 0.0  ;;  %v2824_v43 = vmax.f32 %v2538_v39, 0.0  ;;  %v3875_v44 = vpop.f32.mrb[122].mxu0  ;;  %v4067_v45 = vpop.f32.mrb[122].mxu1 }
 0x201   : > { %2954 = vst.msk [vmem:[%s4759_s8 + $0x3c8] sm:$0xff] %vm2832_vm4, %v2697_v40  ;;  %3082 = vst.msk [vmem:[%s4759_s8 + $0x7c8] sm:$0xff] %vm2832_vm4, %v2825_v41  ;;  %v1913_v46 = vadd.f32 %v5543_v13, %v3875_v44  ;;  %v2553_v47 = vadd.f32 %v5543_v13, %v4067_v45  ;;  %v1907_v48 = vpop.f32.mrb[123].mxu0  ;;  %v2547_v49 = vpop.f32.mrb[123].mxu1 }
 0x202   : > { %2953 = vst.msk [vmem:[%s4759_s8 + $0x3c0] sm:$0xff] %vm2832_vm4, %v2696_v42  ;;  %3081 = vst.msk [vmem:[%s4759_s8 + $0x7c0] sm:$0xff] %vm2832_vm4, %v2824_v43  ;;  %v1908_v50 = vadd.f32 %v5543_v13, %v1907_v48  ;;  %v2548_v51 = vadd.f32 %v5543_v13, %v2547_v49 }
 0x203   : > { %v2699_v52 = vmax.f32 %v1913_v46, 0.0  ;;  %v2827_v53 = vmax.f32 %v2553_v47, 0.0 }
 0x204   : > { %v2698_v54 = vmax.f32 %v1908_v50, 0.0  ;;  %v2826_v55 = vmax.f32 %v2548_v51, 0.0  ;;  %v3878_v56 = vpop.f32.mrb[124].mxu0  ;;  %v4070_v57 = vpop.f32.mrb[124].mxu1 }
 0x205   : > { %2956 = vst.msk [vmem:[%s4759_s8 + $0x3d8] sm:$0xff] %vm2832_vm4, %v2699_v52  ;;  %3084 = vst.msk [vmem:[%s4759_s8 + $0x7d8] sm:$0xff] %vm2832_vm4, %v2827_v53  ;;  %v1923_v58 = vadd.f32 %v5543_v13, %v3878_v56  ;;  %v2563_v59 = vadd.f32 %v5543_v13, %v4070_v57  ;;  %v1917_v60 = vpop.f32.mrb[125].mxu0  ;;  %v2557_v61 = vpop.f32.mrb[125].mxu1 }
 0x206   : > { %2955 = vst.msk [vmem:[%s4759_s8 + $0x3d0] sm:$0xff] %vm2832_vm4, %v2698_v54  ;;  %3083 = vst.msk [vmem:[%s4759_s8 + $0x7d0] sm:$0xff] %vm2832_vm4, %v2826_v55  ;;  %v1918_v62 = vadd.f32 %v5543_v13, %v1917_v60  ;;  %v2558_v63 = vadd.f32 %v5543_v13, %v2557_v61 }
 0x207   : > { %v2701_v0 = vmax.f32 %v1923_v58, 0.0  ;;  %v2829_v1 = vmax.f32 %v2563_v59, 0.0 }
 0x208   : > { %v2700_v2 = vmax.f32 %v1918_v62, 0.0  ;;  %v2828_v3 = vmax.f32 %v2558_v63, 0.0  ;;  %v3881_v4 = vpop.f32.mrb[126].mxu0  ;;  %v4073_v5 = vpop.f32.mrb[126].mxu1 }
 0x209   : > { %2958 = vst.msk [vmem:[%s4759_s8 + $0x3e8] sm:$0xff] %vm2832_vm4, %v2701_v0  ;;  %3086 = vst.msk [vmem:[%s4759_s8 + $0x7e8] sm:$0xff] %vm2832_vm4, %v2829_v1  ;;  %v1933_v6 = vadd.f32 %v5543_v13, %v3881_v4  ;;  %v2573_v8 = vadd.f32 %v5543_v13, %v4073_v5  ;;  %v1927_v9 = vpop.f32.mrb[127].mxu0  ;;  %v2567_v10 = vpop.f32.mrb[127].mxu1 }
 0x20a   : > { %2957 = vst.msk [vmem:[%s4759_s8 + $0x3e0] sm:$0xff] %vm2832_vm4, %v2700_v2  ;;  %3085 = vst.msk [vmem:[%s4759_s8 + $0x7e0] sm:$0xff] %vm2832_vm4, %v2828_v3  ;;  %v1928_v11 = vadd.f32 %v5543_v13, %v1927_v9  ;;  %v2568_v25 = vadd.f32 %v5543_v13, %v2567_v10 }
 0x20b   : > { %v2703_v12 = vmax.f32 %v1933_v6, 0.0  ;;  %v2831_v14 = vmax.f32 %v2573_v8, 0.0 }
 0x20c   : > { %v2702_v15 = vmax.f32 %v1928_v11, 0.0  ;;  %v2830_v16 = vmax.f32 %v2568_v25, 0.0 }
 0x20d   : > { %2960 = vst.msk [vmem:[%s4759_s8 + $0x3f8] sm:$0xff] %vm2832_vm4, %v2703_v12  ;;  %3088 = vst.msk [vmem:[%s4759_s8 + $0x7f8] sm:$0xff] %vm2832_vm4, %v2831_v14 }
 0x20e   : > { %2959 = vst.msk [vmem:[%s4759_s8 + $0x3f0] sm:$0xff] %vm2832_vm4, %v2702_v15  ;;  %3087 = vst.msk [vmem:[%s4759_s8 + $0x7f0] sm:$0xff] %vm2832_vm4, %v2830_v16 }
 0x20f PF: > { %p13_p8 = scmp.ge.s32.totalorder %s4236_s17, 22   ;;  %s5635_s12 = smov %s4182_s13 }
 0x210   : > { %s5636_s13 = smov %s4186_s14  ;;  %s5637_s14 = smov %s4246_s20 }
 0x211   : > { %s5638_s15 = smov %s4236_s17  ;;  %15 = sbr.rel (!%p13_p8) target bundleno = 3 (0x3), region = 72 }
 0x218   :  { %3111 = vsyncpa [#allocation3], 1 }
 0x219   :  { %3113 = vsyncpa [#allocation3 + $0x1], 1 }

// kernel: dlean2net_forward.5
= control target key start
LH: loop header
LB: loop body
LE: loop exit
PB: predicated region body
PF: predicated region fallthrough
CT: control target
= control target key end

     0   :  { %s2136_s15 = smov 0   ;;  %s2544_s0 = inlined_call_operand.vmem [shape: f32[2,5056,48], index: 0, kind: input, shape index: {}]   ;;  %s2545_s1 = inlined_call_operand.vmem [shape: f32[2,5056,48], index: 1, kind: input, shape index: {}]   ;;  %s2546_s2 = inlined_call_operand.vmem [shape: f32[3,48,16], index: 2, kind: input, shape index: {}]   ;;  %s2547_s3 = inlined_call_operand.vmem [shape: f32[1,16], index: 3, kind: input, shape index: {}]   ;;  %s2548_s4 = inlined_call_operand.vmem [shape: f32[2,4977,16], index: 4, kind: output, shape index: {}]  }
   0x1 LB: > { %s1525_s16 = sadd.s32 4294967295, %s2105_s15   ;;  %p1529_p0 = scmp.ge.s32.totalorder %s2105_s15, 1  ;;  %s2105_s15 = sphi %s2136_s15, %s14_s15  }
   0x2   : > { %p172_p1 = scmp.lt.s32.totalorder %s2105_s15, 3 }
   0x4   : > { %p173_p2 = pnand %p1529_p0, %p172_p1 }
   0x5   : > { %p203_p3 = scmp.lt.s32.totalorder (!%p173_p2), %s1525_s16, 1  ;;  %v2147_v0 = vld [vmem:[%s2547_s3] ss:$0 sm:$0xff] (!%p173_p2)  ;;  %s2164_s30 = smov (!%p173_p2), 0  }
   0x6   : > { %176 = sbr.rel (%p173_p2) target bundleno = 346 (0x15a), region = 36 }
   0xd   : > { %s2550_s16 = smov (!%p203_p3, %s1525_s16), 1 }
   0xe   : > { %s2077_s19 = smul.u32 5056, %s2550_s16 }
   0xf   : > { %s2078_s20 = smul.u32 4984, %s2550_s16 }
  0x10   : > { %s2152_s23 = scalar_lea.vmem %s2544_s0, %s2077_s19  ;;  %s2157_s26 = scalar_lea.vmem %s2545_s1, %s2077_s19 }
  0x11   : > { %s2162_s29 = scalar_lea.vmem %s2548_s4, %s2078_s20 }
  0x12 LB: >> { %v1566_v1 = vld [vmem:[%s2546_s2 + $0x30] sm:$0xff]  ;;  %v1567_v2 = vld [vmem:[%s2546_s2 + $0x38] sm:$0xff]  ;;  %v328_v3 = vld [vmem:[%s2546_s2] sm:$0xff]  ;;  %s1533_s25 = sshll.u32 %s2109_s30, 8  ;;  %vm341_vm0 = vcmask 392192   ;;  %vm1415_vm1 = vcmask 130048   ;;  %s2109_s30 = sphi %s2164_s30, %s224_s30  }
  0x13   : >> { %v1971_v4 = vpack.c.bf16 %v1567_v2, %v1566_v1  ;;  %v329_v5 = vld [vmem:[%s2546_s2 + $0x8] sm:$0xff]  ;;  %v1568_v6 = vld [vmem:[%s2546_s2 + $0x40] sm:$0xff]  ;;  %v330_v10 = vld [vmem:[%s2546_s2 + $0x10] sm:$0xff]  ;;  %p226_p4 = scmp.lt.s32.totalorder %s1533_s25, 4721  ;;  %s224_s30 = sadd.s32 1, %s2109_s30  }
  0x14   : >> { %v1569_v7 = vld [vmem:[%s2546_s2 + $0x48] sm:$0xff]  ;;  %v1983_v8 = vpack.c.bf16 %v329_v5, %v328_v3  ;;  %v331_v11 = vld [vmem:[%s2546_s2 + $0x18] sm:$0xff]  ;;  %v1570_v12 = vld [vmem:[%s2546_s2 + $0x50] sm:$0xff]  ;;  %p221_p5 = scmp.ge.s32.totalorder %s224_s30, 20  }
  0x15   : >> { %v1975_v9 = vpack.c.bf16 %v1569_v7, %v1568_v6  ;;  %1972 = vmatprep.subr.bf16.mxu1 %v1971_v4  ;;  %v1987_v13 = vpack.c.bf16 %v331_v11, %v330_v10  ;;  %v1571_v14 = vld [vmem:[%s2546_s2 + $0x58] sm:$0xff]  ;;  %v332_v15 = vld [vmem:[%s2546_s2 + $0x20] sm:$0xff]  ;;  %v333_v16 = vld [vmem:[%s2546_s2 + $0x28] sm:$0xff]  ;;  %s2552_s25 = smov (!%p226_p4, %s1533_s25), 4721 }
  0x16   : >> { %1984 = vmatprep.subr.bf16.mxu0 %v1983_v8  ;;  %1974 = vmatpush3.bf16.msra.mxu1 %v1971_v4  ;;  %v1979_v17 = vpack.c.bf16 %v1571_v14, %v1570_v12  ;;  %v1991_v18 = vpack.c.bf16 %v333_v16, %v332_v15  ;;  %s2210_s9 = scalar_lea.vmem %s2152_s23, %s2552_s25  ;;  %s2214_s10 = scalar_lea.vmem %s2157_s26, %s2552_s25  ;;  %v1636_v19 = vld [vmem:[%s2546_s2 + $0x60] sm:$0xff]  ;;  %v1637_v20 = vld [vmem:[%s2546_s2 + $0x68] sm:$0xff]  ;;  %v1638_v24 = vld [vmem:[%s2546_s2 + $0x70] sm:$0xff] }
  0x17   : >> { %1986 = vmatpush3.bf16.msra.mxu0 %v1983_v8  ;;  %1976 = vmatprep.subr.bf16.mxu1 %v1975_v9  ;;  %v262_v21 = vld [vmem:[%s2214_s10] sm:$0xff]  ;;  %v1995_v23 = vpack.c.bf16 %v1637_v20, %v1636_v19  ;;  %v1639_v25 = vld [vmem:[%s2546_s2 + $0x78] sm:$0xff]  ;;  %v263_v26 = vld [vmem:[%s2214_s10 + $0x8] sm:$0xff]  ;;  %s2437_s27 = scalar_lea.vmem %s2162_s29, %s2552_s25 }
  0x18   : >> { %1988 = vmatprep.subr.bf16.mxu0 %v1987_v13  ;;  %v229_v22 = vld [vmem:[%s2210_s9] sm:$0xff]  ;;  %1803 = vmatprep.mubr.msk.f32.mxu1 %vm341_vm0, %v262_v21  ;;  %v230_v27 = vld [vmem:[%s2210_s9 + $0x8] sm:$0xff]  ;;  %v264_v28 = vld [vmem:[%s2214_s10 + $0x10] sm:$0xff]  ;;  %v1999_v29 = vpack.c.bf16 %v1639_v25, %v1638_v24 }
  0x19   : >> { %1863 = vmatprep.mubr.msk.f32.mxu0 %vm341_vm0, %v229_v22  ;;  %v231_v30 = vld [vmem:[%s2210_s9 + $0x10] sm:$0xff]  ;;  %v1640_v31 = vld [vmem:[%s2546_s2 + $0x80] sm:$0xff]  ;;  %v1641_v32 = vld [vmem:[%s2546_s2 + $0x88] sm:$0xff] }
  0x1a   : >> { %1978 = vmatpush3.bf16.msra.mxu1 %v1975_v9  ;;  %v265_v33 = vld [vmem:[%s2214_s10 + $0x18] sm:$0xff]  ;;  %v266_v35 = vld [vmem:[%s2214_s10 + $0x20] sm:$0xff]  ;;  %v2003_v37 = vpack.c.bf16 %v1641_v32, %v1640_v31  ;;  %v267_v38 = vld [vmem:[%s2214_s10 + $0x28] sm:$0xff] }
  0x1b   : >> { %1990 = vmatpush3.bf16.msra.mxu0 %v1987_v13  ;;  %1980 = vmatprep.subr.bf16.mxu1 %v1979_v17  ;;  %v232_v34 = vld [vmem:[%s2210_s9 + $0x18] sm:$0xff]  ;;  %v233_v36 = vld [vmem:[%s2210_s9 + $0x20] sm:$0xff]  ;;  %v234_v39 = vld [vmem:[%s2210_s9 + $0x28] sm:$0xff] }
  0x1c   : >> { %1992 = vmatprep.subr.bf16.mxu0 %v1991_v18  ;;  %v268_v40 = vld [vmem:[%s2214_s10 + $0x30] sm:$0xff]  ;;  %v269_v42 = vld [vmem:[%s2214_s10 + $0x38] sm:$0xff]  ;;  %v270_v44 = vld [vmem:[%s2214_s10 + $0x40] sm:$0xff] }
  0x1d   : >> { %v235_v41 = vld [vmem:[%s2210_s9 + $0x30] sm:$0xff]  ;;  %v236_v43 = vld [vmem:[%s2210_s9 + $0x38] sm:$0xff]  ;;  %v237_v45 = vld [vmem:[%s2210_s9 + $0x40] sm:$0xff] }
  0x1e   : >> { %1982 = vmatpush3.bf16.msra.mxu1 %v1979_v17  ;;  %v271_v46 = vld [vmem:[%s2214_s10 + $0x48] sm:$0xff]  ;;  %v272_v48 = vld [vmem:[%s2214_s10 + $0x50] sm:$0xff]  ;;  %v273_v50 = vld [vmem:[%s2214_s10 + $0x58] sm:$0xff] }
  0x1f   : >> { %1994 = vmatpush3.bf16.msra.mxu0 %v1991_v18  ;;  %2007 = vmatprep.subr.bf16.mxu1 %v1983_v8  ;;  %v238_v47 = vld [vmem:[%s2210_s9 + $0x48] sm:$0xff]  ;;  %v239_v49 = vld [vmem:[%s2210_s9 + $0x50] sm:$0xff]  ;;  %v240_v51 = vld [vmem:[%s2210_s9 + $0x58] sm:$0xff] }
  0x20   : >> { %1996 = vmatprep.subr.bf16.mxu0 %v1995_v23  ;;  %v274_v52 = vld [vmem:[%s2214_s10 + $0x60] sm:$0xff]  ;;  %v275_v54 = vld [vmem:[%s2214_s10 + $0x68] sm:$0xff]  ;;  %v276_v56 = vld [vmem:[%s2214_s10 + $0x70] sm:$0xff] }
  0x21   : >> { %1804 = vmatmul.mubr.msk.f32.vlgmr.msra.gmra.mrb[0].mxu1 %vm341_vm0, %v263_v26  ;;  %v241_v53 = vld [vmem:[%s2210_s9 + $0x60] sm:$0xff]  ;;  %v242_v55 = vld [vmem:[%s2210_s9 + $0x68] sm:$0xff]  ;;  %v243_v57 = vld [vmem:[%s2210_s9 + $0x70] sm:$0xff] }
  0x22   : >> { %1864 = vmatmul.mubr.msk.f32.vlgmr.msra.gmra.mrb[0].mxu0 %vm341_vm0, %v230_v27  ;;  %2010 = vmatpush3.bf16.msra.mxu1 %v1983_v8  ;;  %v277_v58 = vld [vmem:[%s2214_s10 + $0x78] sm:$0xff]  ;;  %v278_v60 = vld [vmem:[%s2214_s10 + $0x80] sm:$0xff]  ;;  %v1534_v61 = vld [vmem:[%s2210_s9 + $0x4f] sm:$0xff] }
  0x23   : >> { %1998 = vmatpush3.bf16.msra.mxu0 %v1995_v23  ;;  %1806 = vmatprep.mubr.msk.f32.mxu1 %vm341_vm0, %v264_v28  ;;  %v244_v59 = vld [vmem:[%s2210_s9 + $0x78] sm:$0xff]  ;;  %v279_v62 = vld [vmem:[%s2214_s10 + $0x88] sm:$0xff]  ;;  %v280_v1 = vld [vmem:[%s2214_s10 + $0x90] sm:$0xff] }
  0x24   : >> { %1866 = vmatprep.mubr.msk.f32.mxu0 %vm341_vm0, %v231_v30  ;;  %2000 = vmatprep.subr.bf16.mxu0 %v1999_v29  ;;  %v1535_v63 = vld [vmem:[%s2210_s9 + $0x57] sm:$0xff]  ;;  %v1536_v2 = vld [vmem:[%s2210_s9 + $0x5f] sm:$0xff]  ;;  %v1537_v4 = vld [vmem:[%s2210_s9 + $0x67] sm:$0xff] }
  0x25   : >> { %1807 = vmatmul.mubr.msk.f32.gmra.mrb[2].mxu1 %vm341_vm0, %v265_v33  ;;  %2008 = vmatprep.subr.bf16.mxu1 %v1987_v13  ;;  %v281_v3 = vld [vmem:[%s2214_s10 + $0x98] sm:$0xff]  ;;  %v282_v5 = vld [vmem:[%s2214_s10 + $0xa0] sm:$0xff]  ;;  %v1538_v6 = vld [vmem:[%s2210_s9 + $0x6f] sm:$0xff] }
  0x26   : >> { %1867 = vmatmul.mubr.msk.f32.gmra.mrb[2].mxu0 %vm341_vm0, %v232_v34  ;;  %1809 = vmatprep.mubr.msk.f32.mxu1 %vm341_vm0, %v266_v35  ;;  %v283_v7 = vld [vmem:[%s2214_s10 + $0xa8] sm:$0xff]  ;;  %v1539_v8 = vld [vmem:[%s2210_s9 + $0x77] sm:$0xff]  ;;  %v1540_v10 = vld [vmem:[%s2210_s9 + $0x7f] sm:$0xff] }
  0x27   : >> { %1869 = vmatprep.mubr.msk.f32.mxu0 %vm341_vm0, %v233_v36  ;;  %2002 = vmatpush3.bf16.msra.mxu0 %v1999_v29  ;;  %v284_v9 = vld [vmem:[%s2214_s10 + $0xb0] sm:$0xff]  ;;  %v285_v11 = vld [vmem:[%s2214_s10 + $0xb8] sm:$0xff]  ;;  %v1541_v12 = vld [vmem:[%s2210_s9 + $0x87] sm:$0xff] }
  0x28   : >> { %2004 = vmatprep.subr.bf16.mxu0 %v2003_v37  ;;  %2011 = vmatpush3.bf16.msra.mxu1 %v1987_v13  ;;  %v286_v13 = vld [vmem:[%s2214_s10 + $0xc0] sm:$0xff]  ;;  %v1542_v14 = vld [vmem:[%s2210_s9 + $0x8f] sm:$0xff]  ;;  %v1543_v16 = vld [vmem:[%s2210_s9 + $0x97] sm:$0xff] }
  0x29   : >> { %1810 = vmatmul.mubr.msk.f32.gmra.mrb[4].mxu1 %vm341_vm0, %v267_v38  ;;  %2009 = vmatprep.subr.bf16.mxu1 %v1991_v18  ;;  %v287_v15 = vld [vmem:[%s2214_s10 + $0xc8] sm:$0xff]  ;;  %v288_v17 = vld [vmem:[%s2214_s10 + $0xd0] sm:$0xff]  ;;  %v289_v19 = vld [vmem:[%s2214_s10 + $0xd8] sm:$0xff] }
  0x2a   : >> { %1870 = vmatmul.mubr.msk.f32.gmra.mrb[4].mxu0 %vm341_vm0, %v234_v39  ;;  %1812 = vmatprep.mubr.msk.f32.mxu1 %vm341_vm0, %v268_v40  ;;  %v1545_v20 = vld [vmem:[%s2210_s9 + $0xa7] sm:$0xff]  ;;  %v1546_v22 = vld [vmem:[%s2210_s9 + $0xaf] sm:$0xff]  ;;  %v1547_v24 = vld [vmem:[%s2210_s9 + $0xb7] sm:$0xff] }
  0x2b   : >> { %1872 = vmatprep.mubr.msk.f32.mxu0 %vm341_vm0, %v235_v41  ;;  %2006 = vmatpush3.bf16.msra.mxu0 %v2003_v37  ;;  %v290_v21 = vld [vmem:[%s2214_s10 + $0xe0] sm:$0xff]  ;;  %v291_v23 = vld [vmem:[%s2214_s10 + $0xe8] sm:$0xff]  ;;  %v292_v25 = vld [vmem:[%s2214_s10 + $0xf0] sm:$0xff] }
  0x2c   : >> { %2012 = vmatpush3.bf16.msra.mxu1 %v1991_v18  ;;  %v1544_v18 = vld [vmem:[%s2210_s9 + $0x9f] sm:$0xff]  ;;  %v1549_v28 = vld [vmem:[%s2210_s9 + $0xc7] sm:$0xff]  ;;  %v1550_v30 = vld [vmem:[%s2210_s9 + $0xcf] sm:$0xff] }
  0x2d   : >> { %1813 = vmatmul.mubr.msk.f32.gmra.mrb[6].mxu1 %vm341_vm0, %v269_v42  ;;  %v1548_v26 = vld [vmem:[%s2210_s9 + $0xbf] sm:$0xff]  ;;  %v246_v31 = vld [vmem:[%s2210_s9 + $0x88] sm:$0xff]  ;;  %v1551_v32 = vld [vmem:[%s2210_s9 + $0xd7] sm:$0xff] }
  0x2e   : >> { %1873 = vmatmul.mubr.msk.f32.gmra.mrb[6].mxu0 %vm341_vm0, %v236_v43  ;;  %1815 = vmatprep.mubr.msk.f32.mxu1 %vm341_vm0, %v270_v44  ;;  %v293_v27 = vld [vmem:[%s2214_s10 + $0xf8] sm:$0xff]  ;;  %v245_v29 = vld [vmem:[%s2210_s9 + $0x80] sm:$0xff]  ;;  %v247_v33 = vld [vmem:[%s2210_s9 + $0x90] sm:$0xff] }
  0x2f   : >> { %1875 = vmatprep.mubr.msk.f32.mxu0 %vm341_vm0, %v237_v45  ;;  %v1552_v34 = vld [vmem:[%s2210_s9 + $0xdf] sm:$0xff]  ;;  %v1553_v36 = vld [vmem:[%s2210_s9 + $0xe7] sm:$0xff]  ;;  %v1554_v38 = vld [vmem:[%s2210_s9 + $0xef] sm:$0xff] }
  0x30   : >> { %v248_v35 = vld [vmem:[%s2210_s9 + $0x98] sm:$0xff]  ;;  %v249_v37 = vld [vmem:[%s2210_s9 + $0xa0] sm:$0xff]  ;;  %v250_v39 = vld [vmem:[%s2210_s9 + $0xa8] sm:$0xff] }
  0x31   : >> { %1816 = vmatmul.mubr.msk.f32.gmra.mrb[8].mxu1 %vm341_vm0, %v271_v46  ;;  %v1555_v40 = vld [vmem:[%s2210_s9 + $0xf7] sm:$0xff]  ;;  %v1556_v42 = vld [vmem:[%s2210_s9 + $0xff] sm:$0xff]  ;;  %v1557_v44 = vld [vmem:[%s2210_s9 + $0x107] sm:$0xff] }
  0x32   : >> { %1876 = vmatmul.mubr.msk.f32.gmra.mrb[8].mxu0 %vm341_vm0, %v238_v47  ;;  %1818 = vmatprep.mubr.msk.f32.mxu1 %vm341_vm0, %v272_v48  ;;  %v251_v41 = vld [vmem:[%s2210_s9 + $0xb0] sm:$0xff]  ;;  %v252_v43 = vld [vmem:[%s2210_s9 + $0xb8] sm:$0xff]  ;;  %v253_v45 = vld [vmem:[%s2210_s9 + $0xc0] sm:$0xff] }
  0x33   : >> { %1878 = vmatprep.mubr.msk.f32.mxu0 %vm341_vm0, %v239_v49  ;;  %v1558_v46 = vld [vmem:[%s2210_s9 + $0x10f] sm:$0xff]  ;;  %v1559_v48 = vld [vmem:[%s2210_s9 + $0x117] sm:$0xff] }
  0x34   : >> { %v254_v47 = vld [vmem:[%s2210_s9 + $0xc8] sm:$0xff]  ;;  %v255_v49 = vld [vmem:[%s2210_s9 + $0xd0] sm:$0xff] }
  0x35   : >> { %1819 = vmatmul.mubr.msk.f32.gmra.mrb[10].mxu1 %vm341_vm0, %v273_v50  ;;  %v1560_v50 = vld [vmem:[%s2210_s9 + $0x11f] sm:$0xff] }
  0x36   : >> { %1879 = vmatmul.mubr.msk.f32.gmra.mrb[10].mxu0 %vm341_vm0, %v240_v51  ;;  %1821 = vmatprep.mubr.msk.f32.mxu1 %vm341_vm0, %v274_v52  ;;  %v256_v51 = vld [vmem:[%s2210_s9 + $0xd8] sm:$0xff]  ;;  %v1561_v52 = vld [vmem:[%s2210_s9 + $0x127] sm:$0xff] }
  0x37   : >> { %1881 = vmatprep.mubr.msk.f32.mxu0 %vm341_vm0, %v241_v53  ;;  %v257_v53 = vld [vmem:[%s2210_s9 + $0xe0] sm:$0xff] }
  0x39   : >> { %1822 = vmatmul.mubr.msk.f32.gmra.mrb[12].mxu1 %vm341_vm0, %v275_v54  ;;  %v1562_v54 = vld [vmem:[%s2210_s9 + $0x12f] sm:$0xff] }
  0x3a   : >> { %1882 = vmatmul.mubr.msk.f32.gmra.mrb[12].mxu0 %vm341_vm0, %v242_v55  ;;  %1824 = vmatprep.mubr.msk.f32.mxu1 %vm341_vm0, %v276_v56  ;;  %v258_v55 = vld [vmem:[%s2210_s9 + $0xe8] sm:$0xff]  ;;  %v1563_v56 = vld [vmem:[%s2210_s9 + $0x137] sm:$0xff] }
  0x3b   : >> { %1884 = vmatprep.mubr.msk.f32.mxu0 %vm341_vm0, %v243_v57  ;;  %v259_v57 = vld [vmem:[%s2210_s9 + $0xf0] sm:$0xff] }
  0x3d   : >> { %1825 = vmatmul.mubr.msk.f32.gmra.mrb[14].mxu1 %vm341_vm0, %v277_v58  ;;  %v1564_v58 = vld [vmem:[%s2210_s9 + $0x13f] sm:$0xff] }
  0x3e   : >> { %1885 = vmatmul.mubr.msk.f32.gmra.mrb[14].mxu0 %vm341_vm0, %v244_v59  ;;  %1827 = vmatprep.mubr.msk.f32.mxu1 %vm341_vm0, %v278_v60  ;;  %v260_v59 = vld [vmem:[%s2210_s9 + $0xf8] sm:$0xff]  ;;  %v1565_v60 = vld [vmem:[%s2210_s9 + $0x147] sm:$0xff] }
  0x3f   : >> { %1923 = vmatprep.mubr.msk.f32.mxu0 %vm341_vm0, %v1534_v61 }
  0x41   : >> { %1828 = vmatmul.mubr.msk.f32.gmra.mrb[16].mxu1 %vm341_vm0, %v279_v62 }
  0x42   : >> { %1924 = vmatmul.mubr.msk.f32.vlgmr.msra.gmra.mrb[0].mxu0 %vm341_vm0, %v1535_v63  ;;  %1830 = vmatprep.mubr.msk.f32.mxu1 %vm341_vm0, %v280_v1 }
  0x43   : >> { %1926 = vmatprep.mubr.msk.f32.mxu0 %vm341_vm0, %v1536_v2 }
  0x45   : >> { %1831 = vmatmul.mubr.msk.f32.gmra.mrb[18].mxu1 %vm341_vm0, %v281_v3 }
  0x46   : >> { %1927 = vmatmul.mubr.msk.f32.gmra.mrb[2].mxu0 %vm341_vm0, %v1537_v4  ;;  %1833 = vmatprep.mubr.msk.f32.mxu1 %vm341_vm0, %v282_v5 }
  0x47   : >> { %1929 = vmatprep.mubr.msk.f32.mxu0 %vm341_vm0, %v1538_v6 }
  0x49   : >> { %1834 = vmatmul.mubr.msk.f32.gmra.mrb[20].mxu1 %vm341_vm0, %v283_v7 }
  0x4a   : >> { %1930 = vmatmul.mubr.msk.f32.gmra.mrb[4].mxu0 %vm341_vm0, %v1539_v8  ;;  %1836 = vmatprep.mubr.msk.f32.mxu1 %vm341_vm0, %v284_v9 }
  0x4b   : >> { %1932 = vmatprep.mubr.msk.f32.mxu0 %vm341_vm0, %v1540_v10 }
  0x4d   : >> { %1837 = vmatmul.mubr.msk.f32.gmra.mrb[22].mxu1 %vm341_vm0, %v285_v11 }
  0x4e   : >> { %1933 = vmatmul.mubr.msk.f32.gmra.mrb[6].mxu0 %vm341_vm0, %v1541_v12  ;;  %1839 = vmatprep.mubr.msk.f32.mxu1 %vm341_vm0, %v286_v13 }
  0x4f   : >> { %1935 = vmatprep.mubr.msk.f32.mxu0 %vm341_vm0, %v1542_v14 }
  0x51   : >> { %1840 = vmatmul.mubr.msk.f32.gmra.mrb[24].mxu1 %vm341_vm0, %v287_v15 }
  0x52   : >> { %1936 = vmatmul.mubr.msk.f32.gmra.mrb[8].mxu0 %vm341_vm0, %v1543_v16  ;;  %1842 = vmatprep.mubr.msk.f32.mxu1 %vm341_vm0, %v288_v17 }
  0x53   : >> { %1938 = vmatprep.mubr.msk.f32.mxu0 %vm341_vm0, %v1544_v18 }
  0x55   : >> { %1843 = vmatmul.mubr.msk.f32.gmra.mrb[26].mxu1 %vm341_vm0, %v289_v19 }
  0x56   : >> { %1939 = vmatmul.mubr.msk.f32.gmra.mrb[10].mxu0 %vm341_vm0, %v1545_v20  ;;  %1845 = vmatprep.mubr.msk.f32.mxu1 %vm341_vm0, %v290_v21 }
  0x57   : >> { %1941 = vmatprep.mubr.msk.f32.mxu0 %vm341_vm0, %v1546_v22 }
  0x59   : >> { %1846 = vmatmul.mubr.msk.f32.gmra.mrb[28].mxu1 %vm341_vm0, %v291_v23 }
  0x5a   : >> { %1942 = vmatmul.mubr.msk.f32.gmra.mrb[12].mxu0 %vm341_vm0, %v1547_v24  ;;  %1848 = vmatprep.mubr.msk.f32.mxu1 %vm341_vm0, %v292_v25 }
  0x5b   : >> { %1944 = vmatprep.mubr.msk.f32.mxu0 %vm341_vm0, %v1548_v26 }
  0x5d   : >> { %1849 = vmatmul.mubr.msk.f32.gmra.mrb[30].mxu1 %vm341_vm0, %v293_v27 }
  0x5e   : >> { %1945 = vmatmul.mubr.msk.f32.gmra.mrb[14].mxu0 %vm341_vm0, %v1549_v28  ;;  %1887 = vmatprep.mubr.msk.f32.mxu1 %vm341_vm0, %v245_v29 }
  0x5f   : >> { %1947 = vmatprep.mubr.msk.f32.mxu0 %vm341_vm0, %v1550_v30 }
  0x61   : >> { %1888 = vmatmul.mubr.msk.f32.vlgmr.msra.gmra.mrb[16].mxu1 %vm341_vm0, %v246_v31 }
  0x62   : >> { %1948 = vmatmul.mubr.msk.f32.gmra.mrb[16].mxu0 %vm341_vm0, %v1551_v32  ;;  %1890 = vmatprep.mubr.msk.f32.mxu1 %vm341_vm0, %v247_v33 }
  0x63   : >> { %1950 = vmatprep.mubr.msk.f32.mxu0 %vm341_vm0, %v1552_v34 }
  0x65   : >> { %1891 = vmatmul.mubr.msk.f32.gmra.mrb[18].mxu1 %vm341_vm0, %v248_v35 }
  0x66   : >> { %1951 = vmatmul.mubr.msk.f32.gmra.mrb[18].mxu0 %vm341_vm0, %v1553_v36  ;;  %1893 = vmatprep.mubr.msk.f32.mxu1 %vm341_vm0, %v249_v37 }
  0x67   : >> { %1953 = vmatprep.mubr.msk.f32.mxu0 %vm341_vm0, %v1554_v38 }
  0x69   : >> { %1894 = vmatmul.mubr.msk.f32.gmra.mrb[20].mxu1 %vm341_vm0, %v250_v39 }
  0x6a   : >> { %1954 = vmatmul.mubr.msk.f32.gmra.mrb[20].mxu0 %vm341_vm0, %v1555_v40  ;;  %1896 = vmatprep.mubr.msk.f32.mxu1 %vm341_vm0, %v251_v41 }
  0x6b   : >> { %1956 = vmatprep.mubr.msk.f32.mxu0 %vm341_vm0, %v1556_v42 }
  0x6d   : >> { %1897 = vmatmul.mubr.msk.f32.gmra.mrb[22].mxu1 %vm341_vm0, %v252_v43 }
  0x6e   : >> { %1957 = vmatmul.mubr.msk.f32.gmra.mrb[22].mxu0 %vm341_vm0, %v1557_v44  ;;  %1899 = vmatprep.mubr.msk.f32.mxu1 %vm341_vm0, %v253_v45 }
  0x6f   : >> { %1959 = vmatprep.mubr.msk.f32.mxu0 %vm341_vm0, %v1558_v46 }
  0x71   : >> { %1900 = vmatmul.mubr.msk.f32.gmra.mrb[24].mxu1 %vm341_vm0, %v254_v47 }
  0x72   : >> { %1960 = vmatmul.mubr.msk.f32.gmra.mrb[24].mxu0 %vm341_vm0, %v1559_v48  ;;  %1902 = vmatprep.mubr.msk.f32.mxu1 %vm341_vm0, %v255_v49 }
  0x73   : >> { %1962 = vmatprep.mubr.msk.f32.mxu0 %vm341_vm0, %v1560_v50 }
  0x75   : >> { %1903 = vmatmul.mubr.msk.f32.gmra.mrb[26].mxu1 %vm341_vm0, %v256_v51 }
  0x76   : >> { %1963 = vmatmul.mubr.msk.f32.gmra.mrb[26].mxu0 %vm341_vm0, %v1561_v52  ;;  %1905 = vmatprep.mubr.msk.f32.mxu1 %vm341_vm0, %v257_v53 }
  0x77   : >> { %1965 = vmatprep.mubr.msk.f32.mxu0 %vm341_vm0, %v1562_v54 }
  0x79   : >> { %1906 = vmatmul.mubr.msk.f32.gmra.mrb[28].mxu1 %vm341_vm0, %v258_v55 }
  0x7a   : >> { %1966 = vmatmul.mubr.msk.f32.gmra.mrb[28].mxu0 %vm341_vm0, %v1563_v56  ;;  %1908 = vmatprep.mubr.msk.f32.mxu1 %vm341_vm0, %v259_v57 }
  0x7b   : >> { %1968 = vmatprep.mubr.msk.f32.mxu0 %vm341_vm0, %v1564_v58 }
  0x7d   : >> { %1909 = vmatmul.mubr.msk.f32.gmra.mrb[30].mxu1 %vm341_vm0, %v260_v59 }
  0x7e   : >> { %1969 = vmatmul.mubr.msk.f32.gmra.mrb[30].mxu0 %vm341_vm0, %v1565_v60 }
  0xf4   : >> { %v1805_v61 = vpop.f32.mrb[0].mxu1 }
  0xf5   : >> { %v504_v62 = vpop.f32.mrb[1].mxu1 }
  0xf8   : >> { %v1808_v63 = vpop.f32.mrb[2].mxu1 }
  0xf9   : >> { %v514_v1 = vpop.f32.mrb[3].mxu1 }
  0xfc   : >> { %v1811_v2 = vpop.f32.mrb[4].mxu1 }
  0xfd   : >> { %v524_v3 = vpop.f32.mrb[5].mxu1 }
 0x100   : >> { %v1814_v4 = vpop.f32.mrb[6].mxu1 }
 0x101   : >> { %v534_v5 = vpop.f32.mrb[7].mxu1 }
 0x104   : >> { %v1817_v6 = vpop.f32.mrb[8].mxu1 }
 0x105   : >> { %v544_v7 = vpop.f32.mrb[9].mxu1 }
 0x108   : >> { %v1820_v8 = vpop.f32.mrb[10].mxu1 }
 0x109   : >> { %v554_v9 = vpop.f32.mrb[11].mxu1 }
 0x10c   : >> { %v2426_v10 = vpop.f32.mrb[12].mxu1 }
 0x10d   : >> { %v2428_v11 = vpop.f32.mrb[13].mxu1 }
 0x110   : >> { %v2430_v12 = vpop.f32.mrb[14].mxu1 }
 0x111   : >> { %v2432_v13 = vpop.f32.mrb[15].mxu1 }
 0x115   : >> { %v1925_v14 = vpop.f32.mrb[0].mxu0 }
 0x116   : >> { %v2013_v15 = vadd.f32 %v1925_v14, %v1805_v61  ;;  %v1153_v16 = vpop.f32.mrb[1].mxu0 }
 0x117   : >> { %v2014_v17 = vadd.f32 %v1153_v16, %v504_v62 }
 0x118   : >> { %v1351_v18 = vadd.f32 %v2013_v15, %v2147_v0 }
 0x119   : >> { %v1350_v19 = vadd.f32 %v2014_v17, %v2147_v0  ;;  %v1928_v20 = vpop.f32.mrb[2].mxu0 }
 0x11a   : >> { %v1383_v21 = vmax.f32 %v1351_v18, 0.0  ;;  %v2015_v22 = vadd.f32 %v1928_v20, %v1808_v63  ;;  %v1163_v23 = vpop.f32.mrb[3].mxu0 }
 0x11b   : >> { %v1382_v24 = vmax.f32 %v1350_v19, 0.0  ;;  %v2016_v25 = vadd.f32 %v1163_v23, %v514_v1 }
 0x11c   : >> { %1417 = vst.msk [vmem:[%s2437_s27 + $0x8] sm:$0xff] %vm1415_vm1, %v1383_v21  ;;  %v1353_v26 = vadd.f32 %v2015_v22, %v2147_v0 }
 0x11d   : >> { %1416 = vst.msk [vmem:[%s2437_s27] sm:$0xff] %vm1415_vm1, %v1382_v24  ;;  %v1352_v27 = vadd.f32 %v2016_v25, %v2147_v0  ;;  %v1931_v28 = vpop.f32.mrb[4].mxu0 }
 0x11e   : >> { %v1385_v29 = vmax.f32 %v1353_v26, 0.0  ;;  %v2017_v30 = vadd.f32 %v1931_v28, %v1811_v2  ;;  %v1173_v31 = vpop.f32.mrb[5].mxu0 }
 0x11f   : >> { %v1384_v32 = vmax.f32 %v1352_v27, 0.0  ;;  %v2018_v33 = vadd.f32 %v1173_v31, %v524_v3 }
 0x120   : >> { %1419 = vst.msk [vmem:[%s2437_s27 + $0x18] sm:$0xff] %vm1415_vm1, %v1385_v29  ;;  %v1355_v34 = vadd.f32 %v2017_v30, %v2147_v0 }
 0x121   : >> { %1418 = vst.msk [vmem:[%s2437_s27 + $0x10] sm:$0xff] %vm1415_vm1, %v1384_v32  ;;  %v1354_v35 = vadd.f32 %v2018_v33, %v2147_v0  ;;  %v1934_v36 = vpop.f32.mrb[6].mxu0 }
 0x122   : >> { %v1387_v37 = vmax.f32 %v1355_v34, 0.0  ;;  %v2019_v38 = vadd.f32 %v1934_v36, %v1814_v4  ;;  %v1183_v39 = vpop.f32.mrb[7].mxu0 }
 0x123   : >> { %v1386_v40 = vmax.f32 %v1354_v35, 0.0  ;;  %v2020_v41 = vadd.f32 %v1183_v39, %v534_v5 }
 0x124   : >> { %1421 = vst.msk [vmem:[%s2437_s27 + $0x28] sm:$0xff] %vm1415_vm1, %v1387_v37  ;;  %v1357_v42 = vadd.f32 %v2019_v38, %v2147_v0 }
 0x125   : >> { %1420 = vst.msk [vmem:[%s2437_s27 + $0x20] sm:$0xff] %vm1415_vm1, %v1386_v40  ;;  %v1356_v43 = vadd.f32 %v2020_v41, %v2147_v0  ;;  %v1937_v44 = vpop.f32.mrb[8].mxu0 }
 0x126   : >> { %v1389_v45 = vmax.f32 %v1357_v42, 0.0  ;;  %v2021_v46 = vadd.f32 %v1937_v44, %v1817_v6  ;;  %v1193_v47 = vpop.f32.mrb[9].mxu0 }
 0x127   : >> { %v1388_v48 = vmax.f32 %v1356_v43, 0.0  ;;  %v2022_v49 = vadd.f32 %v1193_v47, %v544_v7 }
 0x128   : >> { %1423 = vst.msk [vmem:[%s2437_s27 + $0x38] sm:$0xff] %vm1415_vm1, %v1389_v45  ;;  %v1359_v50 = vadd.f32 %v2021_v46, %v2147_v0 }
 0x129   : >> { %1422 = vst.msk [vmem:[%s2437_s27 + $0x30] sm:$0xff] %vm1415_vm1, %v1388_v48  ;;  %v1358_v51 = vadd.f32 %v2022_v49, %v2147_v0  ;;  %v1940_v52 = vpop.f32.mrb[10].mxu0 }
 0x12a   : >> { %v1391_v53 = vmax.f32 %v1359_v50, 0.0  ;;  %v2023_v54 = vadd.f32 %v1940_v52, %v1820_v8  ;;  %v1203_v55 = vpop.f32.mrb[11].mxu0 }
 0x12b   : >> { %v1390_v56 = vmax.f32 %v1358_v51, 0.0  ;;  %v2024_v57 = vadd.f32 %v1203_v55, %v554_v9 }
 0x12c   : >> { %1425 = vst.msk [vmem:[%s2437_s27 + $0x48] sm:$0xff] %vm1415_vm1, %v1391_v53  ;;  %v1361_v58 = vadd.f32 %v2023_v54, %v2147_v0 }
 0x12d   : >> { %1424 = vst.msk [vmem:[%s2437_s27 + $0x40] sm:$0xff] %vm1415_vm1, %v1390_v56  ;;  %v1360_v59 = vadd.f32 %v2024_v57, %v2147_v0  ;;  %v1943_v60 = vpop.f32.mrb[12].mxu0 }
 0x12e   : >> { %v1393_v61 = vmax.f32 %v1361_v58, 0.0  ;;  %v2025_v62 = vadd.f32 %v1943_v60, %v2426_v10  ;;  %v1213_v63 = vpop.f32.mrb[13].mxu0 }
 0x12f   : >> { %v1392_v1 = vmax.f32 %v1360_v59, 0.0  ;;  %v2026_v2 = vadd.f32 %v1213_v63, %v2428_v11 }
 0x130   : >> { %1427 = vst.msk [vmem:[%s2437_s27 + $0x58] sm:$0xff] %vm1415_vm1, %v1393_v61  ;;  %v1363_v3 = vadd.f32 %v2025_v62, %v2147_v0 }
 0x131   : >> { %1426 = vst.msk [vmem:[%s2437_s27 + $0x50] sm:$0xff] %vm1415_vm1, %v1392_v1  ;;  %v1362_v4 = vadd.f32 %v2026_v2, %v2147_v0  ;;  %v1946_v5 = vpop.f32.mrb[14].mxu0 }
 0x132   : >> { %v1395_v6 = vmax.f32 %v1363_v3, 0.0  ;;  %v2027_v7 = vadd.f32 %v1946_v5, %v2430_v12  ;;  %v1223_v8 = vpop.f32.mrb[15].mxu0 }
 0x133   : >> { %v1394_v9 = vmax.f32 %v1362_v4, 0.0  ;;  %v2028_v10 = vadd.f32 %v1223_v8, %v2432_v13 }
 0x134   : >> { %1429 = vst.msk [vmem:[%s2437_s27 + $0x68] sm:$0xff] %vm1415_vm1, %v1395_v6  ;;  %v1365_v11 = vadd.f32 %v2027_v7, %v2147_v0  ;;  %v1889_v14 = vpop.f32.mrb[16].mxu1 }
 0x135   : >> { %1428 = vst.msk [vmem:[%s2437_s27 + $0x60] sm:$0xff] %vm1415_vm1, %v1394_v9  ;;  %v1364_v15 = vadd.f32 %v2028_v10, %v2147_v0  ;;  %v1949_v16 = vpop.f32.mrb[16].mxu0  ;;  %v905_v17 = vpop.f32.mrb[17].mxu1 }
 0x136   : >> { %v1397_v18 = vmax.f32 %v1365_v11, 0.0  ;;  %v2029_v19 = vadd.f32 %v1949_v16, %v1889_v14  ;;  %v1233_v12 = vpop.f32.mrb[17].mxu0 }
 0x137   : >> { %v1396_v20 = vmax.f32 %v1364_v15, 0.0  ;;  %v2030_v21 = vadd.f32 %v1233_v12, %v905_v17 }
 0x138   : >> { %1431 = vst.msk [vmem:[%s2437_s27 + $0x78] sm:$0xff] %vm1415_vm1, %v1397_v18  ;;  %v1367_v13 = vadd.f32 %v2029_v19, %v2147_v0  ;;  %v1892_v22 = vpop.f32.mrb[18].mxu1 }
 0x139   : >> { %1430 = vst.msk [vmem:[%s2437_s27 + $0x70] sm:$0xff] %vm1415_vm1, %v1396_v20  ;;  %v1366_v23 = vadd.f32 %v2030_v21, %v2147_v0  ;;  %v1952_v24 = vpop.f32.mrb[18].mxu0  ;;  %v915_v25 = vpop.f32.mrb[19].mxu1 }
 0x13a   : >> { %v1399_v26 = vmax.f32 %v1367_v13, 0.0  ;;  %v2031_v27 = vadd.f32 %v1952_v24, %v1892_v22  ;;  %v1243_v28 = vpop.f32.mrb[19].mxu0 }
 0x13b   : >> { %v1398_v29 = vmax.f32 %v1366_v23, 0.0  ;;  %v2032_v30 = vadd.f32 %v1243_v28, %v915_v25 }
 0x13c   : >> { %1433 = vst.msk [vmem:[%s2437_s27 + $0x88] sm:$0xff] %vm1415_vm1, %v1399_v26  ;;  %v1369_v31 = vadd.f32 %v2031_v27, %v2147_v0  ;;  %v1895_v32 = vpop.f32.mrb[20].mxu1 }
 0x13d   : >> { %1432 = vst.msk [vmem:[%s2437_s27 + $0x80] sm:$0xff] %vm1415_vm1, %v1398_v29  ;;  %v1368_v33 = vadd.f32 %v2032_v30, %v2147_v0  ;;  %v1955_v34 = vpop.f32.mrb[20].mxu0  ;;  %v925_v35 = vpop.f32.mrb[21].mxu1 }
 0x13e   : >> { %v1401_v36 = vmax.f32 %v1369_v31, 0.0  ;;  %v2033_v37 = vadd.f32 %v1955_v34, %v1895_v32  ;;  %v1253_v38 = vpop.f32.mrb[21].mxu0 }
 0x13f   : >> { %v1400_v39 = vmax.f32 %v1368_v33, 0.0  ;;  %v2034_v40 = vadd.f32 %v1253_v38, %v925_v35 }
 0x140   : >> { %1435 = vst.msk [vmem:[%s2437_s27 + $0x98] sm:$0xff] %vm1415_vm1, %v1401_v36  ;;  %v1371_v41 = vadd.f32 %v2033_v37, %v2147_v0  ;;  %v1898_v42 = vpop.f32.mrb[22].mxu1 }
 0x141   : >> { %1434 = vst.msk [vmem:[%s2437_s27 + $0x90] sm:$0xff] %vm1415_vm1, %v1400_v39  ;;  %v1370_v43 = vadd.f32 %v2034_v40, %v2147_v0  ;;  %v1958_v44 = vpop.f32.mrb[22].mxu0  ;;  %v935_v45 = vpop.f32.mrb[23].mxu1 }
 0x142   : >> { %v1403_v46 = vmax.f32 %v1371_v41, 0.0  ;;  %v2035_v47 = vadd.f32 %v1958_v44, %v1898_v42  ;;  %v1263_v48 = vpop.f32.mrb[23].mxu0 }
 0x143   : >> { %v1402_v49 = vmax.f32 %v1370_v43, 0.0  ;;  %v2036_v50 = vadd.f32 %v1263_v48, %v935_v45 }
 0x144   : >> { %1437 = vst.msk [vmem:[%s2437_s27 + $0xa8] sm:$0xff] %vm1415_vm1, %v1403_v46  ;;  %v1373_v51 = vadd.f32 %v2035_v47, %v2147_v0  ;;  %v1901_v52 = vpop.f32.mrb[24].mxu1 }
 0x145   : >> { %1436 = vst.msk [vmem:[%s2437_s27 + $0xa0] sm:$0xff] %vm1415_vm1, %v1402_v49  ;;  %v1372_v53 = vadd.f32 %v2036_v50, %v2147_v0  ;;  %v1961_v54 = vpop.f32.mrb[24].mxu0  ;;  %v945_v55 = vpop.f32.mrb[25].mxu1 }
 0x146   : >> { %v1405_v56 = vmax.f32 %v1373_v51, 0.0  ;;  %v2037_v57 = vadd.f32 %v1961_v54, %v1901_v52  ;;  %v1273_v58 = vpop.f32.mrb[25].mxu0 }
 0x147   : >> { %v1404_v59 = vmax.f32 %v1372_v53, 0.0  ;;  %v2038_v60 = vadd.f32 %v1273_v58, %v945_v55 }
 0x148   : >> { %1439 = vst.msk [vmem:[%s2437_s27 + $0xb8] sm:$0xff] %vm1415_vm1, %v1405_v56  ;;  %v1375_v61 = vadd.f32 %v2037_v57, %v2147_v0  ;;  %v1904_v62 = vpop.f32.mrb[26].mxu1 }
 0x149   : >> { %1438 = vst.msk [vmem:[%s2437_s27 + $0xb0] sm:$0xff] %vm1415_vm1, %v1404_v59  ;;  %v1374_v63 = vadd.f32 %v2038_v60, %v2147_v0  ;;  %v1964_v1 = vpop.f32.mrb[26].mxu0  ;;  %v955_v2 = vpop.f32.mrb[27].mxu1 }
 0x14a   : >> { %v1407_v3 = vmax.f32 %v1375_v61, 0.0  ;;  %v2039_v4 = vadd.f32 %v1964_v1, %v1904_v62  ;;  %v1283_v5 = vpop.f32.mrb[27].mxu0 }
 0x14b   : >> { %v1406_v6 = vmax.f32 %v1374_v63, 0.0  ;;  %v2040_v7 = vadd.f32 %v1283_v5, %v955_v2 }
 0x14c   : >> { %1441 = vst.msk [vmem:[%s2437_s27 + $0xc8] sm:$0xff] %vm1415_vm1, %v1407_v3  ;;  %v1377_v8 = vadd.f32 %v2039_v4, %v2147_v0  ;;  %v1907_v9 = vpop.f32.mrb[28].mxu1 }
 0x14d   : >> { %1440 = vst.msk [vmem:[%s2437_s27 + $0xc0] sm:$0xff] %vm1415_vm1, %v1406_v6  ;;  %v1376_v10 = vadd.f32 %v2040_v7, %v2147_v0  ;;  %v1967_v11 = vpop.f32.mrb[28].mxu0  ;;  %v965_v14 = vpop.f32.mrb[29].mxu1 }
 0x14e   : >> { %v1409_v15 = vmax.f32 %v1377_v8, 0.0  ;;  %v2041_v16 = vadd.f32 %v1967_v11, %v1907_v9  ;;  %v1293_v17 = vpop.f32.mrb[29].mxu0 }
 0x14f   : >> { %v1408_v18 = vmax.f32 %v1376_v10, 0.0  ;;  %v2042_v19 = vadd.f32 %v1293_v17, %v965_v14 }
 0x150   : >> { %1443 = vst.msk [vmem:[%s2437_s27 + $0xd8] sm:$0xff] %vm1415_vm1, %v1409_v15  ;;  %v1379_v12 = vadd.f32 %v2041_v16, %v2147_v0  ;;  %v1910_v20 = vpop.f32.mrb[30].mxu1 }
 0x151   : >> { %1442 = vst.msk [vmem:[%s2437_s27 + $0xd0] sm:$0xff] %vm1415_vm1, %v1408_v18  ;;  %v1378_v21 = vadd.f32 %v2042_v19, %v2147_v0  ;;  %v1970_v13 = vpop.f32.mrb[30].mxu0  ;;  %v975_v22 = vpop.f32.mrb[31].mxu1 }
 0x152   : >> { %v1411_v23 = vmax.f32 %v1379_v12, 0.0  ;;  %v2043_v24 = vadd.f32 %v1970_v13, %v1910_v20  ;;  %v1303_v25 = vpop.f32.mrb[31].mxu0 }
 0x153   : >> { %v1410_v26 = vmax.f32 %v1378_v21, 0.0  ;;  %v2044_v27 = vadd.f32 %v1303_v25, %v975_v22  ;;  %223 = sbr.rel (!%p221_p5) target bundleno = 18 (0x12), region = 82 }
 0x154   : >> { %1445 = vst.msk [vmem:[%s2437_s27 + $0xe8] sm:$0xff] %vm1415_vm1, %v1411_v23  ;;  %v1381_v28 = vadd.f32 %v2043_v24, %v2147_v0 }
 0x155   : >> { %1444 = vst.msk [vmem:[%s2437_s27 + $0xe0] sm:$0xff] %vm1415_vm1, %v1410_v26  ;;  %v1380_v29 = vadd.f32 %v2044_v27, %v2147_v0 }
 0x156   : >> { %v1413_v30 = vmax.f32 %v1381_v28, 0.0 }
 0x157   : >> { %v1412_v31 = vmax.f32 %v1380_v29, 0.0 }
 0x158   : >> { %1447 = vst.msk [vmem:[%s2437_s27 + $0xf8] sm:$0xff] %vm1415_vm1, %v1413_v30 }
 0x159   : >> { %1446 = vst.msk [vmem:[%s2437_s27 + $0xf0] sm:$0xff] %vm1415_vm1, %v1412_v31 }
 0x15a PF: > { %s14_s15 = sadd.s32 1, %s2105_s15  }
 0x15b   : > { %p11_p6 = scmp.ge.s32.totalorder %s14_s15, 4  }
 0x15d   :  { %13 = sbr.rel (!%p11_p6) target bundleno = 1 (0x1), region = 93 }

// kernel: dlean2net_forward.6
= control target key start
LH: loop header
LB: loop body
LE: loop exit
PB: predicated region body
PF: predicated region fallthrough
CT: control target
= control target key end

     0   :  { %s2136_s15 = smov 0   ;;  %s2544_s0 = inlined_call_operand.vmem [shape: f32[2,1248,48], index: 0, kind: input, shape index: {}]   ;;  %s2545_s1 = inlined_call_operand.vmem [shape: f32[2,1209,48], index: 1, kind: input, shape index: {}]   ;;  %s2546_s2 = inlined_call_operand.vmem [shape: f32[3,48,24], index: 2, kind: input, shape index: {}]   ;;  %s2547_s3 = inlined_call_operand.vmem [shape: f32[1,24], index: 3, kind: input, shape index: {}]   ;;  %s2548_s4 = inlined_call_operand.vmem [shape: f32[2,1209,24], index: 4, kind: output, shape index: {}]  }
   0x1 LB: > { %s1525_s16 = sadd.s32 4294967295, %s2105_s15   ;;  %p1529_p0 = scmp.ge.s32.totalorder %s2105_s15, 1  ;;  %s2105_s15 = sphi %s2136_s15, %s14_s15  }
   0x2   : > { %p172_p1 = scmp.lt.s32.totalorder %s2105_s15, 3 }
   0x4   : > { %p173_p2 = pnand %p1529_p0, %p172_p1 }
   0x5   : > { %p203_p3 = scmp.lt.s32.totalorder (!%p173_p2), %s1525_s16, 1  ;;  %v2147_v0 = vld [vmem:[%s2547_s3] ss:$0 sm:$0xff] (!%p173_p2)  ;;  %s2164_s30 = smov (!%p173_p2), 0  }
   0x6   : > { %176 = sbr.rel (%p173_p2) target bundleno = 346 (0x15a), region = 36 }
   0xd   : > { %s2550_s16 = smov (!%p203_p3, %s1525_s16), 1 }
   0xe   : > { %s2077_s19 = smul.u32 1248, %s2550_s16 }
   0xf   : > { %s2078_s20 = smul.u32 1216, %s2550_s16 }
  0x10   : > { %s2152_s23 = scalar_lea.vmem %s2544_s0, %s2077_s19 }
  0x11   : > { %s2157_s26 = scalar_lea.vmem %s2545_s1, %s2078_s20  ;;  %s2162_s29 = scalar_lea.vmem %s2548_s4, %s2078_s20 }
  0x12 LB: >> { %v1566_v1 = vld [vmem:[%s2546_s2 + $0x30] sm:$0xff]  ;;  %v1567_v2 = vld [vmem:[%s2546_s2 + $0x38] sm:$0xff]  ;;  %v328_v3 = vld [vmem:[%s2546_s2] sm:$0xff]  ;;  %s1533_s25 = sshll.u32 %s2109_s30, 8  ;;  %vm341_vm0 = vcmask 392192   ;;  %vm1415_vm1 = vcmask 195584   ;;  %s2109_s30 = sphi %s2164_s30, %s224_s30  }
  0x13   : >> { %v1971_v4 = vpack.c.bf16 %v1567_v2, %v1566_v1  ;;  %v329_v5 = vld [vmem:[%s2546_s2 + $0x8] sm:$0xff]  ;;  %v1568_v6 = vld [vmem:[%s2546_s2 + $0x40] sm:$0xff]  ;;  %v330_v10 = vld [vmem:[%s2546_s2 + $0x10] sm:$0xff]  ;;  %p226_p4 = scmp.lt.s32.totalorder %s1533_s25, 953  ;;  %s224_s30 = sadd.s32 1, %s2109_s30  }
  0x14   : >> { %v1569_v7 = vld [vmem:[%s2546_s2 + $0x48] sm:$0xff]  ;;  %v1983_v8 = vpack.c.bf16 %v329_v5, %v328_v3  ;;  %v331_v11 = vld [vmem:[%s2546_s2 + $0x18] sm:$0xff]  ;;  %v1570_v12 = vld [vmem:[%s2546_s2 + $0x50] sm:$0xff]  ;;  %p221_p5 = scmp.ge.s32.totalorder %s224_s30, 5  }
  0x15   : >> { %v1975_v9 = vpack.c.bf16 %v1569_v7, %v1568_v6  ;;  %1972 = vmatprep.subr.bf16.mxu1 %v1971_v4  ;;  %v1987_v13 = vpack.c.bf16 %v331_v11, %v330_v10  ;;  %v1571_v14 = vld [vmem:[%s2546_s2 + $0x58] sm:$0xff]  ;;  %v332_v15 = vld [vmem:[%s2546_s2 + $0x20] sm:$0xff]  ;;  %v333_v16 = vld [vmem:[%s2546_s2 + $0x28] sm:$0xff]  ;;  %s2552_s25 = smov (!%p226_p4, %s1533_s25), 953 }
  0x16   : >> { %1984 = vmatprep.subr.bf16.mxu0 %v1983_v8  ;;  %1974 = vmatpush3.bf16.msra.mxu1 %v1971_v4  ;;  %v1979_v17 = vpack.c.bf16 %v1571_v14, %v1570_v12  ;;  %v1991_v18 = vpack.c.bf16 %v333_v16, %v332_v15  ;;  %s2210_s9 = scalar_lea.vmem %s2152_s23, %s2552_s25  ;;  %s2214_s10 = scalar_lea.vmem %s2157_s26, %s2552_s25  ;;  %v1636_v19 = vld [vmem:[%s2546_s2 + $0x60] sm:$0xff]  ;;  %v1637_v20 = vld [vmem:[%s2546_s2 + $0x68] sm:$0xff]  ;;  %v1638_v24 = vld [vmem:[%s2546_s2 + $0x70] sm:$0xff] }
  0x17   : >> { %1986 = vmatpush3.bf16.msra.mxu0 %v1983_v8  ;;  %1976 = vmatprep.subr.bf16.mxu1 %v1975_v9  ;;  %v262_v21 = vld [vmem:[%s2214_s10] sm:$0xff]  ;;  %v1995_v23 = vpack.c.bf16 %v1637_v20, %v1636_v19  ;;  %v1639_v25 = vld [vmem:[%s2546_s2 + $0x78] sm:$0xff]  ;;  %v263_v26 = vld [vmem:[%s2214_s10 + $0x8] sm:$0xff]  ;;  %s2437_s27 = scalar_lea.vmem %s2162_s29, %s2552_s25 }
  0x18   : >> { %1988 = vmatprep.subr.bf16.mxu0 %v1987_v13  ;;  %v229_v22 = vld [vmem:[%s2210_s9] sm:$0xff]  ;;  %1803 = vmatprep.mubr.msk.f32.mxu1 %vm341_vm0, %v262_v21  ;;  %v230_v27 = vld [vmem:[%s2210_s9 + $0x8] sm:$0xff]  ;;  %v264_v28 = vld [vmem:[%s2214_s10 + $0x10] sm:$0xff]  ;;  %v1999_v29 = vpack.c.bf16 %v1639_v25, %v1638_v24 }
  0x19   : >> { %1863 = vmatprep.mubr.msk.f32.mxu0 %vm341_vm0, %v229_v22  ;;  %v231_v30 = vld [vmem:[%s2210_s9 + $0x10] sm:$0xff]  ;;  %v1640_v31 = vld [vmem:[%s2546_s2 + $0x80] sm:$0xff]  ;;  %v1641_v32 = vld [vmem:[%s2546_s2 + $0x88] sm:$0xff] }
  0x1a   : >> { %1978 = vmatpush3.bf16.msra.mxu1 %v1975_v9  ;;  %v265_v33 = vld [vmem:[%s2214_s10 + $0x18] sm:$0xff]  ;;  %v266_v35 = vld [vmem:[%s2214_s10 + $0x20] sm:$0xff]  ;;  %v2003_v37 = vpack.c.bf16 %v1641_v32, %v1640_v31  ;;  %v267_v38 = vld [vmem:[%s2214_s10 + $0x28] sm:$0xff] }
  0x1b   : >> { %1990 = vmatpush3.bf16.msra.mxu0 %v1987_v13  ;;  %1980 = vmatprep.subr.bf16.mxu1 %v1979_v17  ;;  %v232_v34 = vld [vmem:[%s2210_s9 + $0x18] sm:$0xff]  ;;  %v233_v36 = vld [vmem:[%s2210_s9 + $0x20] sm:$0xff]  ;;  %v234_v39 = vld [vmem:[%s2210_s9 + $0x28] sm:$0xff] }
  0x1c   : >> { %1992 = vmatprep.subr.bf16.mxu0 %v1991_v18  ;;  %v268_v40 = vld [vmem:[%s2214_s10 + $0x30] sm:$0xff]  ;;  %v269_v42 = vld [vmem:[%s2214_s10 + $0x38] sm:$0xff]  ;;  %v270_v44 = vld [vmem:[%s2214_s10 + $0x40] sm:$0xff] }
  0x1d   : >> { %v235_v41 = vld [vmem:[%s2210_s9 + $0x30] sm:$0xff]  ;;  %v236_v43 = vld [vmem:[%s2210_s9 + $0x38] sm:$0xff]  ;;  %v237_v45 = vld [vmem:[%s2210_s9 + $0x40] sm:$0xff] }
  0x1e   : >> { %1982 = vmatpush3.bf16.msra.mxu1 %v1979_v17  ;;  %v271_v46 = vld [vmem:[%s2214_s10 + $0x48] sm:$0xff]  ;;  %v272_v48 = vld [vmem:[%s2214_s10 + $0x50] sm:$0xff]  ;;  %v273_v50 = vld [vmem:[%s2214_s10 + $0x58] sm:$0xff] }
  0x1f   : >> { %1994 = vmatpush3.bf16.msra.mxu0 %v1991_v18  ;;  %2007 = vmatprep.subr.bf16.mxu1 %v1983_v8  ;;  %v238_v47 = vld [vmem:[%s2210_s9 + $0x48] sm:$0xff]  ;;  %v239_v49 = vld [vmem:[%s2210_s9 + $0x50] sm:$0xff]  ;;  %v240_v51 = vld [vmem:[%s2210_s9 + $0x58] sm:$0xff] }
  0x20   : >> { %1996 = vmatprep.subr.bf16.mxu0 %v1995_v23  ;;  %v274_v52 = vld [vmem:[%s2214_s10 + $0x60] sm:$0xff]  ;;  %v275_v54 = vld [vmem:[%s2214_s10 + $0x68] sm:$0xff]  ;;  %v276_v56 = vld [vmem:[%s2214_s10 + $0x70] sm:$0xff] }
  0x21   : >> { %1804 = vmatmul.mubr.msk.f32.vlgmr.msra.gmra.mrb[0].mxu1 %vm341_vm0, %v263_v26  ;;  %v241_v53 = vld [vmem:[%s2210_s9 + $0x60] sm:$0xff]  ;;  %v242_v55 = vld [vmem:[%s2210_s9 + $0x68] sm:$0xff]  ;;  %v243_v57 = vld [vmem:[%s2210_s9 + $0x70] sm:$0xff] }
  0x22   : >> { %1864 = vmatmul.mubr.msk.f32.vlgmr.msra.gmra.mrb[0].mxu0 %vm341_vm0, %v230_v27  ;;  %2010 = vmatpush3.bf16.msra.mxu1 %v1983_v8  ;;  %v277_v58 = vld [vmem:[%s2214_s10 + $0x78] sm:$0xff]  ;;  %v278_v60 = vld [vmem:[%s2214_s10 + $0x80] sm:$0xff]  ;;  %v279_v62 = vld [vmem:[%s2214_s10 + $0x88] sm:$0xff] }
  0x23   : >> { %1998 = vmatpush3.bf16.msra.mxu0 %v1995_v23  ;;  %1806 = vmatprep.mubr.msk.f32.mxu1 %vm341_vm0, %v264_v28  ;;  %v244_v59 = vld [vmem:[%s2210_s9 + $0x78] sm:$0xff]  ;;  %v1534_v61 = vld [vmem:[%s2210_s9 + $0x27] sm:$0xff]  ;;  %v1535_v63 = vld [vmem:[%s2210_s9 + $0x2f] sm:$0xff] }
  0x24   : >> { %1866 = vmatprep.mubr.msk.f32.mxu0 %vm341_vm0, %v231_v30  ;;  %2000 = vmatprep.subr.bf16.mxu0 %v1999_v29  ;;  %v280_v1 = vld [vmem:[%s2214_s10 + $0x90] sm:$0xff]  ;;  %v281_v3 = vld [vmem:[%s2214_s10 + $0x98] sm:$0xff]  ;;  %v282_v5 = vld [vmem:[%s2214_s10 + $0xa0] sm:$0xff] }
  0x25   : >> { %1807 = vmatmul.mubr.msk.f32.gmra.mrb[2].mxu1 %vm341_vm0, %v265_v33  ;;  %2008 = vmatprep.subr.bf16.mxu1 %v1987_v13  ;;  %v1536_v2 = vld [vmem:[%s2210_s9 + $0x37] sm:$0xff]  ;;  %v1537_v4 = vld [vmem:[%s2210_s9 + $0x3f] sm:$0xff]  ;;  %v1538_v6 = vld [vmem:[%s2210_s9 + $0x47] sm:$0xff] }
  0x26   : >> { %1867 = vmatmul.mubr.msk.f32.gmra.mrb[2].mxu0 %vm341_vm0, %v232_v34  ;;  %1809 = vmatprep.mubr.msk.f32.mxu1 %vm341_vm0, %v266_v35  ;;  %v283_v7 = vld [vmem:[%s2214_s10 + $0xa8] sm:$0xff]  ;;  %v284_v9 = vld [vmem:[%s2214_s10 + $0xb0] sm:$0xff]  ;;  %v285_v11 = vld [vmem:[%s2214_s10 + $0xb8] sm:$0xff] }
  0x27   : >> { %1869 = vmatprep.mubr.msk.f32.mxu0 %vm341_vm0, %v233_v36  ;;  %2002 = vmatpush3.bf16.msra.mxu0 %v1999_v29  ;;  %v1539_v8 = vld [vmem:[%s2210_s9 + $0x4f] sm:$0xff]  ;;  %v1540_v10 = vld [vmem:[%s2210_s9 + $0x57] sm:$0xff]  ;;  %v1541_v12 = vld [vmem:[%s2210_s9 + $0x5f] sm:$0xff] }
  0x28   : >> { %2004 = vmatprep.subr.bf16.mxu0 %v2003_v37  ;;  %2011 = vmatpush3.bf16.msra.mxu1 %v1987_v13  ;;  %v286_v13 = vld [vmem:[%s2214_s10 + $0xc0] sm:$0xff]  ;;  %v287_v15 = vld [vmem:[%s2214_s10 + $0xc8] sm:$0xff]  ;;  %v288_v17 = vld [vmem:[%s2214_s10 + $0xd0] sm:$0xff] }
  0x29   : >> { %1810 = vmatmul.mubr.msk.f32.gmra.mrb[4].mxu1 %vm341_vm0, %v267_v38  ;;  %2009 = vmatprep.subr.bf16.mxu1 %v1991_v18  ;;  %v1542_v14 = vld [vmem:[%s2210_s9 + $0x67] sm:$0xff]  ;;  %v1543_v16 = vld [vmem:[%s2210_s9 + $0x6f] sm:$0xff]  ;;  %v289_v19 = vld [vmem:[%s2214_s10 + $0xd8] sm:$0xff] }
  0x2a   : >> { %1870 = vmatmul.mubr.msk.f32.gmra.mrb[4].mxu0 %vm341_vm0, %v234_v39  ;;  %1812 = vmatprep.mubr.msk.f32.mxu1 %vm341_vm0, %v268_v40  ;;  %v1545_v20 = vld [vmem:[%s2210_s9 + $0x7f] sm:$0xff]  ;;  %v1546_v22 = vld [vmem:[%s2210_s9 + $0x87] sm:$0xff]  ;;  %v1547_v24 = vld [vmem:[%s2210_s9 + $0x8f] sm:$0xff] }
  0x2b   : >> { %1872 = vmatprep.mubr.msk.f32.mxu0 %vm341_vm0, %v235_v41  ;;  %2006 = vmatpush3.bf16.msra.mxu0 %v2003_v37  ;;  %v290_v21 = vld [vmem:[%s2214_s10 + $0xe0] sm:$0xff]  ;;  %v291_v23 = vld [vmem:[%s2214_s10 + $0xe8] sm:$0xff]  ;;  %v292_v25 = vld [vmem:[%s2214_s10 + $0xf0] sm:$0xff] }
  0x2c   : >> { %2012 = vmatpush3.bf16.msra.mxu1 %v1991_v18  ;;  %v1544_v18 = vld [vmem:[%s2210_s9 + $0x77] sm:$0xff]  ;;  %v1549_v28 = vld [vmem:[%s2210_s9 + $0x9f] sm:$0xff]  ;;  %v1550_v30 = vld [vmem:[%s2210_s9 + $0xa7] sm:$0xff] }
  0x2d   : >> { %1813 = vmatmul.mubr.msk.f32.gmra.mrb[6].mxu1 %vm341_vm0, %v269_v42  ;;  %v1548_v26 = vld [vmem:[%s2210_s9 + $0x97] sm:$0xff]  ;;  %v245_v29 = vld [vmem:[%s2210_s9 + $0x80] sm:$0xff]  ;;  %v246_v31 = vld [vmem:[%s2210_s9 + $0x88] sm:$0xff] }
  0x2e   : >> { %1873 = vmatmul.mubr.msk.f32.gmra.mrb[6].mxu0 %vm341_vm0, %v236_v43  ;;  %1815 = vmatprep.mubr.msk.f32.mxu1 %vm341_vm0, %v270_v44  ;;  %v293_v27 = vld [vmem:[%s2214_s10 + $0xf8] sm:$0xff]  ;;  %v1551_v32 = vld [vmem:[%s2210_s9 + $0xaf] sm:$0xff]  ;;  %v249_v37 = vld [vmem:[%s2210_s9 + $0xa0] sm:$0xff] }
  0x2f   : >> { %1875 = vmatprep.mubr.msk.f32.mxu0 %vm341_vm0, %v237_v45  ;;  %v247_v33 = vld [vmem:[%s2210_s9 + $0x90] sm:$0xff]  ;;  %v248_v35 = vld [vmem:[%s2210_s9 + $0x98] sm:$0xff]  ;;  %v1554_v38 = vld [vmem:[%s2210_s9 + $0xc7] sm:$0xff] }
  0x30   : >> { %v1552_v34 = vld [vmem:[%s2210_s9 + $0xb7] sm:$0xff]  ;;  %v1553_v36 = vld [vmem:[%s2210_s9 + $0xbf] sm:$0xff]  ;;  %v250_v39 = vld [vmem:[%s2210_s9 + $0xa8] sm:$0xff] }
  0x31   : >> { %1816 = vmatmul.mubr.msk.f32.gmra.mrb[8].mxu1 %vm341_vm0, %v271_v46  ;;  %v1555_v40 = vld [vmem:[%s2210_s9 + $0xcf] sm:$0xff]  ;;  %v1556_v42 = vld [vmem:[%s2210_s9 + $0xd7] sm:$0xff]  ;;  %v1557_v44 = vld [vmem:[%s2210_s9 + $0xdf] sm:$0xff] }
  0x32   : >> { %1876 = vmatmul.mubr.msk.f32.gmra.mrb[8].mxu0 %vm341_vm0, %v238_v47  ;;  %1818 = vmatprep.mubr.msk.f32.mxu1 %vm341_vm0, %v272_v48  ;;  %v251_v41 = vld [vmem:[%s2210_s9 + $0xb0] sm:$0xff]  ;;  %v252_v43 = vld [vmem:[%s2210_s9 + $0xb8] sm:$0xff]  ;;  %v253_v45 = vld [vmem:[%s2210_s9 + $0xc0] sm:$0xff] }
  0x33   : >> { %1878 = vmatprep.mubr.msk.f32.mxu0 %vm341_vm0, %v239_v49  ;;  %v1558_v46 = vld [vmem:[%s2210_s9 + $0xe7] sm:$0xff]  ;;  %v1559_v48 = vld [vmem:[%s2210_s9 + $0xef] sm:$0xff] }
  0x34   : >> { %v254_v47 = vld [vmem:[%s2210_s9 + $0xc8] sm:$0xff]  ;;  %v255_v49 = vld [vmem:[%s2210_s9 + $0xd0] sm:$0xff] }
  0x35   : >> { %1819 = vmatmul.mubr.msk.f32.gmra.mrb[10].mxu1 %vm341_vm0, %v273_v50  ;;  %v1560_v50 = vld [vmem:[%s2210_s9 + $0xf7] sm:$0xff] }
  0x36   : >> { %1879 = vmatmul.mubr.msk.f32.gmra.mrb[10].mxu0 %vm341_vm0, %v240_v51  ;;  %1821 = vmatprep.mubr.msk.f32.mxu1 %vm341_vm0, %v274_v52  ;;  %v256_v51 = vld [vmem:[%s2210_s9 + $0xd8] sm:$0xff] }
  0x37   : >> { %1881 = vmatprep.mubr.msk.f32.mxu0 %vm341_vm0, %v241_v53  ;;  %v1561_v52 = vld [vmem:[%s2210_s9 + $0xff] sm:$0xff] }
  0x38   : >> { %v257_v53 = vld [vmem:[%s2210_s9 + $0xe0] sm:$0xff] }
  0x39   : >> { %1822 = vmatmul.mubr.msk.f32.gmra.mrb[12].mxu1 %vm341_vm0, %v275_v54  ;;  %v1562_v54 = vld [vmem:[%s2210_s9 + $0x107] sm:$0xff] }
  0x3a   : >> { %1882 = vmatmul.mubr.msk.f32.gmra.mrb[12].mxu0 %vm341_vm0, %v242_v55  ;;  %1824 = vmatprep.mubr.msk.f32.mxu1 %vm341_vm0, %v276_v56  ;;  %v258_v55 = vld [vmem:[%s2210_s9 + $0xe8] sm:$0xff] }
  0x3b   : >> { %1884 = vmatprep.mubr.msk.f32.mxu0 %vm341_vm0, %v243_v57  ;;  %v1563_v56 = vld [vmem:[%s2210_s9 + $0x10f] sm:$0xff] }
  0x3c   : >> { %v259_v57 = vld [vmem:[%s2210_s9 + $0xf0] sm:$0xff] }
  0x3d   : >> { %1825 = vmatmul.mubr.msk.f32.gmra.mrb[14].mxu1 %vm341_vm0, %v277_v58  ;;  %v1564_v58 = vld [vmem:[%s2210_s9 + $0x117] sm:$0xff] }
  0x3e   : >> { %1885 = vmatmul.mubr.msk.f32.gmra.mrb[14].mxu0 %vm341_vm0, %v244_v59  ;;  %1827 = vmatprep.mubr.msk.f32.mxu1 %vm341_vm0, %v278_v60  ;;  %v260_v59 = vld [vmem:[%s2210_s9 + $0xf8] sm:$0xff] }
  0x3f   : >> { %1923 = vmatprep.mubr.msk.f32.mxu0 %vm341_vm0, %v1534_v61  ;;  %v1565_v60 = vld [vmem:[%s2210_s9 + $0x11f] sm:$0xff] }
  0x41   : >> { %1828 = vmatmul.mubr.msk.f32.gmra.mrb[16].mxu1 %vm341_vm0, %v279_v62 }
  0x42   : >> { %1924 = vmatmul.mubr.msk.f32.vlgmr.msra.gmra.mrb[0].mxu0 %vm341_vm0, %v1535_v63  ;;  %1830 = vmatprep.mubr.msk.f32.mxu1 %vm341_vm0, %v280_v1 }
  0x43   : >> { %1926 = vmatprep.mubr.msk.f32.mxu0 %vm341_vm0, %v1536_v2 }
  0x45   : >> { %1831 = vmatmul.mubr.msk.f32.gmra.mrb[18].mxu1 %vm341_vm0, %v281_v3 }
  0x46   : >> { %1927 = vmatmul.mubr.msk.f32.gmra.mrb[2].mxu0 %vm341_vm0, %v1537_v4  ;;  %1833 = vmatprep.mubr.msk.f32.mxu1 %vm341_vm0, %v282_v5 }
  0x47   : >> { %1929 = vmatprep.mubr.msk.f32.mxu0 %vm341_vm0, %v1538_v6 }
  0x49   : >> { %1834 = vmatmul.mubr.msk.f32.gmra.mrb[20].mxu1 %vm341_vm0, %v283_v7 }
  0x4a   : >> { %1930 = vmatmul.mubr.msk.f32.gmra.mrb[4].mxu0 %vm341_vm0, %v1539_v8  ;;  %1836 = vmatprep.mubr.msk.f32.mxu1 %vm341_vm0, %v284_v9 }
  0x4b   : >> { %1932 = vmatprep.mubr.msk.f32.mxu0 %vm341_vm0, %v1540_v10 }
  0x4d   : >> { %1837 = vmatmul.mubr.msk.f32.gmra.mrb[22].mxu1 %vm341_vm0, %v285_v11 }
  0x4e   : >> { %1933 = vmatmul.mubr.msk.f32.gmra.mrb[6].mxu0 %vm341_vm0, %v1541_v12  ;;  %1839 = vmatprep.mubr.msk.f32.mxu1 %vm341_vm0, %v286_v13 }
  0x4f   : >> { %1935 = vmatprep.mubr.msk.f32.mxu0 %vm341_vm0, %v1542_v14 }
  0x51   : >> { %1840 = vmatmul.mubr.msk.f32.gmra.mrb[24].mxu1 %vm341_vm0, %v287_v15 }
  0x52   : >> { %1936 = vmatmul.mubr.msk.f32.gmra.mrb[8].mxu0 %vm341_vm0, %v1543_v16  ;;  %1842 = vmatprep.mubr.msk.f32.mxu1 %vm341_vm0, %v288_v17 }
  0x53   : >> { %1938 = vmatprep.mubr.msk.f32.mxu0 %vm341_vm0, %v1544_v18 }
  0x55   : >> { %1843 = vmatmul.mubr.msk.f32.gmra.mrb[26].mxu1 %vm341_vm0, %v289_v19 }
  0x56   : >> { %1939 = vmatmul.mubr.msk.f32.gmra.mrb[10].mxu0 %vm341_vm0, %v1545_v20  ;;  %1845 = vmatprep.mubr.msk.f32.mxu1 %vm341_vm0, %v290_v21 }
  0x57   : >> { %1941 = vmatprep.mubr.msk.f32.mxu0 %vm341_vm0, %v1546_v22 }
  0x59   : >> { %1846 = vmatmul.mubr.msk.f32.gmra.mrb[28].mxu1 %vm341_vm0, %v291_v23 }
  0x5a   : >> { %1942 = vmatmul.mubr.msk.f32.gmra.mrb[12].mxu0 %vm341_vm0, %v1547_v24  ;;  %1848 = vmatprep.mubr.msk.f32.mxu1 %vm341_vm0, %v292_v25 }
  0x5b   : >> { %1944 = vmatprep.mubr.msk.f32.mxu0 %vm341_vm0, %v1548_v26 }
  0x5d   : >> { %1849 = vmatmul.mubr.msk.f32.gmra.mrb[30].mxu1 %vm341_vm0, %v293_v27 }
  0x5e   : >> { %1945 = vmatmul.mubr.msk.f32.gmra.mrb[14].mxu0 %vm341_vm0, %v1549_v28  ;;  %1887 = vmatprep.mubr.msk.f32.mxu1 %vm341_vm0, %v245_v29 }
  0x5f   : >> { %1947 = vmatprep.mubr.msk.f32.mxu0 %vm341_vm0, %v1550_v30 }
  0x61   : >> { %1888 = vmatmul.mubr.msk.f32.vlgmr.msra.gmra.mrb[16].mxu1 %vm341_vm0, %v246_v31 }
  0x62   : >> { %1948 = vmatmul.mubr.msk.f32.gmra.mrb[16].mxu0 %vm341_vm0, %v1551_v32  ;;  %1890 = vmatprep.mubr.msk.f32.mxu1 %vm341_vm0, %v247_v33 }
  0x63   : >> { %1950 = vmatprep.mubr.msk.f32.mxu0 %vm341_vm0, %v1552_v34 }
  0x65   : >> { %1891 = vmatmul.mubr.msk.f32.gmra.mrb[18].mxu1 %vm341_vm0, %v248_v35 }
  0x66   : >> { %1951 = vmatmul.mubr.msk.f32.gmra.mrb[18].mxu0 %vm341_vm0, %v1553_v36  ;;  %1893 = vmatprep.mubr.msk.f32.mxu1 %vm341_vm0, %v249_v37 }
  0x67   : >> { %1953 = vmatprep.mubr.msk.f32.mxu0 %vm341_vm0, %v1554_v38 }
  0x69   : >> { %1894 = vmatmul.mubr.msk.f32.gmra.mrb[20].mxu1 %vm341_vm0, %v250_v39 }
  0x6a   : >> { %1954 = vmatmul.mubr.msk.f32.gmra.mrb[20].mxu0 %vm341_vm0, %v1555_v40  ;;  %1896 = vmatprep.mubr.msk.f32.mxu1 %vm341_vm0, %v251_v41 }
  0x6b   : >> { %1956 = vmatprep.mubr.msk.f32.mxu0 %vm341_vm0, %v1556_v42 }
  0x6d   : >> { %1897 = vmatmul.mubr.msk.f32.gmra.mrb[22].mxu1 %vm341_vm0, %v252_v43 }
  0x6e   : >> { %1957 = vmatmul.mubr.msk.f32.gmra.mrb[22].mxu0 %vm341_vm0, %v1557_v44  ;;  %1899 = vmatprep.mubr.msk.f32.mxu1 %vm341_vm0, %v253_v45 }
  0x6f   : >> { %1959 = vmatprep.mubr.msk.f32.mxu0 %vm341_vm0, %v1558_v46 }
  0x71   : >> { %1900 = vmatmul.mubr.msk.f32.gmra.mrb[24].mxu1 %vm341_vm0, %v254_v47 }
  0x72   : >> { %1960 = vmatmul.mubr.msk.f32.gmra.mrb[24].mxu0 %vm341_vm0, %v1559_v48  ;;  %1902 = vmatprep.mubr.msk.f32.mxu1 %vm341_vm0, %v255_v49 }
  0x73   : >> { %1962 = vmatprep.mubr.msk.f32.mxu0 %vm341_vm0, %v1560_v50 }
  0x75   : >> { %1903 = vmatmul.mubr.msk.f32.gmra.mrb[26].mxu1 %vm341_vm0, %v256_v51 }
  0x76   : >> { %1963 = vmatmul.mubr.msk.f32.gmra.mrb[26].mxu0 %vm341_vm0, %v1561_v52  ;;  %1905 = vmatprep.mubr.msk.f32.mxu1 %vm341_vm0, %v257_v53 }
  0x77   : >> { %1965 = vmatprep.mubr.msk.f32.mxu0 %vm341_vm0, %v1562_v54 }
  0x79   : >> { %1906 = vmatmul.mubr.msk.f32.gmra.mrb[28].mxu1 %vm341_vm0, %v258_v55 }
  0x7a   : >> { %1966 = vmatmul.mubr.msk.f32.gmra.mrb[28].mxu0 %vm341_vm0, %v1563_v56  ;;  %1908 = vmatprep.mubr.msk.f32.mxu1 %vm341_vm0, %v259_v57 }
  0x7b   : >> { %1968 = vmatprep.mubr.msk.f32.mxu0 %vm341_vm0, %v1564_v58 }
  0x7d   : >> { %1909 = vmatmul.mubr.msk.f32.gmra.mrb[30].mxu1 %vm341_vm0, %v260_v59 }
  0x7e   : >> { %1969 = vmatmul.mubr.msk.f32.gmra.mrb[30].mxu0 %vm341_vm0, %v1565_v60 }
  0xf4   : >> { %v1805_v61 = vpop.f32.mrb[0].mxu1 }
  0xf5   : >> { %v504_v62 = vpop.f32.mrb[1].mxu1 }
  0xf8   : >> { %v1808_v63 = vpop.f32.mrb[2].mxu1 }
  0xf9   : >> { %v514_v1 = vpop.f32.mrb[3].mxu1 }
  0xfc   : >> { %v1811_v2 = vpop.f32.mrb[4].mxu1 }
  0xfd   : >> { %v524_v3 = vpop.f32.mrb[5].mxu1 }
 0x100   : >> { %v1814_v4 = vpop.f32.mrb[6].mxu1 }
 0x101   : >> { %v534_v5 = vpop.f32.mrb[7].mxu1 }
 0x104   : >> { %v1817_v6 = vpop.f32.mrb[8].mxu1 }
 0x105   : >> { %v544_v7 = vpop.f32.mrb[9].mxu1 }
 0x108   : >> { %v1820_v8 = vpop.f32.mrb[10].mxu1 }
 0x109   : >> { %v554_v9 = vpop.f32.mrb[11].mxu1 }
 0x10c   : >> { %v2426_v10 = vpop.f32.mrb[12].mxu1 }
 0x10d   : >> { %v2428_v11 = vpop.f32.mrb[13].mxu1 }
 0x110   : >> { %v2430_v12 = vpop.f32.mrb[14].mxu1 }
 0x111   : >> { %v2432_v13 = vpop.f32.mrb[15].mxu1 }
 0x115   : >> { %v1925_v14 = vpop.f32.mrb[0].mxu0 }
 0x116   : >> { %v2013_v15 = vadd.f32 %v1925_v14, %v1805_v61  ;;  %v1153_v16 = vpop.f32.mrb[1].mxu0 }
 0x117   : >> { %v2014_v17 = vadd.f32 %v1153_v16, %v504_v62 }
 0x118   : >> { %v1351_v18 = vadd.f32 %v2013_v15, %v2147_v0 }
 0x119   : >> { %v1350_v19 = vadd.f32 %v2014_v17, %v2147_v0  ;;  %v1928_v20 = vpop.f32.mrb[2].mxu0 }
 0x11a   : >> { %v1383_v21 = vmax.f32 %v1351_v18, 0.0  ;;  %v2015_v22 = vadd.f32 %v1928_v20, %v1808_v63  ;;  %v1163_v23 = vpop.f32.mrb[3].mxu0 }
 0x11b   : >> { %v1382_v24 = vmax.f32 %v1350_v19, 0.0  ;;  %v2016_v25 = vadd.f32 %v1163_v23, %v514_v1 }
 0x11c   : >> { %1417 = vst.msk [vmem:[%s2437_s27 + $0x8] sm:$0xff] %vm1415_vm1, %v1383_v21  ;;  %v1353_v26 = vadd.f32 %v2015_v22, %v2147_v0 }
 0x11d   : >> { %1416 = vst.msk [vmem:[%s2437_s27] sm:$0xff] %vm1415_vm1, %v1382_v24  ;;  %v1352_v27 = vadd.f32 %v2016_v25, %v2147_v0  ;;  %v1931_v28 = vpop.f32.mrb[4].mxu0 }
 0x11e   : >> { %v1385_v29 = vmax.f32 %v1353_v26, 0.0  ;;  %v2017_v30 = vadd.f32 %v1931_v28, %v1811_v2  ;;  %v1173_v31 = vpop.f32.mrb[5].mxu0 }
 0x11f   : >> { %v1384_v32 = vmax.f32 %v1352_v27, 0.0  ;;  %v2018_v33 = vadd.f32 %v1173_v31, %v524_v3 }
 0x120   : >> { %1419 = vst.msk [vmem:[%s2437_s27 + $0x18] sm:$0xff] %vm1415_vm1, %v1385_v29  ;;  %v1355_v34 = vadd.f32 %v2017_v30, %v2147_v0 }
 0x121   : >> { %1418 = vst.msk [vmem:[%s2437_s27 + $0x10] sm:$0xff] %vm1415_vm1, %v1384_v32  ;;  %v1354_v35 = vadd.f32 %v2018_v33, %v2147_v0  ;;  %v1934_v36 = vpop.f32.mrb[6].mxu0 }
 0x122   : >> { %v1387_v37 = vmax.f32 %v1355_v34, 0.0  ;;  %v2019_v38 = vadd.f32 %v1934_v36, %v1814_v4  ;;  %v1183_v39 = vpop.f32.mrb[7].mxu0 }
 0x123   : >> { %v1386_v40 = vmax.f32 %v1354_v35, 0.0  ;;  %v2020_v41 = vadd.f32 %v1183_v39, %v534_v5 }
 0x124   : >> { %1421 = vst.msk [vmem:[%s2437_s27 + $0x28] sm:$0xff] %vm1415_vm1, %v1387_v37  ;;  %v1357_v42 = vadd.f32 %v2019_v38, %v2147_v0 }
 0x125   : >> { %1420 = vst.msk [vmem:[%s2437_s27 + $0x20] sm:$0xff] %vm1415_vm1, %v1386_v40  ;;  %v1356_v43 = vadd.f32 %v2020_v41, %v2147_v0  ;;  %v1937_v44 = vpop.f32.mrb[8].mxu0 }
 0x126   : >> { %v1389_v45 = vmax.f32 %v1357_v42, 0.0  ;;  %v2021_v46 = vadd.f32 %v1937_v44, %v1817_v6  ;;  %v1193_v47 = vpop.f32.mrb[9].mxu0 }
 0x127   : >> { %v1388_v48 = vmax.f32 %v1356_v43, 0.0  ;;  %v2022_v49 = vadd.f32 %v1193_v47, %v544_v7 }
 0x128   : >> { %1423 = vst.msk [vmem:[%s2437_s27 + $0x38] sm:$0xff] %vm1415_vm1, %v1389_v45  ;;  %v1359_v50 = vadd.f32 %v2021_v46, %v2147_v0 }
 0x129   : >> { %1422 = vst.msk [vmem:[%s2437_s27 + $0x30] sm:$0xff] %vm1415_vm1, %v1388_v48  ;;  %v1358_v51 = vadd.f32 %v2022_v49, %v2147_v0  ;;  %v1940_v52 = vpop.f32.mrb[10].mxu0 }
 0x12a   : >> { %v1391_v53 = vmax.f32 %v1359_v50, 0.0  ;;  %v2023_v54 = vadd.f32 %v1940_v52, %v1820_v8  ;;  %v1203_v55 = vpop.f32.mrb[11].mxu0 }
 0x12b   : >> { %v1390_v56 = vmax.f32 %v1358_v51, 0.0  ;;  %v2024_v57 = vadd.f32 %v1203_v55, %v554_v9 }
 0x12c   : >> { %1425 = vst.msk [vmem:[%s2437_s27 + $0x48] sm:$0xff] %vm1415_vm1, %v1391_v53  ;;  %v1361_v58 = vadd.f32 %v2023_v54, %v2147_v0 }
 0x12d   : >> { %1424 = vst.msk [vmem:[%s2437_s27 + $0x40] sm:$0xff] %vm1415_vm1, %v1390_v56  ;;  %v1360_v59 = vadd.f32 %v2024_v57, %v2147_v0  ;;  %v1943_v60 = vpop.f32.mrb[12].mxu0 }
 0x12e   : >> { %v1393_v61 = vmax.f32 %v1361_v58, 0.0  ;;  %v2025_v62 = vadd.f32 %v1943_v60, %v2426_v10  ;;  %v1213_v63 = vpop.f32.mrb[13].mxu0 }
 0x12f   : >> { %v1392_v1 = vmax.f32 %v1360_v59, 0.0  ;;  %v2026_v2 = vadd.f32 %v1213_v63, %v2428_v11 }
 0x130   : >> { %1427 = vst.msk [vmem:[%s2437_s27 + $0x58] sm:$0xff] %vm1415_vm1, %v1393_v61  ;;  %v1363_v3 = vadd.f32 %v2025_v62, %v2147_v0 }
 0x131   : >> { %1426 = vst.msk [vmem:[%s2437_s27 + $0x50] sm:$0xff] %vm1415_vm1, %v1392_v1  ;;  %v1362_v4 = vadd.f32 %v2026_v2, %v2147_v0  ;;  %v1946_v5 = vpop.f32.mrb[14].mxu0 }
 0x132   : >> { %v1395_v6 = vmax.f32 %v1363_v3, 0.0  ;;  %v2027_v7 = vadd.f32 %v1946_v5, %v2430_v12  ;;  %v1223_v8 = vpop.f32.mrb[15].mxu0 }
 0x133   : >> { %v1394_v9 = vmax.f32 %v1362_v4, 0.0  ;;  %v2028_v10 = vadd.f32 %v1223_v8, %v2432_v13 }
 0x134   : >> { %1429 = vst.msk [vmem:[%s2437_s27 + $0x68] sm:$0xff] %vm1415_vm1, %v1395_v6  ;;  %v1365_v11 = vadd.f32 %v2027_v7, %v2147_v0  ;;  %v1889_v14 = vpop.f32.mrb[16].mxu1 }
 0x135   : >> { %1428 = vst.msk [vmem:[%s2437_s27 + $0x60] sm:$0xff] %vm1415_vm1, %v1394_v9  ;;  %v1364_v15 = vadd.f32 %v2028_v10, %v2147_v0  ;;  %v1949_v16 = vpop.f32.mrb[16].mxu0  ;;  %v905_v17 = vpop.f32.mrb[17].mxu1 }
 0x136   : >> { %v1397_v18 = vmax.f32 %v1365_v11, 0.0  ;;  %v2029_v19 = vadd.f32 %v1949_v16, %v1889_v14  ;;  %v1233_v12 = vpop.f32.mrb[17].mxu0 }
 0x137   : >> { %v1396_v20 = vmax.f32 %v1364_v15, 0.0  ;;  %v2030_v21 = vadd.f32 %v1233_v12, %v905_v17 }
 0x138   : >> { %1431 = vst.msk [vmem:[%s2437_s27 + $0x78] sm:$0xff] %vm1415_vm1, %v1397_v18  ;;  %v1367_v13 = vadd.f32 %v2029_v19, %v2147_v0  ;;  %v1892_v22 = vpop.f32.mrb[18].mxu1 }
 0x139   : >> { %1430 = vst.msk [vmem:[%s2437_s27 + $0x70] sm:$0xff] %vm1415_vm1, %v1396_v20  ;;  %v1366_v23 = vadd.f32 %v2030_v21, %v2147_v0  ;;  %v1952_v24 = vpop.f32.mrb[18].mxu0  ;;  %v915_v25 = vpop.f32.mrb[19].mxu1 }
 0x13a   : >> { %v1399_v26 = vmax.f32 %v1367_v13, 0.0  ;;  %v2031_v27 = vadd.f32 %v1952_v24, %v1892_v22  ;;  %v1243_v28 = vpop.f32.mrb[19].mxu0 }
 0x13b   : >> { %v1398_v29 = vmax.f32 %v1366_v23, 0.0  ;;  %v2032_v30 = vadd.f32 %v1243_v28, %v915_v25 }
 0x13c   : >> { %1433 = vst.msk [vmem:[%s2437_s27 + $0x88] sm:$0xff] %vm1415_vm1, %v1399_v26  ;;  %v1369_v31 = vadd.f32 %v2031_v27, %v2147_v0  ;;  %v1895_v32 = vpop.f32.mrb[20].mxu1 }
 0x13d   : >> { %1432 = vst.msk [vmem:[%s2437_s27 + $0x80] sm:$0xff] %vm1415_vm1, %v1398_v29  ;;  %v1368_v33 = vadd.f32 %v2032_v30, %v2147_v0  ;;  %v1955_v34 = vpop.f32.mrb[20].mxu0  ;;  %v925_v35 = vpop.f32.mrb[21].mxu1 }
 0x13e   : >> { %v1401_v36 = vmax.f32 %v1369_v31, 0.0  ;;  %v2033_v37 = vadd.f32 %v1955_v34, %v1895_v32  ;;  %v1253_v38 = vpop.f32.mrb[21].mxu0 }
 0x13f   : >> { %v1400_v39 = vmax.f32 %v1368_v33, 0.0  ;;  %v2034_v40 = vadd.f32 %v1253_v38, %v925_v35 }
 0x140   : >> { %1435 = vst.msk [vmem:[%s2437_s27 + $0x98] sm:$0xff] %vm1415_vm1, %v1401_v36  ;;  %v1371_v41 = vadd.f32 %v2033_v37, %v2147_v0  ;;  %v1898_v42 = vpop.f32.mrb[22].mxu1 }
 0x141   : >> { %1434 = vst.msk [vmem:[%s2437_s27 + $0x90] sm:$0xff] %vm1415_vm1, %v1400_v39  ;;  %v1370_v43 = vadd.f32 %v2034_v40, %v2147_v0  ;;  %v1958_v44 = vpop.f32.mrb[22].mxu0  ;;  %v935_v45 = vpop.f32.mrb[23].mxu1 }
 0x142   : >> { %v1403_v46 = vmax.f32 %v1371_v41, 0.0  ;;  %v2035_v47 = vadd.f32 %v1958_v44, %v1898_v42  ;;  %v1263_v48 = vpop.f32.mrb[23].mxu0 }
 0x143   : >> { %v1402_v49 = vmax.f32 %v1370_v43, 0.0  ;;  %v2036_v50 = vadd.f32 %v1263_v48, %v935_v45 }
 0x144   : >> { %1437 = vst.msk [vmem:[%s2437_s27 + $0xa8] sm:$0xff] %vm1415_vm1, %v1403_v46  ;;  %v1373_v51 = vadd.f32 %v2035_v47, %v2147_v0  ;;  %v1901_v52 = vpop.f32.mrb[24].mxu1 }
 0x145   : >> { %1436 = vst.msk [vmem:[%s2437_s27 + $0xa0] sm:$0xff] %vm1415_vm1, %v1402_v49  ;;  %v1372_v53 = vadd.f32 %v2036_v50, %v2147_v0  ;;  %v1961_v54 = vpop.f32.mrb[24].mxu0  ;;  %v945_v55 = vpop.f32.mrb[25].mxu1 }
 0x146   : >> { %v1405_v56 = vmax.f32 %v1373_v51, 0.0  ;;  %v2037_v57 = vadd.f32 %v1961_v54, %v1901_v52  ;;  %v1273_v58 = vpop.f32.mrb[25].mxu0 }
 0x147   : >> { %v1404_v59 = vmax.f32 %v1372_v53, 0.0  ;;  %v2038_v60 = vadd.f32 %v1273_v58, %v945_v55 }
 0x148   : >> { %1439 = vst.msk [vmem:[%s2437_s27 + $0xb8] sm:$0xff] %vm1415_vm1, %v1405_v56  ;;  %v1375_v61 = vadd.f32 %v2037_v57, %v2147_v0  ;;  %v1904_v62 = vpop.f32.mrb[26].mxu1 }
 0x149   : >> { %1438 = vst.msk [vmem:[%s2437_s27 + $0xb0] sm:$0xff] %vm1415_vm1, %v1404_v59  ;;  %v1374_v63 = vadd.f32 %v2038_v60, %v2147_v0  ;;  %v1964_v1 = vpop.f32.mrb[26].mxu0  ;;  %v955_v2 = vpop.f32.mrb[27].mxu1 }
 0x14a   : >> { %v1407_v3 = vmax.f32 %v1375_v61, 0.0  ;;  %v2039_v4 = vadd.f32 %v1964_v1, %v1904_v62  ;;  %v1283_v5 = vpop.f32.mrb[27].mxu0 }
 0x14b   : >> { %v1406_v6 = vmax.f32 %v1374_v63, 0.0  ;;  %v2040_v7 = vadd.f32 %v1283_v5, %v955_v2 }
 0x14c   : >> { %1441 = vst.msk [vmem:[%s2437_s27 + $0xc8] sm:$0xff] %vm1415_vm1, %v1407_v3  ;;  %v1377_v8 = vadd.f32 %v2039_v4, %v2147_v0  ;;  %v1907_v9 = vpop.f32.mrb[28].mxu1 }
 0x14d   : >> { %1440 = vst.msk [vmem:[%s2437_s27 + $0xc0] sm:$0xff] %vm1415_vm1, %v1406_v6  ;;  %v1376_v10 = vadd.f32 %v2040_v7, %v2147_v0  ;;  %v1967_v11 = vpop.f32.mrb[28].mxu0  ;;  %v965_v14 = vpop.f32.mrb[29].mxu1 }
 0x14e   : >> { %v1409_v15 = vmax.f32 %v1377_v8, 0.0  ;;  %v2041_v16 = vadd.f32 %v1967_v11, %v1907_v9  ;;  %v1293_v17 = vpop.f32.mrb[29].mxu0 }
 0x14f   : >> { %v1408_v18 = vmax.f32 %v1376_v10, 0.0  ;;  %v2042_v19 = vadd.f32 %v1293_v17, %v965_v14 }
 0x150   : >> { %1443 = vst.msk [vmem:[%s2437_s27 + $0xd8] sm:$0xff] %vm1415_vm1, %v1409_v15  ;;  %v1379_v12 = vadd.f32 %v2041_v16, %v2147_v0  ;;  %v1910_v20 = vpop.f32.mrb[30].mxu1 }
 0x151   : >> { %1442 = vst.msk [vmem:[%s2437_s27 + $0xd0] sm:$0xff] %vm1415_vm1, %v1408_v18  ;;  %v1378_v21 = vadd.f32 %v2042_v19, %v2147_v0  ;;  %v1970_v13 = vpop.f32.mrb[30].mxu0  ;;  %v975_v22 = vpop.f32.mrb[31].mxu1 }
 0x152   : >> { %v1411_v23 = vmax.f32 %v1379_v12, 0.0  ;;  %v2043_v24 = vadd.f32 %v1970_v13, %v1910_v20  ;;  %v1303_v25 = vpop.f32.mrb[31].mxu0 }
 0x153   : >> { %v1410_v26 = vmax.f32 %v1378_v21, 0.0  ;;  %v2044_v27 = vadd.f32 %v1303_v25, %v975_v22  ;;  %223 = sbr.rel (!%p221_p5) target bundleno = 18 (0x12), region = 82 }
 0x154   : >> { %1445 = vst.msk [vmem:[%s2437_s27 + $0xe8] sm:$0xff] %vm1415_vm1, %v1411_v23  ;;  %v1381_v28 = vadd.f32 %v2043_v24, %v2147_v0 }
 0x155   : >> { %1444 = vst.msk [vmem:[%s2437_s27 + $0xe0] sm:$0xff] %vm1415_vm1, %v1410_v26  ;;  %v1380_v29 = vadd.f32 %v2044_v27, %v2147_v0 }
 0x156   : >> { %v1413_v30 = vmax.f32 %v1381_v28, 0.0 }
 0x157   : >> { %v1412_v31 = vmax.f32 %v1380_v29, 0.0 }
 0x158   : >> { %1447 = vst.msk [vmem:[%s2437_s27 + $0xf8] sm:$0xff] %vm1415_vm1, %v1413_v30 }
 0x159   : >> { %1446 = vst.msk [vmem:[%s2437_s27 + $0xf0] sm:$0xff] %vm1415_vm1, %v1412_v31 }
 0x15a PF: > { %s14_s15 = sadd.s32 1, %s2105_s15  }
 0x15b   : > { %p11_p6 = scmp.ge.s32.totalorder %s14_s15, 4  }
 0x15d   :  { %13 = sbr.rel (!%p11_p6) target bundleno = 1 (0x1), region = 93 }

// kernel: dlean2net_forward.7
= control target key start
LH: loop header
LB: loop body
LE: loop exit
PB: predicated region body
PF: predicated region fallthrough
CT: control target
= control target key end

     0   :  { %s2194_s15 = smov 0   ;;  %s2659_s0 = inlined_call_operand.vmem [shape: f32[2,304,72], index: 0, kind: input, shape index: {}]   ;;  %s2660_s1 = inlined_call_operand.vmem [shape: f32[2,285,72], index: 1, kind: input, shape index: {}]   ;;  %s2661_s2 = inlined_call_operand.vmem [shape: f32[3,72,36], index: 2, kind: input, shape index: {}]   ;;  %s2662_s3 = inlined_call_operand.vmem [shape: f32[1,36], index: 3, kind: input, shape index: {}]   ;;  %s2663_s4 = inlined_call_operand.vmem [shape: f32[2,285,36], index: 4, kind: output, shape index: {}]  }
   0x1 LB: > { %s1534_s16 = sadd.s32 4294967295, %s2163_s15   ;;  %p1538_p0 = scmp.ge.s32.totalorder %s2163_s15, 1  ;;  %s2163_s15 = sphi %s2194_s15, %s14_s15  }
   0x2   : > { %p172_p1 = scmp.lt.s32.totalorder %s2163_s15, 3 }
   0x4   : > { %p173_p2 = pnand %p1538_p0, %p172_p1 }
   0x5   : > { %p203_p3 = scmp.lt.s32.totalorder (!%p173_p2), %s1534_s16, 1  ;;  %v2205_v0 = vld [vmem:[%s2662_s3] ss:$0 sm:$0xff] (!%p173_p2)  ;;  %s2222_s30 = smov (!%p173_p2), 0  }
   0x6   : > { %176 = sbr.rel (%p173_p2) target bundleno = 352 (0x160), region = 36 }
   0xd   : > { %s2665_s16 = smov (!%p203_p3, %s1534_s16), 1 }
   0xe   : > { %s2135_s19 = smul.u32 304, %s2665_s16 }
   0xf   : > { %s2136_s20 = smul.u32 288, %s2665_s16 }
  0x10   : > { %s2210_s23 = scalar_lea.vmem %s2659_s0, %s2135_s19 }
  0x11   : > { %s2215_s26 = scalar_lea.vmem %s2660_s1, %s2136_s20  ;;  %s2220_s29 = scalar_lea.vmem %s2663_s4, %s2136_s20 }
  0x12 LB: >> { %v1575_v1 = vld [vmem:[%s2661_s2 + $0x48] sm:$0xff]  ;;  %v1576_v2 = vld [vmem:[%s2661_s2 + $0x50] sm:$0xff]  ;;  %v328_v3 = vld [vmem:[%s2661_s2] sm:$0xff]  ;;  %s1542_s25 = sshll.u32 %s2167_s30, 8  ;;  %vm347_vm0 = vcmask 588800   ;;  %vm1424_vm1 = vcmask 293888   ;;  %s2167_s30 = sphi %s2222_s30, %s224_s30  }
  0x13   : >> { %v2013_v4 = vpack.c.bf16 %v1576_v2, %v1575_v1  ;;  %v329_v5 = vld [vmem:[%s2661_s2 + $0x8] sm:$0xff]  ;;  %v1577_v6 = vld [vmem:[%s2661_s2 + $0x58] sm:$0xff]  ;;  %v1578_v7 = vld [vmem:[%s2661_s2 + $0x60] sm:$0xff]  ;;  %p226_p4 = scmp.lt.s32.totalorder %s1542_s25, 29  ;;  %s224_s30 = sadd.s32 1, %s2167_s30  }
  0x14   : >> { %v2245_v8 = vpack.c.bf16 %v329_v5, %v328_v3  ;;  %v2017_v9 = vpack.c.bf16 %v1578_v7, %v1577_v6  ;;  %v330_v10 = vld [vmem:[%s2661_s2 + $0x10] sm:$0xff]  ;;  %v331_v11 = vld [vmem:[%s2661_s2 + $0x18] sm:$0xff]  ;;  %v1579_v12 = vld [vmem:[%s2661_s2 + $0x68] sm:$0xff]  ;;  %p221_p5 = scmp.ge.s32.totalorder %s224_s30, 2  }
  0x15   : >> { %2014 = vmatprep.subr.bf16.mxu1 %v2013_v4  ;;  %v2257_v13 = vpack.c.bf16 %v331_v11, %v330_v10  ;;  %v1580_v14 = vld [vmem:[%s2661_s2 + $0x70] sm:$0xff]  ;;  %v332_v15 = vld [vmem:[%s2661_s2 + $0x20] sm:$0xff]  ;;  %v333_v16 = vld [vmem:[%s2661_s2 + $0x28] sm:$0xff]  ;;  %s2667_s25 = smov (!%p226_p4, %s1542_s25), 29 }
  0x16   : >> { %2030 = vmatprep.subr.bf16.mxu0 %v2245_v8  ;;  %2016 = vmatpush3.bf16.msra.mxu1 %v2013_v4  ;;  %v2021_v17 = vpack.c.bf16 %v1580_v14, %v1579_v12  ;;  %v2273_v18 = vpack.c.bf16 %v333_v16, %v332_v15  ;;  %v1581_v19 = vld [vmem:[%s2661_s2 + $0x78] sm:$0xff]  ;;  %v1582_v20 = vld [vmem:[%s2661_s2 + $0x80] sm:$0xff]  ;;  %v334_v21 = vld [vmem:[%s2661_s2 + $0x30] sm:$0xff]  ;;  %s2289_s18 = scalar_lea.vmem %s2210_s23, %s2667_s25  ;;  %s2293_s19 = scalar_lea.vmem %s2215_s26, %s2667_s25 }
  0x17   : >> { %2032 = vmatpush3.bf16.msra.mxu0 %v2245_v8  ;;  %2018 = vmatprep.subr.bf16.mxu1 %v2017_v9  ;;  %v335_v22 = vld [vmem:[%s2661_s2 + $0x38] sm:$0xff]  ;;  %v262_v23 = vld [vmem:[%s2293_s19] sm:$0xff]  ;;  %v2025_v25 = vpack.c.bf16 %v1582_v20, %v1581_v19  ;;  %v1583_v27 = vld [vmem:[%s2661_s2 + $0x88] sm:$0xff] }
  0x18   : >> { %2034 = vmatprep.subr.bf16.mxu0 %v2257_v13  ;;  %v229_v24 = vld [vmem:[%s2289_s18] sm:$0xff]  ;;  %v2299_v26 = vpack.c.bf16 %v335_v22, %v334_v21  ;;  %1833 = vmatprep.mubr.msk.f32.mxu1 %vm347_vm0, %v262_v23  ;;  %v1648_v29 = vld [vmem:[%s2661_s2 + $0x90] sm:$0xff]  ;;  %v1649_v30 = vld [vmem:[%s2661_s2 + $0x98] sm:$0xff] }
  0x19   : >> { %1899 = vmatprep.mubr.msk.f32.mxu0 %vm347_vm0, %v229_v24  ;;  %v2311_v28 = vld [vmem:[%s2661_s2 + $0x40] sm:$0xff]  ;;  %v263_v31 = vld [vmem:[%s2293_s19 + $0x8] sm:$0xff]  ;;  %v2045_v33 = vpack.c.bf16 %v1649_v30, %v1648_v29  ;;  %v264_v36 = vld [vmem:[%s2293_s19 + $0x10] sm:$0xff] }
  0x1a   : >> { %2020 = vmatpush3.bf16.msra.mxu1 %v2017_v9  ;;  %v230_v32 = vld [vmem:[%s2289_s18 + $0x8] sm:$0xff]  ;;  %v1650_v34 = vld [vmem:[%s2661_s2 + $0xa0] sm:$0xff]  ;;  %v1652_v37 = vld [vmem:[%s2661_s2 + $0xb0] sm:$0xff] }
  0x1b   : >> { %2036 = vmatpush3.bf16.msra.mxu0 %v2257_v13  ;;  %2022 = vmatprep.subr.bf16.mxu1 %v2021_v17  ;;  %v1651_v35 = vld [vmem:[%s2661_s2 + $0xa8] sm:$0xff]  ;;  %v231_v38 = vld [vmem:[%s2289_s18 + $0x10] sm:$0xff]  ;;  %v265_v39 = vld [vmem:[%s2293_s19 + $0x18] sm:$0xff] }
  0x1c   : >> { %2038 = vmatprep.subr.bf16.mxu0 %v2273_v18  ;;  %v1653_v40 = vld [vmem:[%s2661_s2 + $0xb8] sm:$0xff]  ;;  %v266_v42 = vld [vmem:[%s2293_s19 + $0x20] sm:$0xff]  ;;  %v2049_v43 = vpack.c.bf16 %v1651_v35, %v1650_v34  ;;  %v267_v46 = vld [vmem:[%s2293_s19 + $0x28] sm:$0xff] }
  0x1d   : >> { %v232_v41 = vld [vmem:[%s2289_s18 + $0x18] sm:$0xff]  ;;  %v233_v44 = vld [vmem:[%s2289_s18 + $0x20] sm:$0xff]  ;;  %v2053_v45 = vpack.c.bf16 %v1653_v40, %v1652_v37  ;;  %v1655_v48 = vld [vmem:[%s2661_s2 + $0xc8] sm:$0xff] }
  0x1e   : >> { %2024 = vmatpush3.bf16.msra.mxu1 %v2021_v17  ;;  %v1654_v47 = vld [vmem:[%s2661_s2 + $0xc0] sm:$0xff]  ;;  %v234_v49 = vld [vmem:[%s2289_s18 + $0x28] sm:$0xff]  ;;  %v268_v50 = vld [vmem:[%s2293_s19 + $0x30] sm:$0xff] }
  0x1f   : >> { %2040 = vmatpush3.bf16.msra.mxu0 %v2273_v18  ;;  %2026 = vmatprep.subr.bf16.mxu1 %v2025_v25  ;;  %v235_v51 = vld [vmem:[%s2289_s18 + $0x30] sm:$0xff]  ;;  %v2057_v52 = vpack.c.bf16 %v1655_v48, %v1654_v47  ;;  %v269_v53 = vld [vmem:[%s2293_s19 + $0x38] sm:$0xff]  ;;  %v270_v55 = vld [vmem:[%s2293_s19 + $0x40] sm:$0xff] }
  0x20   : >> { %2042 = vmatprep.subr.bf16.mxu0 %v2299_v26  ;;  %v236_v54 = vld [vmem:[%s2289_s18 + $0x38] sm:$0xff]  ;;  %v237_v56 = vld [vmem:[%s2289_s18 + $0x40] sm:$0xff]  ;;  %v271_v57 = vld [vmem:[%s2293_s19 + $0x48] sm:$0xff] }
  0x21   : >> { %v1656_v58 = vld [vmem:[%s2661_s2 + $0xd0] sm:$0xff]  ;;  %v238_v59 = vld [vmem:[%s2289_s18 + $0x48] sm:$0xff]  ;;  %v273_v62 = vld [vmem:[%s2293_s19 + $0x58] sm:$0xff] }
  0x22   : >> { %2028 = vmatpush3.bf16.msra.mxu1 %v2025_v25  ;;  %v272_v60 = vld [vmem:[%s2293_s19 + $0x50] sm:$0xff]  ;;  %v240_v63 = vld [vmem:[%s2289_s18 + $0x58] sm:$0xff]  ;;  %v274_v1 = vld [vmem:[%s2293_s19 + $0x60] sm:$0xff] }
  0x23   : >> { %2044 = vmatpush3.bf16.msra.mxu0 %v2299_v26  ;;  %1831 = vmatprep.subr.mxu1 %v1583_v27  ;;  %v239_v61 = vld [vmem:[%s2289_s18 + $0x50] sm:$0xff]  ;;  %v241_v2 = vld [vmem:[%s2289_s18 + $0x60] sm:$0xff]  ;;  %v275_v3 = vld [vmem:[%s2293_s19 + $0x68] sm:$0xff] }
  0x24   : >> { %1897 = vmatprep.subr.mxu0 %v2311_v28  ;;  %v242_v4 = vld [vmem:[%s2289_s18 + $0x68] sm:$0xff]  ;;  %v276_v5 = vld [vmem:[%s2293_s19 + $0x70] sm:$0xff]  ;;  %v277_v7 = vld [vmem:[%s2293_s19 + $0x78] sm:$0xff] }
  0x25   : >> { %v243_v6 = vld [vmem:[%s2289_s18 + $0x70] sm:$0xff]  ;;  %v278_v9 = vld [vmem:[%s2293_s19 + $0x80] sm:$0xff]  ;;  %v279_v11 = vld [vmem:[%s2293_s19 + $0x88] sm:$0xff] }
  0x26   : >> { %1832 = vmatpush3.msra.mxu1 %v1583_v27  ;;  %v1543_v10 = vld [vmem:[%s2289_s18 + $0x13] sm:$0xff]  ;;  %v1544_v12 = vld [vmem:[%s2289_s18 + $0x1b] sm:$0xff]  ;;  %v1545_v14 = vld [vmem:[%s2289_s18 + $0x23] sm:$0xff] }
  0x27   : >> { %1898 = vmatpush3.msra.mxu0 %v2311_v28  ;;  %1834 = vmatmul.mubr.msk.f32.vlgmr.msra.gmra.mrb[0].mxu1 %vm347_vm0, %v263_v31  ;;  %v281_v15 = vld [vmem:[%s2293_s19 + $0x98] sm:$0xff]  ;;  %v1546_v16 = vld [vmem:[%s2289_s18 + $0x2b] sm:$0xff]  ;;  %v282_v17 = vld [vmem:[%s2293_s19 + $0xa0] sm:$0xff] }
  0x28   : >> { %2061 = vmatprep.subr.bf16.mxu1 %v2245_v8  ;;  %1900 = vmatmul.mubr.msk.f32.vlgmr.msra.gmra.mrb[0].mxu0 %vm347_vm0, %v230_v32  ;;  %v283_v19 = vld [vmem:[%s2293_s19 + $0xa8] sm:$0xff]  ;;  %v1548_v20 = vld [vmem:[%s2289_s18 + $0x3b] sm:$0xff]  ;;  %v284_v21 = vld [vmem:[%s2293_s19 + $0xb0] sm:$0xff] }
  0x29   : >> { %2046 = vmatprep.subr.bf16.mxu0 %v2045_v33  ;;  %2066 = vmatpush3.bf16.msra.mxu1 %v2245_v8  ;;  %v244_v8 = vld [vmem:[%s2289_s18 + $0x78] sm:$0xff]  ;;  %v1549_v22 = vld [vmem:[%s2289_s18 + $0x43] sm:$0xff]  ;;  %v1550_v24 = vld [vmem:[%s2289_s18 + $0x4b] sm:$0xff] }
  0x2a   : >> { %2048 = vmatpush3.bf16.msra.mxu0 %v2045_v33  ;;  %1836 = vmatprep.mubr.msk.f32.mxu1 %vm347_vm0, %v264_v36  ;;  %v285_v23 = vld [vmem:[%s2293_s19 + $0xb8] sm:$0xff]  ;;  %v286_v25 = vld [vmem:[%s2293_s19 + $0xc0] sm:$0xff]  ;;  %v287_v27 = vld [vmem:[%s2293_s19 + $0xc8] sm:$0xff] }
  0x2b   : >> { %1902 = vmatprep.mubr.msk.f32.mxu0 %vm347_vm0, %v231_v38  ;;  %1837 = vmatmul.mubr.msk.f32.gmra.mrb[2].mxu1 %vm347_vm0, %v265_v39  ;;  %v288_v29 = vld [vmem:[%s2293_s19 + $0xd0] sm:$0xff]  ;;  %v1553_v30 = vld [vmem:[%s2289_s18 + $0x63] sm:$0xff]  ;;  %v289_v31 = vld [vmem:[%s2293_s19 + $0xd8] sm:$0xff] }
  0x2c   : >> { %1903 = vmatmul.mubr.msk.f32.gmra.mrb[2].mxu0 %vm347_vm0, %v232_v41  ;;  %1839 = vmatprep.mubr.msk.f32.mxu1 %vm347_vm0, %v266_v42  ;;  %v1554_v32 = vld [vmem:[%s2289_s18 + $0x6b] sm:$0xff]  ;;  %v290_v33 = vld [vmem:[%s2293_s19 + $0xe0] sm:$0xff]  ;;  %v1555_v34 = vld [vmem:[%s2289_s18 + $0x73] sm:$0xff] }
  0x2d   : >> { %1905 = vmatprep.mubr.msk.f32.mxu0 %vm347_vm0, %v233_v44  ;;  %2050 = vmatprep.subr.bf16.mxu0 %v2049_v43  ;;  %v291_v35 = vld [vmem:[%s2293_s19 + $0xe8] sm:$0xff]  ;;  %v1556_v36 = vld [vmem:[%s2289_s18 + $0x7b] sm:$0xff]  ;;  %v292_v37 = vld [vmem:[%s2293_s19 + $0xf0] sm:$0xff] }
  0x2e   : >> { %2052 = vmatpush3.bf16.msra.mxu0 %v2049_v43  ;;  %2062 = vmatprep.subr.bf16.mxu1 %v2257_v13  ;;  %v1557_v38 = vld [vmem:[%s2289_s18 + $0x83] sm:$0xff]  ;;  %v293_v39 = vld [vmem:[%s2293_s19 + $0xf8] sm:$0xff]  ;;  %v1558_v40 = vld [vmem:[%s2289_s18 + $0x8b] sm:$0xff] }
  0x2f   : >> { %1840 = vmatmul.mubr.msk.f32.gmra.mrb[4].mxu1 %vm347_vm0, %v267_v46  ;;  %2054 = vmatprep.subr.bf16.mxu0 %v2053_v45  ;;  %v245_v41 = vld [vmem:[%s2289_s18 + $0x80] sm:$0xff]  ;;  %v1559_v42 = vld [vmem:[%s2289_s18 + $0x93] sm:$0xff]  ;;  %v246_v43 = vld [vmem:[%s2289_s18 + $0x88] sm:$0xff] }
  0x30   : >> { %1906 = vmatmul.mubr.msk.f32.gmra.mrb[4].mxu0 %vm347_vm0, %v234_v49  ;;  %1842 = vmatprep.mubr.msk.f32.mxu1 %vm347_vm0, %v268_v50  ;;  %v1560_v44 = vld [vmem:[%s2289_s18 + $0x9b] sm:$0xff]  ;;  %v1561_v46 = vld [vmem:[%s2289_s18 + $0xa3] sm:$0xff]  ;;  %v1562_v48 = vld [vmem:[%s2289_s18 + $0xab] sm:$0xff] }
  0x31   : >> { %1908 = vmatprep.mubr.msk.f32.mxu0 %vm347_vm0, %v235_v51  ;;  %2067 = vmatpush3.bf16.msra.mxu1 %v2257_v13  ;;  %v280_v13 = vld [vmem:[%s2293_s19 + $0x90] sm:$0xff]  ;;  %v248_v47 = vld [vmem:[%s2289_s18 + $0x98] sm:$0xff]  ;;  %v249_v49 = vld [vmem:[%s2289_s18 + $0xa0] sm:$0xff] }
  0x32   : >> { %2056 = vmatpush3.bf16.msra.mxu0 %v2053_v45  ;;  %2063 = vmatprep.subr.bf16.mxu1 %v2273_v18  ;;  %v247_v45 = vld [vmem:[%s2289_s18 + $0x90] sm:$0xff]  ;;  %v250_v51 = vld [vmem:[%s2289_s18 + $0xa8] sm:$0xff] }
  0x33   : >> { %1843 = vmatmul.mubr.msk.f32.gmra.mrb[6].mxu1 %vm347_vm0, %v269_v53  ;;  %2058 = vmatprep.subr.bf16.mxu0 %v2057_v52  ;;  %v1563_v50 = vld [vmem:[%s2289_s18 + $0xb3] sm:$0xff] }
  0x34   : >> { %1909 = vmatmul.mubr.msk.f32.gmra.mrb[6].mxu0 %vm347_vm0, %v236_v54  ;;  %1845 = vmatprep.mubr.msk.f32.mxu1 %vm347_vm0, %v270_v55  ;;  %v251_v53 = vld [vmem:[%s2289_s18 + $0xb0] sm:$0xff]  ;;  %v1565_v54 = vld [vmem:[%s2289_s18 + $0xc3] sm:$0xff]  ;;  %v252_v55 = vld [vmem:[%s2289_s18 + $0xb8] sm:$0xff] }
  0x35   : >> { %1911 = vmatprep.mubr.msk.f32.mxu0 %vm347_vm0, %v237_v56  ;;  %2068 = vmatpush3.bf16.msra.mxu1 %v2273_v18  ;;  %v1547_v18 = vld [vmem:[%s2289_s18 + $0x33] sm:$0xff]  ;;  %v1566_v56 = vld [vmem:[%s2289_s18 + $0xcb] sm:$0xff] }
  0x36   : >> { %2060 = vmatpush3.bf16.msra.mxu0 %v2057_v52  ;;  %2064 = vmatprep.subr.bf16.mxu1 %v2299_v26  ;;  %v1564_v52 = vld [vmem:[%s2289_s18 + $0xbb] sm:$0xff] }
  0x37   : >> { %1846 = vmatmul.mubr.msk.f32.gmra.mrb[8].mxu1 %vm347_vm0, %v271_v57  ;;  %1963 = vmatprep.subr.mxu0 %v1656_v58  ;;  %v253_v57 = vld [vmem:[%s2289_s18 + $0xc0] sm:$0xff] }
  0x38   : >> { %1912 = vmatmul.mubr.msk.f32.gmra.mrb[8].mxu0 %vm347_vm0, %v238_v59  ;;  %1848 = vmatprep.mubr.msk.f32.mxu1 %vm347_vm0, %v272_v60  ;;  %v254_v59 = vld [vmem:[%s2289_s18 + $0xc8] sm:$0xff]  ;;  %v1568_v60 = vld [vmem:[%s2289_s18 + $0xdb] sm:$0xff] }
  0x39   : >> { %1914 = vmatprep.mubr.msk.f32.mxu0 %vm347_vm0, %v239_v61  ;;  %2069 = vmatpush3.bf16.msra.mxu1 %v2299_v26  ;;  %v1551_v26 = vld [vmem:[%s2289_s18 + $0x53] sm:$0xff] }
  0x3a   : >> { %1964 = vmatpush3.msra.mxu0 %v1656_v58  ;;  %2065 = vmatprep.subr.mxu1 %v2311_v28  ;;  %v1567_v58 = vld [vmem:[%s2289_s18 + $0xd3] sm:$0xff] }
  0x3b   : >> { %1849 = vmatmul.mubr.msk.f32.gmra.mrb[10].mxu1 %vm347_vm0, %v273_v62  ;;  %v255_v61 = vld [vmem:[%s2289_s18 + $0xd0] sm:$0xff]  ;;  %v1569_v62 = vld [vmem:[%s2289_s18 + $0xe3] sm:$0xff] }
  0x3c   : >> { %1915 = vmatmul.mubr.msk.f32.gmra.mrb[10].mxu0 %vm347_vm0, %v240_v63  ;;  %1851 = vmatprep.mubr.msk.f32.mxu1 %vm347_vm0, %v274_v1  ;;  %v256_v63 = vld [vmem:[%s2289_s18 + $0xd8] sm:$0xff]  ;;  %v1570_v1 = vld [vmem:[%s2289_s18 + $0xeb] sm:$0xff] }
  0x3d   : >> { %1917 = vmatprep.mubr.msk.f32.mxu0 %vm347_vm0, %v241_v2  ;;  %2070 = vmatpush3.msra.mxu1 %v2311_v28  ;;  %v1552_v28 = vld [vmem:[%s2289_s18 + $0x5b] sm:$0xff] }
  0x3e   : >> { %v257_v2 = vld [vmem:[%s2289_s18 + $0xe0] sm:$0xff] }
  0x3f   : >> { %1852 = vmatmul.mubr.msk.f32.gmra.mrb[12].mxu1 %vm347_vm0, %v275_v3  ;;  %v1571_v3 = vld [vmem:[%s2289_s18 + $0xf3] sm:$0xff] }
  0x40   : >> { %1918 = vmatmul.mubr.msk.f32.gmra.mrb[12].mxu0 %vm347_vm0, %v242_v4  ;;  %1854 = vmatprep.mubr.msk.f32.mxu1 %vm347_vm0, %v276_v5  ;;  %v258_v4 = vld [vmem:[%s2289_s18 + $0xe8] sm:$0xff]  ;;  %v1572_v5 = vld [vmem:[%s2289_s18 + $0xfb] sm:$0xff] }
  0x41   : >> { %1920 = vmatprep.mubr.msk.f32.mxu0 %vm347_vm0, %v243_v6  ;;  %v259_v6 = vld [vmem:[%s2289_s18 + $0xf0] sm:$0xff] }
  0x43   : >> { %1855 = vmatmul.mubr.msk.f32.gmra.mrb[14].mxu1 %vm347_vm0, %v277_v7  ;;  %v1573_v7 = vld [vmem:[%s2289_s18 + $0x103] sm:$0xff] }
  0x44   : >> { %1921 = vmatmul.mubr.msk.f32.gmra.mrb[14].mxu0 %vm347_vm0, %v244_v8  ;;  %1857 = vmatprep.mubr.msk.f32.mxu1 %vm347_vm0, %v278_v9  ;;  %v260_v8 = vld [vmem:[%s2289_s18 + $0xf8] sm:$0xff]  ;;  %v1574_v9 = vld [vmem:[%s2289_s18 + $0x10b] sm:$0xff]  ;;  %s2552_s18 = scalar_lea.vmem %s2220_s29, %s2667_s25 }
  0x45   : >> { %1965 = vmatprep.mubr.msk.f32.mxu0 %vm347_vm0, %v1543_v10 }
  0x47   : >> { %1858 = vmatmul.mubr.msk.f32.gmra.mrb[16].mxu1 %vm347_vm0, %v279_v11 }
  0x48   : >> { %1966 = vmatmul.mubr.msk.f32.vlgmr.msra.gmra.mrb[0].mxu0 %vm347_vm0, %v1544_v12  ;;  %1860 = vmatprep.mubr.msk.f32.mxu1 %vm347_vm0, %v280_v13 }
  0x49   : >> { %1968 = vmatprep.mubr.msk.f32.mxu0 %vm347_vm0, %v1545_v14 }
  0x4b   : >> { %1861 = vmatmul.mubr.msk.f32.gmra.mrb[18].mxu1 %vm347_vm0, %v281_v15 }
  0x4c   : >> { %1969 = vmatmul.mubr.msk.f32.gmra.mrb[2].mxu0 %vm347_vm0, %v1546_v16  ;;  %1863 = vmatprep.mubr.msk.f32.mxu1 %vm347_vm0, %v282_v17 }
  0x4d   : >> { %1971 = vmatprep.mubr.msk.f32.mxu0 %vm347_vm0, %v1547_v18 }
  0x4f   : >> { %1864 = vmatmul.mubr.msk.f32.gmra.mrb[20].mxu1 %vm347_vm0, %v283_v19 }
  0x50   : >> { %1972 = vmatmul.mubr.msk.f32.gmra.mrb[4].mxu0 %vm347_vm0, %v1548_v20  ;;  %1866 = vmatprep.mubr.msk.f32.mxu1 %vm347_vm0, %v284_v21 }
  0x51   : >> { %1974 = vmatprep.mubr.msk.f32.mxu0 %vm347_vm0, %v1549_v22 }
  0x53   : >> { %1867 = vmatmul.mubr.msk.f32.gmra.mrb[22].mxu1 %vm347_vm0, %v285_v23 }
  0x54   : >> { %1975 = vmatmul.mubr.msk.f32.gmra.mrb[6].mxu0 %vm347_vm0, %v1550_v24  ;;  %1869 = vmatprep.mubr.msk.f32.mxu1 %vm347_vm0, %v286_v25 }
  0x55   : >> { %1977 = vmatprep.mubr.msk.f32.mxu0 %vm347_vm0, %v1551_v26 }
  0x57   : >> { %1870 = vmatmul.mubr.msk.f32.gmra.mrb[24].mxu1 %vm347_vm0, %v287_v27 }
  0x58   : >> { %1978 = vmatmul.mubr.msk.f32.gmra.mrb[8].mxu0 %vm347_vm0, %v1552_v28  ;;  %1872 = vmatprep.mubr.msk.f32.mxu1 %vm347_vm0, %v288_v29 }
  0x59   : >> { %1980 = vmatprep.mubr.msk.f32.mxu0 %vm347_vm0, %v1553_v30 }
  0x5b   : >> { %1873 = vmatmul.mubr.msk.f32.gmra.mrb[26].mxu1 %vm347_vm0, %v289_v31 }
  0x5c   : >> { %1981 = vmatmul.mubr.msk.f32.gmra.mrb[10].mxu0 %vm347_vm0, %v1554_v32  ;;  %1875 = vmatprep.mubr.msk.f32.mxu1 %vm347_vm0, %v290_v33 }
  0x5d   : >> { %1983 = vmatprep.mubr.msk.f32.mxu0 %vm347_vm0, %v1555_v34 }
  0x5f   : >> { %1876 = vmatmul.mubr.msk.f32.gmra.mrb[28].mxu1 %vm347_vm0, %v291_v35 }
  0x60   : >> { %1984 = vmatmul.mubr.msk.f32.gmra.mrb[12].mxu0 %vm347_vm0, %v1556_v36  ;;  %1878 = vmatprep.mubr.msk.f32.mxu1 %vm347_vm0, %v292_v37 }
  0x61   : >> { %1986 = vmatprep.mubr.msk.f32.mxu0 %vm347_vm0, %v1557_v38 }
  0x63   : >> { %1879 = vmatmul.mubr.msk.f32.gmra.mrb[30].mxu1 %vm347_vm0, %v293_v39 }
  0x64   : >> { %1987 = vmatmul.mubr.msk.f32.gmra.mrb[14].mxu0 %vm347_vm0, %v1558_v40  ;;  %1923 = vmatprep.mubr.msk.f32.mxu1 %vm347_vm0, %v245_v41 }
  0x65   : >> { %1989 = vmatprep.mubr.msk.f32.mxu0 %vm347_vm0, %v1559_v42 }
  0x67   : >> { %1924 = vmatmul.mubr.msk.f32.vlgmr.msra.gmra.mrb[16].mxu1 %vm347_vm0, %v246_v43 }
  0x68   : >> { %1990 = vmatmul.mubr.msk.f32.gmra.mrb[16].mxu0 %vm347_vm0, %v1560_v44  ;;  %1926 = vmatprep.mubr.msk.f32.mxu1 %vm347_vm0, %v247_v45 }
  0x69   : >> { %1992 = vmatprep.mubr.msk.f32.mxu0 %vm347_vm0, %v1561_v46 }
  0x6b   : >> { %1927 = vmatmul.mubr.msk.f32.gmra.mrb[18].mxu1 %vm347_vm0, %v248_v47 }
  0x6c   : >> { %1993 = vmatmul.mubr.msk.f32.gmra.mrb[18].mxu0 %vm347_vm0, %v1562_v48  ;;  %1929 = vmatprep.mubr.msk.f32.mxu1 %vm347_vm0, %v249_v49 }
  0x6d   : >> { %1995 = vmatprep.mubr.msk.f32.mxu0 %vm347_vm0, %v1563_v50 }
  0x6f   : >> { %1930 = vmatmul.mubr.msk.f32.gmra.mrb[20].mxu1 %vm347_vm0, %v250_v51 }
  0x70   : >> { %1996 = vmatmul.mubr.msk.f32.gmra.mrb[20].mxu0 %vm347_vm0, %v1564_v52  ;;  %1932 = vmatprep.mubr.msk.f32.mxu1 %vm347_vm0, %v251_v53 }
  0x71   : >> { %1998 = vmatprep.mubr.msk.f32.mxu0 %vm347_vm0, %v1565_v54 }
  0x73   : >> { %1933 = vmatmul.mubr.msk.f32.gmra.mrb[22].mxu1 %vm347_vm0, %v252_v55 }
  0x74   : >> { %1999 = vmatmul.mubr.msk.f32.gmra.mrb[22].mxu0 %vm347_vm0, %v1566_v56  ;;  %1935 = vmatprep.mubr.msk.f32.mxu1 %vm347_vm0, %v253_v57 }
  0x75   : >> { %2001 = vmatprep.mubr.msk.f32.mxu0 %vm347_vm0, %v1567_v58 }
  0x77   : >> { %1936 = vmatmul.mubr.msk.f32.gmra.mrb[24].mxu1 %vm347_vm0, %v254_v59 }
  0x78   : >> { %2002 = vmatmul.mubr.msk.f32.gmra.mrb[24].mxu0 %vm347_vm0, %v1568_v60  ;;  %1938 = vmatprep.mubr.msk.f32.mxu1 %vm347_vm0, %v255_v61 }
  0x79   : >> { %2004 = vmatprep.mubr.msk.f32.mxu0 %vm347_vm0, %v1569_v62 }
  0x7b   : >> { %1939 = vmatmul.mubr.msk.f32.gmra.mrb[26].mxu1 %vm347_vm0, %v256_v63 }
  0x7c   : >> { %2005 = vmatmul.mubr.msk.f32.gmra.mrb[26].mxu0 %vm347_vm0, %v1570_v1  ;;  %1941 = vmatprep.mubr.msk.f32.mxu1 %vm347_vm0, %v257_v2 }
  0x7d   : >> { %2007 = vmatprep.mubr.msk.f32.mxu0 %vm347_vm0, %v1571_v3 }
  0x7f   : >> { %1942 = vmatmul.mubr.msk.f32.gmra.mrb[28].mxu1 %vm347_vm0, %v258_v4 }
  0x80   : >> { %2008 = vmatmul.mubr.msk.f32.gmra.mrb[28].mxu0 %vm347_vm0, %v1572_v5  ;;  %1944 = vmatprep.mubr.msk.f32.mxu1 %vm347_vm0, %v259_v6 }
  0x81   : >> { %2010 = vmatprep.mubr.msk.f32.mxu0 %vm347_vm0, %v1573_v7 }
  0x83   : >> { %1945 = vmatmul.mubr.msk.f32.gmra.mrb[30].mxu1 %vm347_vm0, %v260_v8 }
  0x84   : >> { %2011 = vmatmul.mubr.msk.f32.gmra.mrb[30].mxu0 %vm347_vm0, %v1574_v9 }
  0xfa   : >> { %v1835_v10 = vpop.f32.mrb[0].mxu1 }
  0xfb   : >> { %v510_v11 = vpop.f32.mrb[1].mxu1 }
  0xfe   : >> { %v1838_v12 = vpop.f32.mrb[2].mxu1 }
  0xff   : >> { %v520_v13 = vpop.f32.mrb[3].mxu1 }
 0x102   : >> { %v1841_v14 = vpop.f32.mrb[4].mxu1 }
 0x103   : >> { %v530_v15 = vpop.f32.mrb[5].mxu1 }
 0x106   : >> { %v1844_v16 = vpop.f32.mrb[6].mxu1 }
 0x107   : >> { %v540_v17 = vpop.f32.mrb[7].mxu1 }
 0x10a   : >> { %v1847_v18 = vpop.f32.mrb[8].mxu1 }
 0x10b   : >> { %v550_v19 = vpop.f32.mrb[9].mxu1 }
 0x10e   : >> { %v1850_v20 = vpop.f32.mrb[10].mxu1 }
 0x10f   : >> { %v560_v21 = vpop.f32.mrb[11].mxu1 }
 0x112   : >> { %v2541_v22 = vpop.f32.mrb[12].mxu1 }
 0x113   : >> { %v2543_v23 = vpop.f32.mrb[13].mxu1 }
 0x116   : >> { %v2545_v24 = vpop.f32.mrb[14].mxu1 }
 0x117   : >> { %v2547_v25 = vpop.f32.mrb[15].mxu1 }
 0x11b   : >> { %v1967_v26 = vpop.f32.mrb[0].mxu0 }
 0x11c   : >> { %v2071_v27 = vadd.f32 %v1967_v26, %v1835_v10  ;;  %v1162_v28 = vpop.f32.mrb[1].mxu0 }
 0x11d   : >> { %v2072_v29 = vadd.f32 %v1162_v28, %v510_v11 }
 0x11e   : >> { %v1360_v30 = vadd.f32 %v2071_v27, %v2205_v0 }
 0x11f   : >> { %v1359_v31 = vadd.f32 %v2072_v29, %v2205_v0  ;;  %v1970_v32 = vpop.f32.mrb[2].mxu0 }
 0x120   : >> { %v1392_v33 = vmax.f32 %v1360_v30, 0.0  ;;  %v2073_v34 = vadd.f32 %v1970_v32, %v1838_v12  ;;  %v1172_v35 = vpop.f32.mrb[3].mxu0 }
 0x121   : >> { %v1391_v36 = vmax.f32 %v1359_v31, 0.0  ;;  %v2074_v37 = vadd.f32 %v1172_v35, %v520_v13 }
 0x122   : >> { %1426 = vst.msk [vmem:[%s2552_s18 + $0x8] sm:$0xff] %vm1424_vm1, %v1392_v33  ;;  %v1362_v38 = vadd.f32 %v2073_v34, %v2205_v0 }
 0x123   : >> { %1425 = vst.msk [vmem:[%s2552_s18] sm:$0xff] %vm1424_vm1, %v1391_v36  ;;  %v1361_v39 = vadd.f32 %v2074_v37, %v2205_v0  ;;  %v1973_v40 = vpop.f32.mrb[4].mxu0 }
 0x124   : >> { %v1394_v41 = vmax.f32 %v1362_v38, 0.0  ;;  %v2075_v42 = vadd.f32 %v1973_v40, %v1841_v14  ;;  %v1182_v43 = vpop.f32.mrb[5].mxu0 }
 0x125   : >> { %v1393_v44 = vmax.f32 %v1361_v39, 0.0  ;;  %v2076_v45 = vadd.f32 %v1182_v43, %v530_v15 }
 0x126   : >> { %1428 = vst.msk [vmem:[%s2552_s18 + $0x18] sm:$0xff] %vm1424_vm1, %v1394_v41  ;;  %v1364_v46 = vadd.f32 %v2075_v42, %v2205_v0 }
 0x127   : >> { %1427 = vst.msk [vmem:[%s2552_s18 + $0x10] sm:$0xff] %vm1424_vm1, %v1393_v44  ;;  %v1363_v47 = vadd.f32 %v2076_v45, %v2205_v0  ;;  %v1976_v48 = vpop.f32.mrb[6].mxu0 }
 0x128   : >> { %v1396_v49 = vmax.f32 %v1364_v46, 0.0  ;;  %v2077_v50 = vadd.f32 %v1976_v48, %v1844_v16  ;;  %v1192_v51 = vpop.f32.mrb[7].mxu0 }
 0x129   : >> { %v1395_v52 = vmax.f32 %v1363_v47, 0.0  ;;  %v2078_v53 = vadd.f32 %v1192_v51, %v540_v17 }
 0x12a   : >> { %1430 = vst.msk [vmem:[%s2552_s18 + $0x28] sm:$0xff] %vm1424_vm1, %v1396_v49  ;;  %v1366_v54 = vadd.f32 %v2077_v50, %v2205_v0 }
 0x12b   : >> { %1429 = vst.msk [vmem:[%s2552_s18 + $0x20] sm:$0xff] %vm1424_vm1, %v1395_v52  ;;  %v1365_v55 = vadd.f32 %v2078_v53, %v2205_v0  ;;  %v1979_v56 = vpop.f32.mrb[8].mxu0 }
 0x12c   : >> { %v1398_v57 = vmax.f32 %v1366_v54, 0.0  ;;  %v2079_v58 = vadd.f32 %v1979_v56, %v1847_v18  ;;  %v1202_v59 = vpop.f32.mrb[9].mxu0 }
 0x12d   : >> { %v1397_v60 = vmax.f32 %v1365_v55, 0.0  ;;  %v2080_v61 = vadd.f32 %v1202_v59, %v550_v19 }
 0x12e   : >> { %1432 = vst.msk [vmem:[%s2552_s18 + $0x38] sm:$0xff] %vm1424_vm1, %v1398_v57  ;;  %v1368_v62 = vadd.f32 %v2079_v58, %v2205_v0 }
 0x12f   : >> { %1431 = vst.msk [vmem:[%s2552_s18 + $0x30] sm:$0xff] %vm1424_vm1, %v1397_v60  ;;  %v1367_v63 = vadd.f32 %v2080_v61, %v2205_v0  ;;  %v1982_v1 = vpop.f32.mrb[10].mxu0 }
 0x130   : >> { %v1400_v2 = vmax.f32 %v1368_v62, 0.0  ;;  %v2081_v3 = vadd.f32 %v1982_v1, %v1850_v20  ;;  %v1212_v4 = vpop.f32.mrb[11].mxu0 }
 0x131   : >> { %v1399_v5 = vmax.f32 %v1367_v63, 0.0  ;;  %v2082_v6 = vadd.f32 %v1212_v4, %v560_v21 }
 0x132   : >> { %1434 = vst.msk [vmem:[%s2552_s18 + $0x48] sm:$0xff] %vm1424_vm1, %v1400_v2  ;;  %v1370_v7 = vadd.f32 %v2081_v3, %v2205_v0 }
 0x133   : >> { %1433 = vst.msk [vmem:[%s2552_s18 + $0x40] sm:$0xff] %vm1424_vm1, %v1399_v5  ;;  %v1369_v8 = vadd.f32 %v2082_v6, %v2205_v0  ;;  %v1985_v9 = vpop.f32.mrb[12].mxu0 }
 0x134   : >> { %v1402_v10 = vmax.f32 %v1370_v7, 0.0  ;;  %v2083_v11 = vadd.f32 %v1985_v9, %v2541_v22  ;;  %v1222_v12 = vpop.f32.mrb[13].mxu0 }
 0x135   : >> { %v1401_v13 = vmax.f32 %v1369_v8, 0.0  ;;  %v2084_v14 = vadd.f32 %v1222_v12, %v2543_v23 }
 0x136   : >> { %1436 = vst.msk [vmem:[%s2552_s18 + $0x58] sm:$0xff] %vm1424_vm1, %v1402_v10  ;;  %v1372_v15 = vadd.f32 %v2083_v11, %v2205_v0 }
 0x137   : >> { %1435 = vst.msk [vmem:[%s2552_s18 + $0x50] sm:$0xff] %vm1424_vm1, %v1401_v13  ;;  %v1371_v16 = vadd.f32 %v2084_v14, %v2205_v0  ;;  %v1988_v17 = vpop.f32.mrb[14].mxu0 }
 0x138   : >> { %v1404_v18 = vmax.f32 %v1372_v15, 0.0  ;;  %v2085_v19 = vadd.f32 %v1988_v17, %v2545_v24  ;;  %v1232_v20 = vpop.f32.mrb[15].mxu0 }
 0x139   : >> { %v1403_v21 = vmax.f32 %v1371_v16, 0.0  ;;  %v2086_v22 = vadd.f32 %v1232_v20, %v2547_v25 }
 0x13a   : >> { %1438 = vst.msk [vmem:[%s2552_s18 + $0x68] sm:$0xff] %vm1424_vm1, %v1404_v18  ;;  %v1374_v23 = vadd.f32 %v2085_v19, %v2205_v0  ;;  %v1925_v26 = vpop.f32.mrb[16].mxu1 }
 0x13b   : >> { %1437 = vst.msk [vmem:[%s2552_s18 + $0x60] sm:$0xff] %vm1424_vm1, %v1403_v21  ;;  %v1373_v27 = vadd.f32 %v2086_v22, %v2205_v0  ;;  %v1991_v28 = vpop.f32.mrb[16].mxu0  ;;  %v911_v29 = vpop.f32.mrb[17].mxu1 }
 0x13c   : >> { %v1406_v30 = vmax.f32 %v1374_v23, 0.0  ;;  %v2087_v31 = vadd.f32 %v1991_v28, %v1925_v26  ;;  %v1242_v24 = vpop.f32.mrb[17].mxu0 }
 0x13d   : >> { %v1405_v32 = vmax.f32 %v1373_v27, 0.0  ;;  %v2088_v33 = vadd.f32 %v1242_v24, %v911_v29 }
 0x13e   : >> { %1440 = vst.msk [vmem:[%s2552_s18 + $0x78] sm:$0xff] %vm1424_vm1, %v1406_v30  ;;  %v1376_v25 = vadd.f32 %v2087_v31, %v2205_v0  ;;  %v1928_v34 = vpop.f32.mrb[18].mxu1 }
 0x13f   : >> { %1439 = vst.msk [vmem:[%s2552_s18 + $0x70] sm:$0xff] %vm1424_vm1, %v1405_v32  ;;  %v1375_v35 = vadd.f32 %v2088_v33, %v2205_v0  ;;  %v1994_v36 = vpop.f32.mrb[18].mxu0  ;;  %v921_v37 = vpop.f32.mrb[19].mxu1 }
 0x140   : >> { %v1408_v38 = vmax.f32 %v1376_v25, 0.0  ;;  %v2089_v39 = vadd.f32 %v1994_v36, %v1928_v34  ;;  %v1252_v40 = vpop.f32.mrb[19].mxu0 }
 0x141   : >> { %v1407_v41 = vmax.f32 %v1375_v35, 0.0  ;;  %v2090_v42 = vadd.f32 %v1252_v40, %v921_v37 }
 0x142   : >> { %1442 = vst.msk [vmem:[%s2552_s18 + $0x88] sm:$0xff] %vm1424_vm1, %v1408_v38  ;;  %v1378_v43 = vadd.f32 %v2089_v39, %v2205_v0  ;;  %v1931_v44 = vpop.f32.mrb[20].mxu1 }
 0x143   : >> { %1441 = vst.msk [vmem:[%s2552_s18 + $0x80] sm:$0xff] %vm1424_vm1, %v1407_v41  ;;  %v1377_v45 = vadd.f32 %v2090_v42, %v2205_v0  ;;  %v1997_v46 = vpop.f32.mrb[20].mxu0  ;;  %v931_v47 = vpop.f32.mrb[21].mxu1 }
 0x144   : >> { %v1410_v48 = vmax.f32 %v1378_v43, 0.0  ;;  %v2091_v49 = vadd.f32 %v1997_v46, %v1931_v44  ;;  %v1262_v50 = vpop.f32.mrb[21].mxu0 }
 0x145   : >> { %v1409_v51 = vmax.f32 %v1377_v45, 0.0  ;;  %v2092_v52 = vadd.f32 %v1262_v50, %v931_v47 }
 0x146   : >> { %1444 = vst.msk [vmem:[%s2552_s18 + $0x98] sm:$0xff] %vm1424_vm1, %v1410_v48  ;;  %v1380_v53 = vadd.f32 %v2091_v49, %v2205_v0  ;;  %v1934_v54 = vpop.f32.mrb[22].mxu1 }
 0x147   : >> { %1443 = vst.msk [vmem:[%s2552_s18 + $0x90] sm:$0xff] %vm1424_vm1, %v1409_v51  ;;  %v1379_v55 = vadd.f32 %v2092_v52, %v2205_v0  ;;  %v2000_v56 = vpop.f32.mrb[22].mxu0  ;;  %v941_v57 = vpop.f32.mrb[23].mxu1 }
 0x148   : >> { %v1412_v58 = vmax.f32 %v1380_v53, 0.0  ;;  %v2093_v59 = vadd.f32 %v2000_v56, %v1934_v54  ;;  %v1272_v60 = vpop.f32.mrb[23].mxu0 }
 0x149   : >> { %v1411_v61 = vmax.f32 %v1379_v55, 0.0  ;;  %v2094_v62 = vadd.f32 %v1272_v60, %v941_v57 }
 0x14a   : >> { %1446 = vst.msk [vmem:[%s2552_s18 + $0xa8] sm:$0xff] %vm1424_vm1, %v1412_v58  ;;  %v1382_v63 = vadd.f32 %v2093_v59, %v2205_v0  ;;  %v1937_v1 = vpop.f32.mrb[24].mxu1 }
 0x14b   : >> { %1445 = vst.msk [vmem:[%s2552_s18 + $0xa0] sm:$0xff] %vm1424_vm1, %v1411_v61  ;;  %v1381_v2 = vadd.f32 %v2094_v62, %v2205_v0  ;;  %v2003_v3 = vpop.f32.mrb[24].mxu0  ;;  %v951_v4 = vpop.f32.mrb[25].mxu1 }
 0x14c   : >> { %v1414_v5 = vmax.f32 %v1382_v63, 0.0  ;;  %v2095_v6 = vadd.f32 %v2003_v3, %v1937_v1  ;;  %v1282_v7 = vpop.f32.mrb[25].mxu0 }
 0x14d   : >> { %v1413_v8 = vmax.f32 %v1381_v2, 0.0  ;;  %v2096_v9 = vadd.f32 %v1282_v7, %v951_v4 }
 0x14e   : >> { %1448 = vst.msk [vmem:[%s2552_s18 + $0xb8] sm:$0xff] %vm1424_vm1, %v1414_v5  ;;  %v1384_v10 = vadd.f32 %v2095_v6, %v2205_v0  ;;  %v1940_v11 = vpop.f32.mrb[26].mxu1 }
 0x14f   : >> { %1447 = vst.msk [vmem:[%s2552_s18 + $0xb0] sm:$0xff] %vm1424_vm1, %v1413_v8  ;;  %v1383_v12 = vadd.f32 %v2096_v9, %v2205_v0  ;;  %v2006_v13 = vpop.f32.mrb[26].mxu0  ;;  %v961_v14 = vpop.f32.mrb[27].mxu1 }
 0x150   : >> { %v1416_v15 = vmax.f32 %v1384_v10, 0.0  ;;  %v2097_v16 = vadd.f32 %v2006_v13, %v1940_v11  ;;  %v1292_v17 = vpop.f32.mrb[27].mxu0 }
 0x151   : >> { %v1415_v18 = vmax.f32 %v1383_v12, 0.0  ;;  %v2098_v19 = vadd.f32 %v1292_v17, %v961_v14 }
 0x152   : >> { %1450 = vst.msk [vmem:[%s2552_s18 + $0xc8] sm:$0xff] %vm1424_vm1, %v1416_v15  ;;  %v1386_v20 = vadd.f32 %v2097_v16, %v2205_v0  ;;  %v1943_v21 = vpop.f32.mrb[28].mxu1 }
 0x153   : >> { %1449 = vst.msk [vmem:[%s2552_s18 + $0xc0] sm:$0xff] %vm1424_vm1, %v1415_v18  ;;  %v1385_v22 = vadd.f32 %v2098_v19, %v2205_v0  ;;  %v2009_v23 = vpop.f32.mrb[28].mxu0  ;;  %v971_v26 = vpop.f32.mrb[29].mxu1 }
 0x154   : >> { %v1418_v27 = vmax.f32 %v1386_v20, 0.0  ;;  %v2099_v28 = vadd.f32 %v2009_v23, %v1943_v21  ;;  %v1302_v29 = vpop.f32.mrb[29].mxu0 }
 0x155   : >> { %v1417_v30 = vmax.f32 %v1385_v22, 0.0  ;;  %v2100_v31 = vadd.f32 %v1302_v29, %v971_v26 }
 0x156   : >> { %1452 = vst.msk [vmem:[%s2552_s18 + $0xd8] sm:$0xff] %vm1424_vm1, %v1418_v27  ;;  %v1388_v24 = vadd.f32 %v2099_v28, %v2205_v0  ;;  %v1946_v32 = vpop.f32.mrb[30].mxu1 }
 0x157   : >> { %1451 = vst.msk [vmem:[%s2552_s18 + $0xd0] sm:$0xff] %vm1424_vm1, %v1417_v30  ;;  %v1387_v33 = vadd.f32 %v2100_v31, %v2205_v0  ;;  %v2012_v25 = vpop.f32.mrb[30].mxu0  ;;  %v981_v34 = vpop.f32.mrb[31].mxu1 }
 0x158   : >> { %v1420_v35 = vmax.f32 %v1388_v24, 0.0  ;;  %v2101_v36 = vadd.f32 %v2012_v25, %v1946_v32  ;;  %v1312_v37 = vpop.f32.mrb[31].mxu0 }
 0x159   : >> { %v1419_v38 = vmax.f32 %v1387_v33, 0.0  ;;  %v2102_v39 = vadd.f32 %v1312_v37, %v981_v34  ;;  %223 = sbr.rel (!%p221_p5) target bundleno = 18 (0x12), region = 82 }
 0x15a   : >> { %1454 = vst.msk [vmem:[%s2552_s18 + $0xe8] sm:$0xff] %vm1424_vm1, %v1420_v35  ;;  %v1390_v40 = vadd.f32 %v2101_v36, %v2205_v0 }
 0x15b   : >> { %1453 = vst.msk [vmem:[%s2552_s18 + $0xe0] sm:$0xff] %vm1424_vm1, %v1419_v38  ;;  %v1389_v41 = vadd.f32 %v2102_v39, %v2205_v0 }
 0x15c   : >> { %v1422_v42 = vmax.f32 %v1390_v40, 0.0 }
 0x15d   : >> { %v1421_v43 = vmax.f32 %v1389_v41, 0.0 }
 0x15e   : >> { %1456 = vst.msk [vmem:[%s2552_s18 + $0xf8] sm:$0xff] %vm1424_vm1, %v1422_v42 }
 0x15f   : >> { %1455 = vst.msk [vmem:[%s2552_s18 + $0xf0] sm:$0xff] %vm1424_vm1, %v1421_v43 }
 0x160 PF: > { %s14_s15 = sadd.s32 1, %s2163_s15  }
 0x161   : > { %p11_p6 = scmp.ge.s32.totalorder %s14_s15, 4  }
 0x163   :  { %13 = sbr.rel (!%p11_p6) target bundleno = 1 (0x1), region = 93 }

</bundles_post_ra>
